<compile_context>
chip_gen: v7x
topology: tpu7x:2x2x1
jax: 0.10.0
libtpu: 0.0.40
codegen_flags: <defaults>
</compile_context>

<pallas_src>
import jax
import jax.numpy as jnp
from jax import lax
from jax.experimental import pallas as pl
from jax.experimental.pallas import tpu as pltpu


def _fused_gru_kernel(x_ref, wih_ref, whh_ref, bih_ref, bhn_ref, h0_ref, out_ref):
    """All NB GRU blocks fused; runs the full (B, T) sequence in one call.

    wih_ref : (D, 3*NB*H)      bf16, gate-major columns
    whh_ref : (NB*H, 3*NB*H)   bf16, block-diagonal inside each gate slab
    bih_ref : (1, 3*NB*H)      f32, b_ih with b_hr/b_hz already folded in
    bhn_ref : (1, NB*H)        f32, b_hn (must be applied inside r*(...))
    """
    B, T, D = x_ref.shape
    NH = h0_ref.shape[-1]          # NB * H  (lane-dense state width, 256 here)
    G3 = 3 * NH                    # fused gate width

    # ---- Input projection for all blocks & timesteps, hoisted off the
    # ---- recurrent critical path (single wide bf16 MXU matmul; b_ih + b_hr/b_hz
    # ---- folded in here, outside the serial loop).
    x2d = x_ref[...].reshape(B * T, D).astype(jnp.bfloat16)        # (B*T, D)
    xg_all = jnp.dot(x2d, wih_ref[...], preferred_element_type=jnp.float32)
    xg_all = (xg_all + bih_ref[...]).reshape(B, T, G3)             # (B, T, 3*NB*H)

    whh = whh_ref[...]                                             # bf16, resident
    bhn = jnp.broadcast_to(bhn_ref[...], (B, NH))                  # hoisted broadcast

    h = h0_ref[...]                                                # (B, NB*H) f32
    # T is static and small: full unroll (cross-step scheduler visibility).
    for t in range(T):
        xg = xg_all[:, t, :]                                       # (B, 3*NB*H)
        # Only true sequential dependency: h @ W_hh (bf16 MXU, f32 accumulate).
        hg = jnp.dot(h.astype(jnp.bfloat16), whh,
                     preferred_element_type=jnp.float32)           # (B, 3*NB*H)
        # PyTorch GRU gate order [r, z, n]; each slab is NH=256 lanes wide.
        r = jax.nn.sigmoid(xg[:, :NH] + hg[:, :NH])
        zg = jax.nn.sigmoid(xg[:, NH:2 * NH] + hg[:, NH:2 * NH])
        n = jnp.tanh(xg[:, 2 * NH:] + r * (hg[:, 2 * NH:] + bhn))
        h = n + zg * (h - n)                                       # == (1-z)*n + z*h
        # Lane-dense (2, 1, 256) store, static index t; off the critical path.
        out_ref[:, pl.ds(t, 1), :] = h[:, None, :]


def prepare_sequence_model_params(params, compute_dtype=jnp.bfloat16):
    """One-time (init / checkpoint-load) fusion of per-block GRU params.

    Inputs (stacked over num_blocks, pre-transposed to `x @ W` form, PyTorch
    gate order [r, z, n]):
      wih : (NB, D, 3H), whh : (NB, H, 3H), bih : (NB, 1, 3H), bhh : (NB, 1, 3H)

    Returns the fused, kernel-ready layout:
      wih_f : (D, 3*NB*H)      bf16, gate-major [r | z | n], block-major in-slab
      whh_f : (NB*H, 3*NB*H)   bf16, block-diagonal inside each gate slab
      bih_f : (1, 3*NB*H)      f32, b_ih with b_hr/b_hz folded in
      bhn_f : (1, NB*H)        f32, b_hn kept separate (applied inside r*(...))
    """
    wih, whh, bih, bhh = params
    wih = wih.astype(jnp.float32)
    whh = whh.astype(jnp.float32)
    bih = bih.astype(jnp.float32)
    bhh = bhh.astype(jnp.float32)

    NB, D, H3 = wih.shape
    H = H3 // 3
    G = NB * H

    # (NB, D, 3, H) -> (D, 3, NB, H) -> (D, 3G)
    wih_f = wih.reshape(NB, D, 3, H).transpose(1, 2, 0, 3).reshape(D, 3 * G)

    # whh[i, p, g*H+q] -> whh_f[i*H+p, g*G + i*H + q], zero off-block.
    whh_r = whh.reshape(NB, H, 3, H)                       # [i, p, g, q]
    eye = jnp.eye(NB, dtype=whh.dtype)                     # [i, j]
    whh_f = jnp.einsum('ipgq,ij->ipgjq', whh_r, eye).reshape(NB * H, 3 * G)

    bih_f = bih.reshape(NB, 3, H).transpose(1, 0, 2).reshape(1, 3 * G)
    bhh_f = bhh.reshape(NB, 3, H).transpose(1, 0, 2).reshape(1, 3 * G)

    # Fold b_hr / b_hz into b_ih (same pre-activation sum); b_hn must stay
    # separate (PyTorch: n = tanh(W_in x + b_in + r * (W_hn h + b_hn))).
    bih_fold = bih_f.at[:, :2 * G].add(bhh_f[:, :2 * G])
    bhn_f = bhh_f[:, 2 * G:]

    return (wih_f.astype(compute_dtype), whh_f.astype(compute_dtype),
            bih_fold.astype(jnp.float32), bhn_f.astype(jnp.float32))


def sequence_model_forward(z, a, h, fused_params):
    """z: (B, T, L*C), a: (B, T, A), h: (B, model_dim * num_blocks).

    `fused_params` must come from prepare_sequence_model_params() — the fusion
    is intentionally NOT done here so it never sits on the per-forward path.
    """
    wih_f, whh_f, bih_f, bhn_f = fused_params
    B, T, _ = z.shape
    NH = whh_f.shape[0]                                   # NB * H

    # torch.cat((a, z), dim=-1): action first.
    x = jnp.concatenate([a, z], axis=-1).astype(jnp.float32)        # (B, T, D_in)
    # h's last dim is already block-major ([block0 H | block1 H | ...]) — exactly
    # the fused state layout the kernel uses, so no reshuffle needed.
    h0 = h.astype(jnp.float32)                                       # (B, NB*H)

    # Everything (~1 MiB) is fully VMEM-resident in a single invocation (no grid).
    out = pl.pallas_call(
        _fused_gru_kernel,
        out_shape=jax.ShapeDtypeStruct((B, T, NH), jnp.float32),
        in_specs=[pl.BlockSpec(memory_space=pltpu.MemorySpace.VMEM)] * 6,
        out_specs=pl.BlockSpec(memory_space=pltpu.MemorySpace.VMEM),
    )(x, wih_f, whh_f, bih_f, bhn_f, h0)

    return out                                       # (B, T, NB*H), block-major


def _gru_reference(x, wih, whh, bih, bhh, h0):
    """Pure-JAX single GRU block (PyTorch semantics), with the same bf16
    MXU-input casts as the kernel so tolerances stay tight."""
    H = h0.shape[-1]
    wih_b = wih.astype(jnp.bfloat16)
    whh_b = whh.astype(jnp.bfloat16)

    def step(hc, x_t):
        xg = jnp.dot(x_t.astype(jnp.bfloat16), wih_b,
                     preferred_element_type=jnp.float32) + bih[0]
        hg = jnp.dot(hc.astype(jnp.bfloat16), whh_b,
                     preferred_element_type=jnp.float32) + bhh[0]
        r = jax.nn.sigmoid(xg[:, :H] + hg[:, :H])
        zg = jax.nn.sigmoid(xg[:, H:2 * H] + hg[:, H:2 * H])
        n = jnp.tanh(xg[:, 2 * H:] + r * hg[:, 2 * H:])
        h_new = (1.0 - zg) * n + zg * hc
        return h_new, h_new

    _, outs = lax.scan(step, h0, jnp.swapaxes(x, 0, 1))
    return jnp.swapaxes(outs, 0, 1)


if __name__ == "__main__":
    # Small shapes consistent with the module's forward.
    latent_size = 4
    latent_categories_size = 4
    action_size = 4
    model_dim = 32
    num_blocks = 8
    B, T = 2, 8
    D_in = latent_size * latent_categories_size + action_size   # 20

    key = jax.random.PRNGKey(0)
    keys = jax.random.split(key, 7)
    z = jax.random.normal(keys[0], (B, T, latent_size * latent_categories_size),
                          jnp.float32)
    a = jax.random.normal(keys[1], (B, T, action_size), jnp.float32)
    h = jax.random.normal(keys[2], (B, model_dim * num_blocks), jnp.float32)

    # Deterministic GRU parameters (PyTorch-style uniform(-1/sqrt(H), 1/sqrt(H))),
    # already transposed for x @ W form, stacked over num_blocks.
    s = 1.0 / float(jnp.sqrt(model_dim))
    wih = jax.random.uniform(keys[3], (num_blocks, D_in, 3 * model_dim),
                             jnp.float32, -s, s)
    whh = jax.random.uniform(keys[4], (num_blocks, model_dim, 3 * model_dim),
                             jnp.float32, -s, s)
    bih = jax.random.uniform(keys[5], (num_blocks, 1, 3 * model_dim),
                             jnp.float32, -s, s)
    bhh = jax.random.uniform(keys[6], (num_blocks, 1, 3 * model_dim),
                             jnp.float32, -s, s)

    # One-time parameter fusion (init / checkpoint load) — outside the jitted
    # forward, so the block-diag build + bf16 cast never run per step.
    fused_params = jax.tree_util.tree_map(
        jax.block_until_ready,
        prepare_sequence_model_params((wih, whh, bih, bhh)))

    fwd = jax.jit(sequence_model_forward)
    out = fwd(z, a, h, fused_params)
    out = jax.block_until_ready(out)
    assert out.shape == (B, T, model_dim * num_blocks)

    # Pure-JAX per-block reference check (same math, lax.scan).
    x = jnp.concatenate([a, z], axis=-1)
    h0b = h.reshape(B, num_blocks, model_dim)
    ref = jnp.concatenate(
        [_gru_reference(x, wih[i], whh[i], bih[i], bhh[i], h0b[:, i, :])
         for i in range(num_blocks)], axis=-1)
    assert jnp.allclose(out, ref, atol=1e-3, rtol=1e-3), "mismatch vs reference"

    print("KERNEL_OK")
</pallas_src>

<mosaic_0001>
module attributes {stable_mosaic.version = 11 : i64} {
  func.func @_fused_gru_kernel(%arg0: memref<2x8x20xf32, #tpu.memory_space<vmem>>, %arg1: memref<20x768xbf16, #tpu.memory_space<vmem>>, %arg2: memref<256x768xbf16, #tpu.memory_space<vmem>>, %arg3: memref<1x768xf32, #tpu.memory_space<vmem>>, %arg4: memref<1x256xf32, #tpu.memory_space<vmem>>, %arg5: memref<2x256xf32, #tpu.memory_space<vmem>>, %arg6: memref<2x8x256xf32, #tpu.memory_space<vmem>>) attributes {dimension_semantics = [], scalar_prefetch = 0 : i64, scratch_operands = 0 : i64, tpu.core_type = #tpu.core_type<tc>} {
    %c0 = arith.constant 0 : index
    %c0_0 = arith.constant 0 : index
    %c0_1 = arith.constant 0 : index
    %0 = vector.load %arg0[%c0, %c0_0, %c0_1] : memref<2x8x20xf32, #tpu.memory_space<vmem>>, vector<2x8x20xf32>
    %1 = vector.shape_cast %0 : vector<2x8x20xf32> to vector<16x20xf32>
    %2 = arith.truncf %1 : vector<16x20xf32> to vector<16x20xbf16>
    %c0_2 = arith.constant 0 : index
    %c0_3 = arith.constant 0 : index
    %3 = vector.load %arg1[%c0_2, %c0_3] : memref<20x768xbf16, #tpu.memory_space<vmem>>, vector<20x768xbf16>
    %cst = arith.constant dense<0.000000e+00> : vector<16x768xf32>
    %4 = tpu.matmul %2, %3, %cst {dimension_numbers = #tpu.dot_dimension_numbers<[1], [0], [0], [1], [0, 0, 1, 1], [], []>} : vector<16x20xbf16>, vector<20x768xbf16>, vector<16x768xf32> -> vector<16x768xf32>
    %c0_4 = arith.constant 0 : index
    %c0_5 = arith.constant 0 : index
    %5 = vector.load %arg3[%c0_4, %c0_5] : memref<1x768xf32, #tpu.memory_space<vmem>>, vector<1x768xf32>
    %6 = vector.broadcast %5 : vector<1x768xf32> to vector<16x768xf32>
    %7 = arith.addf %4, %6 : vector<16x768xf32>
    %8 = vector.shape_cast %7 : vector<16x768xf32> to vector<2x8x768xf32>
    %c0_6 = arith.constant 0 : index
    %c0_7 = arith.constant 0 : index
    %9 = vector.load %arg2[%c0_6, %c0_7] : memref<256x768xbf16, #tpu.memory_space<vmem>>, vector<256x768xbf16>
    %c0_8 = arith.constant 0 : index
    %c0_9 = arith.constant 0 : index
    %10 = vector.load %arg4[%c0_8, %c0_9] : memref<1x256xf32, #tpu.memory_space<vmem>>, vector<1x256xf32>
    %11 = vector.shape_cast %10 : vector<1x256xf32> to vector<1x256xf32>
    %12 = vector.broadcast %11 : vector<1x256xf32> to vector<2x256xf32>
    %c0_10 = arith.constant 0 : index
    %c0_11 = arith.constant 0 : index
    %13 = vector.load %arg5[%c0_10, %c0_11] : memref<2x256xf32, #tpu.memory_space<vmem>>, vector<2x256xf32>
    %14 = vector.extract_strided_slice %8 {offsets = [0, 0, 0], sizes = [2, 1, 768], strides = [1, 1, 1]} : vector<2x8x768xf32> to vector<2x1x768xf32>
    %15 = vector.shape_cast %14 : vector<2x1x768xf32> to vector<2x768xf32>
    %16 = arith.truncf %13 : vector<2x256xf32> to vector<2x256xbf16>
    %cst_12 = arith.constant dense<0.000000e+00> : vector<2x768xf32>
    %17 = tpu.matmul %16, %9, %cst_12 {dimension_numbers = #tpu.dot_dimension_numbers<[1], [0], [0], [1], [0, 0, 1, 1], [], []>} : vector<2x256xbf16>, vector<256x768xbf16>, vector<2x768xf32> -> vector<2x768xf32>
    %18 = vector.extract_strided_slice %15 {offsets = [0, 0], sizes = [2, 256], strides = [1, 1]} : vector<2x768xf32> to vector<2x256xf32>
    %19 = vector.extract_strided_slice %17 {offsets = [0, 0], sizes = [2, 256], strides = [1, 1]} : vector<2x768xf32> to vector<2x256xf32>
    %20 = arith.addf %18, %19 : vector<2x256xf32>
    %21 = arith.negf %20 : vector<2x256xf32>
    %22 = math.exp %21 : vector<2x256xf32>
    %cst_13 = arith.constant 1.000000e+00 : f32
    %23 = vector.broadcast %cst_13 : f32 to vector<2x256xf32>
    %24 = arith.addf %23, %22 : vector<2x256xf32>
    %25 = arith.divf %23, %24 : vector<2x256xf32>
    %26 = vector.extract_strided_slice %15 {offsets = [0, 256], sizes = [2, 256], strides = [1, 1]} : vector<2x768xf32> to vector<2x256xf32>
    %27 = vector.extract_strided_slice %17 {offsets = [0, 256], sizes = [2, 256], strides = [1, 1]} : vector<2x768xf32> to vector<2x256xf32>
    %28 = arith.addf %26, %27 : vector<2x256xf32>
    %29 = arith.negf %28 : vector<2x256xf32>
    %30 = math.exp %29 : vector<2x256xf32>
    %cst_14 = arith.constant 1.000000e+00 : f32
    %31 = vector.broadcast %cst_14 : f32 to vector<2x256xf32>
    %32 = arith.addf %31, %30 : vector<2x256xf32>
    %33 = arith.divf %31, %32 : vector<2x256xf32>
    %34 = vector.extract_strided_slice %15 {offsets = [0, 512], sizes = [2, 256], strides = [1, 1]} : vector<2x768xf32> to vector<2x256xf32>
    %35 = vector.extract_strided_slice %17 {offsets = [0, 512], sizes = [2, 256], strides = [1, 1]} : vector<2x768xf32> to vector<2x256xf32>
    %36 = arith.addf %35, %12 : vector<2x256xf32>
    %37 = arith.mulf %25, %36 : vector<2x256xf32>
    %38 = arith.addf %34, %37 : vector<2x256xf32>
    %39 = math.tanh %38 : vector<2x256xf32>
    %40 = arith.subf %13, %39 : vector<2x256xf32>
    %41 = arith.mulf %33, %40 : vector<2x256xf32>
    %42 = arith.addf %39, %41 : vector<2x256xf32>
    %43 = vector.shape_cast %42 : vector<2x256xf32> to vector<2x1x256xf32>
    %c0_15 = arith.constant 0 : index
    %c0_16 = arith.constant 0 : index
    %c0_17 = arith.constant 0 : index
    %44 = vector.load %arg6[%c0_15, %c0_16, %c0_17] : memref<2x8x256xf32, #tpu.memory_space<vmem>>, vector<2x1x256xf32>
    tpu.vector_store %arg6[%c0_15, %c0_16, %c0_17], %43 {strides = array<i32>} : memref<2x8x256xf32, #tpu.memory_space<vmem>>, vector<2x1x256xf32>,
    %45 = vector.extract_strided_slice %8 {offsets = [0, 1, 0], sizes = [2, 1, 768], strides = [1, 1, 1]} : vector<2x8x768xf32> to vector<2x1x768xf32>
    %46 = vector.shape_cast %45 : vector<2x1x768xf32> to vector<2x768xf32>
    %47 = arith.truncf %42 : vector<2x256xf32> to vector<2x256xbf16>
    %cst_18 = arith.constant dense<0.000000e+00> : vector<2x768xf32>
    %48 = tpu.matmul %47, %9, %cst_18 {dimension_numbers = #tpu.dot_dimension_numbers<[1], [0], [0], [1], [0, 0, 1, 1], [], []>} : vector<2x256xbf16>, vector<256x768xbf16>, vector<2x768xf32> -> vector<2x768xf32>
    %49 = vector.extract_strided_slice %46 {offsets = [0, 0], sizes = [2, 256], strides = [1, 1]} : vector<2x768xf32> to vector<2x256xf32>
    %50 = vector.extract_strided_slice %48 {offsets = [0, 0], sizes = [2, 256], strides = [1, 1]} : vector<2x768xf32> to vector<2x256xf32>
    %51 = arith.addf %49, %50 : vector<2x256xf32>
    %52 = arith.negf %51 : vector<2x256xf32>
    %53 = math.exp %52 : vector<2x256xf32>
    %cst_19 = arith.constant 1.000000e+00 : f32
    %54 = vector.broadcast %cst_19 : f32 to vector<2x256xf32>
    %55 = arith.addf %54, %53 : vector<2x256xf32>
    %56 = arith.divf %54, %55 : vector<2x256xf32>
    %57 = vector.extract_strided_slice %46 {offsets = [0, 256], sizes = [2, 256], strides = [1, 1]} : vector<2x768xf32> to vector<2x256xf32>
    %58 = vector.extract_strided_slice %48 {offsets = [0, 256], sizes = [2, 256], strides = [1, 1]} : vector<2x768xf32> to vector<2x256xf32>
    %59 = arith.addf %57, %58 : vector<2x256xf32>
    %60 = arith.negf %59 : vector<2x256xf32>
    %61 = math.exp %60 : vector<2x256xf32>
    %cst_20 = arith.constant 1.000000e+00 : f32
    %62 = vector.broadcast %cst_20 : f32 to vector<2x256xf32>
    %63 = arith.addf %62, %61 : vector<2x256xf32>
    %64 = arith.divf %62, %63 : vector<2x256xf32>
    %65 = vector.extract_strided_slice %46 {offsets = [0, 512], sizes = [2, 256], strides = [1, 1]} : vector<2x768xf32> to vector<2x256xf32>
    %66 = vector.extract_strided_slice %48 {offsets = [0, 512], sizes = [2, 256], strides = [1, 1]} : vector<2x768xf32> to vector<2x256xf32>
    %67 = arith.addf %66, %12 : vector<2x256xf32>
    %68 = arith.mulf %56, %67 : vector<2x256xf32>
    %69 = arith.addf %65, %68 : vector<2x256xf32>
    %70 = math.tanh %69 : vector<2x256xf32>
    %71 = arith.subf %42, %70 : vector<2x256xf32>
    %72 = arith.mulf %64, %71 : vector<2x256xf32>
    %73 = arith.addf %70, %72 : vector<2x256xf32>
    %74 = vector.shape_cast %73 : vector<2x256xf32> to vector<2x1x256xf32>
    %c0_21 = arith.constant 0 : index
    %c1 = arith.constant 1 : index
    %c0_22 = arith.constant 0 : index
    %75 = vector.load %arg6[%c0_21, %c1, %c0_22] : memref<2x8x256xf32, #tpu.memory_space<vmem>>, vector<2x1x256xf32>
    tpu.vector_store %arg6[%c0_21, %c1, %c0_22], %74 {strides = array<i32>} : memref<2x8x256xf32, #tpu.memory_space<vmem>>, vector<2x1x256xf32>,
    %76 = vector.extract_strided_slice %8 {offsets = [0, 2, 0], sizes = [2, 1, 768], strides = [1, 1, 1]} : vector<2x8x768xf32> to vector<2x1x768xf32>
    %77 = vector.shape_cast %76 : vector<2x1x768xf32> to vector<2x768xf32>
    %78 = arith.truncf %73 : vector<2x256xf32> to vector<2x256xbf16>
    %cst_23 = arith.constant dense<0.000000e+00> : vector<2x768xf32>
    %79 = tpu.matmul %78, %9, %cst_23 {dimension_numbers = #tpu.dot_dimension_numbers<[1], [0], [0], [1], [0, 0, 1, 1], [], []>} : vector<2x256xbf16>, vector<256x768xbf16>, vector<2x768xf32> -> vector<2x768xf32>
    %80 = vector.extract_strided_slice %77 {offsets = [0, 0], sizes = [2, 256], strides = [1, 1]} : vector<2x768xf32> to vector<2x256xf32>
    %81 = vector.extract_strided_slice %79 {offsets = [0, 0], sizes = [2, 256], strides = [1, 1]} : vector<2x768xf32> to vector<2x256xf32>
    %82 = arith.addf %80, %81 : vector<2x256xf32>
    %83 = arith.negf %82 : vector<2x256xf32>
    %84 = math.exp %83 : vector<2x256xf32>
    %cst_24 = arith.constant 1.000000e+00 : f32
    %85 = vector.broadcast %cst_24 : f32 to vector<2x256xf32>
    %86 = arith.addf %85, %84 : vector<2x256xf32>
    %87 = arith.divf %85, %86 : vector<2x256xf32>
    %88 = vector.extract_strided_slice %77 {offsets = [0, 256], sizes = [2, 256], strides = [1, 1]} : vector<2x768xf32> to vector<2x256xf32>
    %89 = vector.extract_strided_slice %79 {offsets = [0, 256], sizes = [2, 256], strides = [1, 1]} : vector<2x768xf32> to vector<2x256xf32>
    %90 = arith.addf %88, %89 : vector<2x256xf32>
    %91 = arith.negf %90 : vector<2x256xf32>
    %92 = math.exp %91 : vector<2x256xf32>
    %cst_25 = arith.constant 1.000000e+00 : f32
    %93 = vector.broadcast %cst_25 : f32 to vector<2x256xf32>
    %94 = arith.addf %93, %92 : vector<2x256xf32>
    %95 = arith.divf %93, %94 : vector<2x256xf32>
    %96 = vector.extract_strided_slice %77 {offsets = [0, 512], sizes = [2, 256], strides = [1, 1]} : vector<2x768xf32> to vector<2x256xf32>
    %97 = vector.extract_strided_slice %79 {offsets = [0, 512], sizes = [2, 256], strides = [1, 1]} : vector<2x768xf32> to vector<2x256xf32>
    %98 = arith.addf %97, %12 : vector<2x256xf32>
    %99 = arith.mulf %87, %98 : vector<2x256xf32>
    %100 = arith.addf %96, %99 : vector<2x256xf32>
    %101 = math.tanh %100 : vector<2x256xf32>
    %102 = arith.subf %73, %101 : vector<2x256xf32>
    %103 = arith.mulf %95, %102 : vector<2x256xf32>
    %104 = arith.addf %101, %103 : vector<2x256xf32>
    %105 = vector.shape_cast %104 : vector<2x256xf32> to vector<2x1x256xf32>
    %c0_26 = arith.constant 0 : index
    %c2 = arith.constant 2 : index
    %c0_27 = arith.constant 0 : index
    %106 = vector.load %arg6[%c0_26, %c2, %c0_27] : memref<2x8x256xf32, #tpu.memory_space<vmem>>, vector<2x1x256xf32>
    tpu.vector_store %arg6[%c0_26, %c2, %c0_27], %105 {strides = array<i32>} : memref<2x8x256xf32, #tpu.memory_space<vmem>>, vector<2x1x256xf32>,
    %107 = vector.extract_strided_slice %8 {offsets = [0, 3, 0], sizes = [2, 1, 768], strides = [1, 1, 1]} : vector<2x8x768xf32> to vector<2x1x768xf32>
    %108 = vector.shape_cast %107 : vector<2x1x768xf32> to vector<2x768xf32>
    %109 = arith.truncf %104 : vector<2x256xf32> to vector<2x256xbf16>
    %cst_28 = arith.constant dense<0.000000e+00> : vector<2x768xf32>
    %110 = tpu.matmul %109, %9, %cst_28 {dimension_numbers = #tpu.dot_dimension_numbers<[1], [0], [0], [1], [0, 0, 1, 1], [], []>} : vector<2x256xbf16>, vector<256x768xbf16>, vector<2x768xf32> -> vector<2x768xf32>
    %111 = vector.extract_strided_slice %108 {offsets = [0, 0], sizes = [2, 256], strides = [1, 1]} : vector<2x768xf32> to vector<2x256xf32>
    %112 = vector.extract_strided_slice %110 {offsets = [0, 0], sizes = [2, 256], strides = [1, 1]} : vector<2x768xf32> to vector<2x256xf32>
    %113 = arith.addf %111, %112 : vector<2x256xf32>
    %114 = arith.negf %113 : vector<2x256xf32>
    %115 = math.exp %114 : vector<2x256xf32>
    %cst_29 = arith.constant 1.000000e+00 : f32
    %116 = vector.broadcast %cst_29 : f32 to vector<2x256xf32>
    %117 = arith.addf %116, %115 : vector<2x256xf32>
    %118 = arith.divf %116, %117 : vector<2x256xf32>
    %119 = vector.extract_strided_slice %108 {offsets = [0, 256], sizes = [2, 256], strides = [1, 1]} : vector<2x768xf32> to vector<2x256xf32>
    %120 = vector.extract_strided_slice %110 {offsets = [0, 256], sizes = [2, 256], strides = [1, 1]} : vector<2x768xf32> to vector<2x256xf32>
    %121 = arith.addf %119, %120 : vector<2x256xf32>
    %122 = arith.negf %121 : vector<2x256xf32>
    %123 = math.exp %122 : vector<2x256xf32>
    %cst_30 = arith.constant 1.000000e+00 : f32
    %124 = vector.broadcast %cst_30 : f32 to vector<2x256xf32>
    %125 = arith.addf %124, %123 : vector<2x256xf32>
    %126 = arith.divf %124, %125 : vector<2x256xf32>
    %127 = vector.extract_strided_slice %108 {offsets = [0, 512], sizes = [2, 256], strides = [1, 1]} : vector<2x768xf32> to vector<2x256xf32>
    %128 = vector.extract_strided_slice %110 {offsets = [0, 512], sizes = [2, 256], strides = [1, 1]} : vector<2x768xf32> to vector<2x256xf32>
    %129 = arith.addf %128, %12 : vector<2x256xf32>
    %130 = arith.mulf %118, %129 : vector<2x256xf32>
    %131 = arith.addf %127, %130 : vector<2x256xf32>
    %132 = math.tanh %131 : vector<2x256xf32>
    %133 = arith.subf %104, %132 : vector<2x256xf32>
    %134 = arith.mulf %126, %133 : vector<2x256xf32>
    %135 = arith.addf %132, %134 : vector<2x256xf32>
    %136 = vector.shape_cast %135 : vector<2x256xf32> to vector<2x1x256xf32>
    %c0_31 = arith.constant 0 : index
    %c3 = arith.constant 3 : index
    %c0_32 = arith.constant 0 : index
    %137 = vector.load %arg6[%c0_31, %c3, %c0_32] : memref<2x8x256xf32, #tpu.memory_space<vmem>>, vector<2x1x256xf32>
    tpu.vector_store %arg6[%c0_31, %c3, %c0_32], %136 {strides = array<i32>} : memref<2x8x256xf32, #tpu.memory_space<vmem>>, vector<2x1x256xf32>,
    %138 = vector.extract_strided_slice %8 {offsets = [0, 4, 0], sizes = [2, 1, 768], strides = [1, 1, 1]} : vector<2x8x768xf32> to vector<2x1x768xf32>
    %139 = vector.shape_cast %138 : vector<2x1x768xf32> to vector<2x768xf32>
    %140 = arith.truncf %135 : vector<2x256xf32> to vector<2x256xbf16>
    %cst_33 = arith.constant dense<0.000000e+00> : vector<2x768xf32>
    %141 = tpu.matmul %140, %9, %cst_33 {dimension_numbers = #tpu.dot_dimension_numbers<[1], [0], [0], [1], [0, 0, 1, 1], [], []>} : vector<2x256xbf16>, vector<256x768xbf16>, vector<2x768xf32> -> vector<2x768xf32>
    %142 = vector.extract_strided_slice %139 {offsets = [0, 0], sizes = [2, 256], strides = [1, 1]} : vector<2x768xf32> to vector<2x256xf32>
    %143 = vector.extract_strided_slice %141 {offsets = [0, 0], sizes = [2, 256], strides = [1, 1]} : vector<2x768xf32> to vector<2x256xf32>
    %144 = arith.addf %142, %143 : vector<2x256xf32>
    %145 = arith.negf %144 : vector<2x256xf32>
    %146 = math.exp %145 : vector<2x256xf32>
    %cst_34 = arith.constant 1.000000e+00 : f32
    %147 = vector.broadcast %cst_34 : f32 to vector<2x256xf32>
    %148 = arith.addf %147, %146 : vector<2x256xf32>
    %149 = arith.divf %147, %148 : vector<2x256xf32>
    %150 = vector.extract_strided_slice %139 {offsets = [0, 256], sizes = [2, 256], strides = [1, 1]} : vector<2x768xf32> to vector<2x256xf32>
    %151 = vector.extract_strided_slice %141 {offsets = [0, 256], sizes = [2, 256], strides = [1, 1]} : vector<2x768xf32> to vector<2x256xf32>
    %152 = arith.addf %150, %151 : vector<2x256xf32>
    %153 = arith.negf %152 : vector<2x256xf32>
    %154 = math.exp %153 : vector<2x256xf32>
    %cst_35 = arith.constant 1.000000e+00 : f32
    %155 = vector.broadcast %cst_35 : f32 to vector<2x256xf32>
    %156 = arith.addf %155, %154 : vector<2x256xf32>
    %157 = arith.divf %155, %156 : vector<2x256xf32>
    %158 = vector.extract_strided_slice %139 {offsets = [0, 512], sizes = [2, 256], strides = [1, 1]} : vector<2x768xf32> to vector<2x256xf32>
    %159 = vector.extract_strided_slice %141 {offsets = [0, 512], sizes = [2, 256], strides = [1, 1]} : vector<2x768xf32> to vector<2x256xf32>
    %160 = arith.addf %159, %12 : vector<2x256xf32>
    %161 = arith.mulf %149, %160 : vector<2x256xf32>
    %162 = arith.addf %158, %161 : vector<2x256xf32>
    %163 = math.tanh %162 : vector<2x256xf32>
    %164 = arith.subf %135, %163 : vector<2x256xf32>
    %165 = arith.mulf %157, %164 : vector<2x256xf32>
    %166 = arith.addf %163, %165 : vector<2x256xf32>
    %167 = vector.shape_cast %166 : vector<2x256xf32> to vector<2x1x256xf32>
    %c0_36 = arith.constant 0 : index
    %c4 = arith.constant 4 : index
    %c0_37 = arith.constant 0 : index
    %168 = vector.load %arg6[%c0_36, %c4, %c0_37] : memref<2x8x256xf32, #tpu.memory_space<vmem>>, vector<2x1x256xf32>
    tpu.vector_store %arg6[%c0_36, %c4, %c0_37], %167 {strides = array<i32>} : memref<2x8x256xf32, #tpu.memory_space<vmem>>, vector<2x1x256xf32>,
    %169 = vector.extract_strided_slice %8 {offsets = [0, 5, 0], sizes = [2, 1, 768], strides = [1, 1, 1]} : vector<2x8x768xf32> to vector<2x1x768xf32>
    %170 = vector.shape_cast %169 : vector<2x1x768xf32> to vector<2x768xf32>
    %171 = arith.truncf %166 : vector<2x256xf32> to vector<2x256xbf16>
    %cst_38 = arith.constant dense<0.000000e+00> : vector<2x768xf32>
    %172 = tpu.matmul %171, %9, %cst_38 {dimension_numbers = #tpu.dot_dimension_numbers<[1], [0], [0], [1], [0, 0, 1, 1], [], []>} : vector<2x256xbf16>, vector<256x768xbf16>, vector<2x768xf32> -> vector<2x768xf32>
    %173 = vector.extract_strided_slice %170 {offsets = [0, 0], sizes = [2, 256], strides = [1, 1]} : vector<2x768xf32> to vector<2x256xf32>
    %174 = vector.extract_strided_slice %172 {offsets = [0, 0], sizes = [2, 256], strides = [1, 1]} : vector<2x768xf32> to vector<2x256xf32>
    %175 = arith.addf %173, %174 : vector<2x256xf32>
    %176 = arith.negf %175 : vector<2x256xf32>
    %177 = math.exp %176 : vector<2x256xf32>
    %cst_39 = arith.constant 1.000000e+00 : f32
    %178 = vector.broadcast %cst_39 : f32 to vector<2x256xf32>
    %179 = arith.addf %178, %177 : vector<2x256xf32>
    %180 = arith.divf %178, %179 : vector<2x256xf32>
    %181 = vector.extract_strided_slice %170 {offsets = [0, 256], sizes = [2, 256], strides = [1, 1]} : vector<2x768xf32> to vector<2x256xf32>
    %182 = vector.extract_strided_slice %172 {offsets = [0, 256], sizes = [2, 256], strides = [1, 1]} : vector<2x768xf32> to vector<2x256xf32>
    %183 = arith.addf %181, %182 : vector<2x256xf32>
    %184 = arith.negf %183 : vector<2x256xf32>
    %185 = math.exp %184 : vector<2x256xf32>
    %cst_40 = arith.constant 1.000000e+00 : f32
    %186 = vector.broadcast %cst_40 : f32 to vector<2x256xf32>
    %187 = arith.addf %186, %185 : vector<2x256xf32>
    %188 = arith.divf %186, %187 : vector<2x256xf32>
    %189 = vector.extract_strided_slice %170 {offsets = [0, 512], sizes = [2, 256], strides = [1, 1]} : vector<2x768xf32> to vector<2x256xf32>
    %190 = vector.extract_strided_slice %172 {offsets = [0, 512], sizes = [2, 256], strides = [1, 1]} : vector<2x768xf32> to vector<2x256xf32>
    %191 = arith.addf %190, %12 : vector<2x256xf32>
    %192 = arith.mulf %180, %191 : vector<2x256xf32>
    %193 = arith.addf %189, %192 : vector<2x256xf32>
    %194 = math.tanh %193 : vector<2x256xf32>
    %195 = arith.subf %166, %194 : vector<2x256xf32>
    %196 = arith.mulf %188, %195 : vector<2x256xf32>
    %197 = arith.addf %194, %196 : vector<2x256xf32>
    %198 = vector.shape_cast %197 : vector<2x256xf32> to vector<2x1x256xf32>
    %c0_41 = arith.constant 0 : index
    %c5 = arith.constant 5 : index
    %c0_42 = arith.constant 0 : index
    %199 = vector.load %arg6[%c0_41, %c5, %c0_42] : memref<2x8x256xf32, #tpu.memory_space<vmem>>, vector<2x1x256xf32>
    tpu.vector_store %arg6[%c0_41, %c5, %c0_42], %198 {strides = array<i32>} : memref<2x8x256xf32, #tpu.memory_space<vmem>>, vector<2x1x256xf32>,
    %200 = vector.extract_strided_slice %8 {offsets = [0, 6, 0], sizes = [2, 1, 768], strides = [1, 1, 1]} : vector<2x8x768xf32> to vector<2x1x768xf32>
    %201 = vector.shape_cast %200 : vector<2x1x768xf32> to vector<2x768xf32>
    %202 = arith.truncf %197 : vector<2x256xf32> to vector<2x256xbf16>
    %cst_43 = arith.constant dense<0.000000e+00> : vector<2x768xf32>
    %203 = tpu.matmul %202, %9, %cst_43 {dimension_numbers = #tpu.dot_dimension_numbers<[1], [0], [0], [1], [0, 0, 1, 1], [], []>} : vector<2x256xbf16>, vector<256x768xbf16>, vector<2x768xf32> -> vector<2x768xf32>
    %204 = vector.extract_strided_slice %201 {offsets = [0, 0], sizes = [2, 256], strides = [1, 1]} : vector<2x768xf32> to vector<2x256xf32>
    %205 = vector.extract_strided_slice %203 {offsets = [0, 0], sizes = [2, 256], strides = [1, 1]} : vector<2x768xf32> to vector<2x256xf32>
    %206 = arith.addf %204, %205 : vector<2x256xf32>
    %207 = arith.negf %206 : vector<2x256xf32>
    %208 = math.exp %207 : vector<2x256xf32>
    %cst_44 = arith.constant 1.000000e+00 : f32
    %209 = vector.broadcast %cst_44 : f32 to vector<2x256xf32>
    %210 = arith.addf %209, %208 : vector<2x256xf32>
    %211 = arith.divf %209, %210 : vector<2x256xf32>
    %212 = vector.extract_strided_slice %201 {offsets = [0, 256], sizes = [2, 256], strides = [1, 1]} : vector<2x768xf32> to vector<2x256xf32>
    %213 = vector.extract_strided_slice %203 {offsets = [0, 256], sizes = [2, 256], strides = [1, 1]} : vector<2x768xf32> to vector<2x256xf32>
    %214 = arith.addf %212, %213 : vector<2x256xf32>
    %215 = arith.negf %214 : vector<2x256xf32>
    %216 = math.exp %215 : vector<2x256xf32>
    %cst_45 = arith.constant 1.000000e+00 : f32
    %217 = vector.broadcast %cst_45 : f32 to vector<2x256xf32>
    %218 = arith.addf %217, %216 : vector<2x256xf32>
    %219 = arith.divf %217, %218 : vector<2x256xf32>
    %220 = vector.extract_strided_slice %201 {offsets = [0, 512], sizes = [2, 256], strides = [1, 1]} : vector<2x768xf32> to vector<2x256xf32>
    %221 = vector.extract_strided_slice %203 {offsets = [0, 512], sizes = [2, 256], strides = [1, 1]} : vector<2x768xf32> to vector<2x256xf32>
    %222 = arith.addf %221, %12 : vector<2x256xf32>
    %223 = arith.mulf %211, %222 : vector<2x256xf32>
    %224 = arith.addf %220, %223 : vector<2x256xf32>
    %225 = math.tanh %224 : vector<2x256xf32>
    %226 = arith.subf %197, %225 : vector<2x256xf32>
    %227 = arith.mulf %219, %226 : vector<2x256xf32>
    %228 = arith.addf %225, %227 : vector<2x256xf32>
    %229 = vector.shape_cast %228 : vector<2x256xf32> to vector<2x1x256xf32>
    %c0_46 = arith.constant 0 : index
    %c6 = arith.constant 6 : index
    %c0_47 = arith.constant 0 : index
    %230 = vector.load %arg6[%c0_46, %c6, %c0_47] : memref<2x8x256xf32, #tpu.memory_space<vmem>>, vector<2x1x256xf32>
    tpu.vector_store %arg6[%c0_46, %c6, %c0_47], %229 {strides = array<i32>} : memref<2x8x256xf32, #tpu.memory_space<vmem>>, vector<2x1x256xf32>,
    %231 = vector.extract_strided_slice %8 {offsets = [0, 7, 0], sizes = [2, 1, 768], strides = [1, 1, 1]} : vector<2x8x768xf32> to vector<2x1x768xf32>
    %232 = vector.shape_cast %231 : vector<2x1x768xf32> to vector<2x768xf32>
    %233 = arith.truncf %228 : vector<2x256xf32> to vector<2x256xbf16>
    %cst_48 = arith.constant dense<0.000000e+00> : vector<2x768xf32>
    %234 = tpu.matmul %233, %9, %cst_48 {dimension_numbers = #tpu.dot_dimension_numbers<[1], [0], [0], [1], [0, 0, 1, 1], [], []>} : vector<2x256xbf16>, vector<256x768xbf16>, vector<2x768xf32> -> vector<2x768xf32>
    %235 = vector.extract_strided_slice %232 {offsets = [0, 0], sizes = [2, 256], strides = [1, 1]} : vector<2x768xf32> to vector<2x256xf32>
    %236 = vector.extract_strided_slice %234 {offsets = [0, 0], sizes = [2, 256], strides = [1, 1]} : vector<2x768xf32> to vector<2x256xf32>
    %237 = arith.addf %235, %236 : vector<2x256xf32>
    %238 = arith.negf %237 : vector<2x256xf32>
    %239 = math.exp %238 : vector<2x256xf32>
    %cst_49 = arith.constant 1.000000e+00 : f32
    %240 = vector.broadcast %cst_49 : f32 to vector<2x256xf32>
    %241 = arith.addf %240, %239 : vector<2x256xf32>
    %242 = arith.divf %240, %241 : vector<2x256xf32>
    %243 = vector.extract_strided_slice %232 {offsets = [0, 256], sizes = [2, 256], strides = [1, 1]} : vector<2x768xf32> to vector<2x256xf32>
    %244 = vector.extract_strided_slice %234 {offsets = [0, 256], sizes = [2, 256], strides = [1, 1]} : vector<2x768xf32> to vector<2x256xf32>
    %245 = arith.addf %243, %244 : vector<2x256xf32>
    %246 = arith.negf %245 : vector<2x256xf32>
    %247 = math.exp %246 : vector<2x256xf32>
    %cst_50 = arith.constant 1.000000e+00 : f32
    %248 = vector.broadcast %cst_50 : f32 to vector<2x256xf32>
    %249 = arith.addf %248, %247 : vector<2x256xf32>
    %250 = arith.divf %248, %249 : vector<2x256xf32>
    %251 = vector.extract_strided_slice %232 {offsets = [0, 512], sizes = [2, 256], strides = [1, 1]} : vector<2x768xf32> to vector<2x256xf32>
    %252 = vector.extract_strided_slice %234 {offsets = [0, 512], sizes = [2, 256], strides = [1, 1]} : vector<2x768xf32> to vector<2x256xf32>
    %253 = arith.addf %252, %12 : vector<2x256xf32>
    %254 = arith.mulf %242, %253 : vector<2x256xf32>
    %255 = arith.addf %251, %254 : vector<2x256xf32>
    %256 = math.tanh %255 : vector<2x256xf32>
    %257 = arith.subf %228, %256 : vector<2x256xf32>
    %258 = arith.mulf %250, %257 : vector<2x256xf32>
    %259 = arith.addf %256, %258 : vector<2x256xf32>
    %260 = vector.shape_cast %259 : vector<2x256xf32> to vector<2x1x256xf32>
    %c0_51 = arith.constant 0 : index
    %c7 = arith.constant 7 : index
    %c0_52 = arith.constant 0 : index
    %261 = vector.load %arg6[%c0_51, %c7, %c0_52] : memref<2x8x256xf32, #tpu.memory_space<vmem>>, vector<2x1x256xf32>
    tpu.vector_store %arg6[%c0_51, %c7, %c0_52], %260 {strides = array<i32>} : memref<2x8x256xf32, #tpu.memory_space<vmem>>, vector<2x1x256xf32>,
    return
  }
}

</mosaic_0001>

<bundles_post_ra>
// kernel: sequence_model_forward.1
= control target key start
LH: loop header
LB: loop body
LE: loop exit
PB: predicated region body
PF: predicated region fallthrough
CT: control target
= control target key end

     0   :  { %11 = vsyncpa [#allocation3], 0  ;;  %s6324_s0 = inlined_call_operand.vmem [shape: f32[2,8,20], index: 0, kind: input, shape index: {}]   ;;  %s6325_s1 = inlined_call_operand.vmem [shape: bf16[20,768], index: 1, kind: input, shape index: {}]   ;;  %s6326_s2 = inlined_call_operand.hbm [shape: bf16[256,768], index: 2, kind: input, shape index: {}]   ;;  %s6327_s3 = inlined_call_operand.vmem [shape: f32[1,768], index: 3, kind: input, shape index: {}]   ;;  %s6328_s4 = inlined_call_operand.vmem [shape: f32[1,256], index: 4, kind: input, shape index: {}]   ;;  %s6329_s5 = inlined_call_operand.vmem [shape: f32[2,256], index: 5, kind: input, shape index: {}]   ;;  %s6330_s6 = inlined_call_operand.hbm [shape: f32[2,8,256], index: 6, kind: output, shape index: {}]  }
   0x1   :  { %12 = vsyncpa [#allocation4], 0  ;;  %s4392_s21 = smov [#allocation2]   ;;  %s4344_s25 = scalar_lea.hbm %s6326_s2, 12288 }
   0x2   :  { %s22_s22 = sshll.u32 %s4392_s21, 4  ;;  %p4345_p0 = scmp.ne.s32.totalorder %s6326_s2, %s4344_s25  ;;  %s23_s22 = int_to_ptr.vmem [resolvable:$true] %s22_s22 }
   0x3   :  { %p4348_p1 = scmp.lt.u32.totalorder %s4344_s25, %s6326_s2 }
   0x5   :  { %p4350_p2 = pnand %p4348_p1, %p4345_p0 }
   0x7   :  { %4353 = shalt.err (!%p4350_p2)
}
   0x8   :  { %s4354_s30 = scalar_lea.vmem %s23_s22, 12288  ;;  %p4359_p4 = scmp.lt.s32.totalorder %s23_s22, %s23_s22 }
   0x9   :  { %p4355_p3 = scmp.ne.s32.totalorder %s23_s22, %s4354_s30  ;;  %p4360_p5 = scmp.lt.s32.totalorder %s4354_s30, %s4354_s30 }
   0xb   :  { %p4361_p6 = por %p4360_p5, %p4359_p4 }
   0xd   :  { %p4362_p7 = pnand %p4361_p6, %p4355_p3 }
   0xf   :  { %4365 = shalt.err (!%p4362_p7)
}
  0x10   :  { %s4393_s7 = smov 384   ;;  %s4394_s8 = smov 24  }
  0x11   :  { %28 = dma.hbm_to_vmem [thread:$0]  %s6326_s2, 12288, %s23_s22, [#allocation3], %s4393_s7, %s4393_s7, %s4394_s8  }
  0x12   :  { %4388 = dma.done.wait [#allocation3], 12288  }
  0x13   :  { %4389 = vsyncadd [#allocation3], 4294955008  ;;  %v4395_v0 = vmov 0   ;;  %v3673_v1 = vld [vmem:[%s6325_s1 + $0x4] ss:$24 sps:$4 sm:$0xff]   ;;  %vm132_vm0 = vcmask 1041408   ;;  %v6331_v48 = vlaneseq }
  0x14   :  { %226 = vmatprep.mubr.bf16.mxu1 %v4395_v0  ;;  %183 = vmatprep.mubr.bf16.mxu0 %v4395_v0  ;;  %v3675_v2 = vld [vmem:[%s6325_s1 + $0xc] ss:$24 sps:$4 sm:$0xff]   ;;  %v3677_v3 = vld [vmem:[%s6325_s1] ss:$24 sps:$4 sm:$0xff]   ;;  %v48_v5 = vld [vmem:[%s6325_s1 + $0x30] sm:$0x33] }
  0x15   :  { %151 = vmatprep.subr.bf16.mxu0 %v3673_v1  ;;  %v3678_v4 = vld [vmem:[%s6325_s1 + $0x8] ss:$24 sps:$4 sm:$0xff]   ;;  %194 = vmatprep.subr.bf16.mxu1 %v3675_v2  ;;  %v3493_v6 = vcombine.high %v48_v5, %v48_v5  ;;  %v49_v7 = vld [vmem:[%s6325_s1 + $0x38] sm:$0x33]  ;;  %v3492_v8 = vcombine.low %v48_v5, %v48_v5  ;;  %v3685_v14 = vld [vmem:[%s6325_s1 + $0x14] ss:$24 sps:$4 sm:$0xff]  }
  0x16   :  { %v39_v9 = vld [vmem:[%s6324_s0] sm:$0xff]  ;;  %152 = vmatpush1.bf16.msra.mxu0 %v3677_v3  ;;  %195 = vmatpush1.bf16.msra.mxu1 %v3678_v4  ;;  %v3495_v10 = vcombine.high %v49_v7, %v49_v7  ;;  %v3494_v11 = vcombine.low %v49_v7, %v49_v7  ;;  %v40_v12 = vld [vmem:[%s6324_s0 + $0x8] sm:$0xff]  ;;  %vm128_vm1 = vcmask 162816   ;;  %v4513_v31 = vld [vmem:[#allocation2 + $0x3c] ss:$24 sps:$4 sm:$0xff]   ;;  %v4577_v55 = vshrl.u32 %v6331_v48, 7 }
  0x17   :  { %3498 = vmatprep.subr.msk.bf16.mxu0 %vm132_vm0, %v3493_v6  ;;  %v134_v13 = vsel %vm132_vm0, %v3492_v8, 0  ;;  %v4479_v16 = vld [vmem:[#allocation2 + $0x4] ss:$24 sps:$4 sm:$0xff]   ;;  %v41_v17 = vpack.c.bf16 %v40_v12, %v39_v9  ;;  %v3683_v18 = vld [vmem:[%s6325_s1 + $0x10] ss:$24 sps:$4 sm:$0xff]   ;;  %vm1124_vm2 = vcmask 1041409  }
  0x18   :  { %3500 = vmatprep.subr.msk.bf16.mxu1 %vm132_vm0, %v3495_v10  ;;  %v140_v15 = vsel %vm132_vm0, %v3494_v11, 0  ;;  %v50_v19 = vld [vmem:[%s6325_s1 + $0x40] sm:$0x33]  ;;  %v4490_v22 = vld [vmem:[#allocation2 + $0x34] ss:$24 sps:$4 sm:$0xff]   ;;  %6618 = vst [vmem:[#allocation8_spill] sm:$0xff] %v4577_v55 }
  0x19   :  { %v4487_v20 = vld [vmem:[#allocation2] ss:$24 sps:$4 sm:$0xff]   ;;  %v3497_v21 = vcombine.high %v50_v19, %v50_v19  ;;  %v3496_v23 = vcombine.low %v50_v19, %v50_v19  ;;  %v4495_v24 = vld [vmem:[#allocation2 + $0x30] ss:$24 sps:$4 sm:$0xff]   ;;  %v4500_v26 = vld [vmem:[#allocation2 + $0x64] ss:$24 sps:$4 sm:$0xff]  }
  0x1a   :  { %154 = vmatpush1.bf16.msra.mxu0 %v134_v13  ;;  %197 = vmatpush1.bf16.msra.mxu1 %v140_v15  ;;  %v4502_v27 = vld [vmem:[#allocation2 + $0xc] ss:$24 sps:$4 sm:$0xff]   ;;  %v4504_v28 = vld [vmem:[#allocation2 + $0x60] ss:$24 sps:$4 sm:$0xff]   ;;  %v4516_v32 = vld [vmem:[#allocation2 + $0x90] ss:$24 sps:$4 sm:$0xff]  }
  0x1b   :  { %237 = vmatprep.subr.bf16.mxu0 %v3685_v14  ;;  %882 = vmatprep.subr.bf16.mxu1 %v4479_v16  ;;  %v146_v25 = vsel %vm132_vm0, %v3496_v23, 0  ;;  %v4506_v29 = vld [vmem:[#allocation2 + $0x8] ss:$24 sps:$4 sm:$0xff]   ;;  %v4509_v30 = vld [vmem:[#allocation2 + $0x94] ss:$24 sps:$4 sm:$0xff]   ;;  %vm1126_vm3 = vcmask 1043459  }
  0x1c   :  { %v4520_v33 = vld [vmem:[#allocation2 + $0x38] ss:$24 sps:$4 sm:$0xff]   ;;  %v4524_v34 = vld [vmem:[#allocation2 + $0xc4] ss:$24 sps:$4 sm:$0xff]   ;;  %v4530_v37 = vld [vmem:[#allocation2 + $0x68] ss:$24 sps:$4 sm:$0xff]  }
  0x1d   :  { %3501 = vmatmul.mubr.msk.bf16.vlgmr.msra.gmra.mrb[0].mxu1 %vm128_vm1, %v41_v17  ;;  %3499 = vmatmul.mubr.msk.bf16.vlgmr.msra.gmra.mrb[0].mxu0 %vm128_vm1, %v41_v17  ;;  %v4526_v35 = vld [vmem:[#allocation2 + $0x6c] ss:$24 sps:$4 sm:$0xff]   ;;  %v4528_v36 = vld [vmem:[#allocation2 + $0xc0] ss:$24 sps:$4 sm:$0xff]   ;;  %v4538_v39 = vld [vmem:[#allocation2 + $0x9c] ss:$24 sps:$4 sm:$0xff]  }
  0x1e   :  { %238 = vmatpush1.bf16.msra.mxu0 %v3683_v18  ;;  %883 = vmatpush1.bf16.msra.mxu1 %v4487_v20  ;;  %v4534_v38 = vld [vmem:[#allocation2 + $0xf4] ss:$24 sps:$4 sm:$0xff]   ;;  %v4540_v40 = vld [vmem:[#allocation2 + $0xf0] ss:$24 sps:$4 sm:$0xff]   ;;  %v4548_v42 = vld [vmem:[#allocation2 + $0x124] ss:$24 sps:$4 sm:$0xff]  }
  0x1f   :  { %3502 = vmatprep.subr.msk.bf16.mxu0 %vm132_vm0, %v3497_v21  ;;  %884 = vmatprep.subr.bf16.mxu1 %v4490_v22  ;;  %v4544_v41 = vld [vmem:[#allocation2 + $0x98] ss:$24 sps:$4 sm:$0xff]   ;;  %v4550_v43 = vld [vmem:[#allocation2 + $0xcc] ss:$24 sps:$4 sm:$0xff]   ;;  %v4554_v45 = vld [vmem:[#allocation2 + $0xc8] ss:$24 sps:$4 sm:$0xff]  }
  0x20   :  { %269 = vmatprep.mubr.bf16.mxu0 %v4395_v0  ;;  %v4552_v44 = vld [vmem:[#allocation2 + $0x120] ss:$24 sps:$4 sm:$0xff]   ;;  %v4558_v46 = vld [vmem:[#allocation2 + $0x154] ss:$24 sps:$4 sm:$0xff]   ;;  %v4396_v49 = vmov 1983009808  }
  0x21   :  { %v4562_v47 = vld [vmem:[#allocation2 + $0xfc] ss:$24 sps:$4 sm:$0xff]   ;;  %v391_v50 = vunpack.c.l.s4 %v4396_v49  ;;  %v4564_v51 = vld [vmem:[#allocation2 + $0x150] ss:$24 sps:$4 sm:$0xff]   ;;  %v4574_v54 = vld [vmem:[#allocation2 + $0x12c] ss:$24 sps:$4 sm:$0xff]  }
  0x22   :  { %240 = vmatpush1.bf16.msra.mxu0 %v146_v25  ;;  %885 = vmatpush1.bf16.msra.mxu1 %v4495_v24  ;;  %v4568_v52 = vld [vmem:[#allocation2 + $0xf8] ss:$24 sps:$4 sm:$0xff]   ;;  %v4572_v53 = vld [vmem:[#allocation2 + $0x184] ss:$24 sps:$4 sm:$0xff]   ;;  %v4581_v58 = vld [vmem:[#allocation2 + $0x128] ss:$24 sps:$4 sm:$0xff]  }
  0x23   :  { %886 = vmatprep.subr.bf16.mxu1 %v4500_v26  ;;  %923 = vmatprep.subr.bf16.mxu0 %v4502_v27  ;;  %v392_v56 = vunpack.c.0.s8 %v391_v50  ;;  %v4579_v57 = vld [vmem:[#allocation2 + $0x180] ss:$24 sps:$4 sm:$0xff]   ;;  %v4585_v59 = vld [vmem:[#allocation2 + $0x1b4] ss:$24 sps:$4 sm:$0xff]   ;;  %v4594_v62 = vld [vmem:[#allocation2 + $0x1b0] ss:$24 sps:$4 sm:$0xff]  }
  0x24   :  { %v4589_v60 = vld [vmem:[#allocation2 + $0x15c] ss:$24 sps:$4 sm:$0xff]   ;;  %v4598_v63 = vld [vmem:[#allocation2 + $0x158] ss:$24 sps:$4 sm:$0xff]   ;;  %v4604_v1 = vld [vmem:[#allocation2 + $0x18c] ss:$24 sps:$4 sm:$0xff]  }
  0x25   :  { %3503 = vmatmul.mubr.msk.bf16.vlgmr.msra.gmra.mrb[4].mxu0 %vm128_vm1, %v41_v17  ;;  %v4592_v61 = vsub.s32 %v392_v56, %v4577_v55  ;;  %6620 = vst [vmem:[#allocation10_spill] sm:$0xff] %v4598_v63  ;;  %v4602_v0 = vld [vmem:[#allocation2 + $0x1e4] ss:$24 sps:$4 sm:$0xff]   ;;  %6621 = vst [vmem:[#allocation11_spill] sm:$0xff] %v4604_v1  ;;  %v4609_v2 = vld [vmem:[%s6329_s5] sm:$0xf] }
  0x26   :  { %887 = vmatpush1.bf16.msra.mxu1 %v4504_v28  ;;  %924 = vmatpush1.bf16.msra.mxu0 %v4506_v29  ;;  %6622 = vst [vmem:[#allocation12_spill] sm:$0xff] %v4609_v2  ;;  %v4613_v4 = vld [vmem:[#allocation2 + $0x1e0] ss:$24 sps:$4 sm:$0xff]   ;;  %v4619_v6 = vld [vmem:[#allocation2 + $0x214] ss:$24 sps:$4 sm:$0xff]   ;;  %vm1128_vm4 = vcmask 1045509  }
  0x27   :  { %888 = vmatprep.subr.bf16.mxu1 %v4509_v30  ;;  %925 = vmatprep.subr.bf16.mxu0 %v4513_v31  ;;  %6619 = vst [vmem:[#allocation9_spill] sm:$0xff] %v4592_v61  ;;  %v396_v3 = vrot.slane %v4609_v2, %v4592_v61  ;;  %v4617_v5 = vld [vmem:[#allocation2 + $0x188] ss:$24 sps:$4 sm:$0xff]   ;;  %v4623_v8 = vld [vmem:[#allocation2 + $0x1bc] ss:$24 sps:$4 sm:$0xff]   ;;  %vm1130_vm5 = vcmask 1047559  }
  0x28   :  { %6623 = vst [vmem:[#allocation13_spill] sm:$0xff] %v4617_v5  ;;  %6624 = vst [vmem:[#allocation14_spill] sm:$0xff] %v4623_v8  ;;  %v4627_v10 = vld [vmem:[#allocation2 + $0x210] ss:$24 sps:$4 sm:$0xff]   ;;  %v4633_v12 = vld [vmem:[#allocation2 + $0x244] ss:$24 sps:$4 sm:$0xff]  }
  0x29   :  { %v397_v7 = vcombine.high %v396_v3, %v396_v3  ;;  %v4629_v11 = vld [vmem:[#allocation2 + $0x1b8] ss:$24 sps:$4 sm:$0xff]   ;;  %v4635_v13 = vld [vmem:[#allocation2 + $0x1ec] ss:$24 sps:$4 sm:$0xff]   ;;  %v4641_v15 = vld [vmem:[#allocation2 + $0x1e8] ss:$24 sps:$4 sm:$0xff]  }
  0x2a   :  { %889 = vmatpush1.bf16.msra.mxu1 %v4516_v32  ;;  %926 = vmatpush1.bf16.msra.mxu0 %v4520_v33  ;;  %6625 = vst [vmem:[#allocation15_spill] sm:$0xff] %v4629_v11  ;;  %6626 = vst [vmem:[#allocation16_spill] sm:$0xff] %v4635_v13  ;;  %v4639_v14 = vld [vmem:[#allocation2 + $0x240] ss:$24 sps:$4 sm:$0xff]   ;;  %v4645_v17 = vld [vmem:[#allocation2 + $0x274] ss:$24 sps:$4 sm:$0xff]  }
  0x2b   :  { %890 = vmatprep.subr.bf16.mxu1 %v4524_v34  ;;  %927 = vmatprep.subr.bf16.mxu0 %v4526_v35  ;;  %v401_v9 = vpack.c.bf16 %v397_v7, %v397_v7  ;;  %6627 = vst [vmem:[#allocation17_spill] sm:$0xff] %v4641_v15  ;;  %v4647_v18 = vld [vmem:[#allocation2 + $0x21c] ss:$24 sps:$4 sm:$0xff]   ;;  %v4651_v19 = vld [vmem:[#allocation2 + $0x270] ss:$24 sps:$4 sm:$0xff]  }
  0x2c   :  { %6628 = vst [vmem:[#allocation18_spill] sm:$0xff] %v4647_v18  ;;  %6629 = vst [vmem:[#allocation19_spill] sm:$0xff] %v4651_v19  ;;  %v4653_v21 = vld [vmem:[#allocation2 + $0x218] ss:$24 sps:$4 sm:$0xff]   ;;  %v4657_v23 = vld [vmem:[#allocation2 + $0x2a4] ss:$24 sps:$4 sm:$0xff]  }
  0x2d   :  { %914 = vmatprep.mubr.bf16.mxu1 %v401_v9  ;;  %955 = vmatprep.mubr.bf16.mxu0 %v401_v9  ;;  %6630 = vst [vmem:[#allocation20_spill] sm:$0xff] %v4653_v21  ;;  %6631 = vst [vmem:[#allocation21_spill] sm:$0xff] %v4657_v23  ;;  %v4659_v25 = vld [vmem:[#allocation2 + $0x24c] ss:$24 sps:$4 sm:$0xff]   ;;  %v4663_v49 = vld [vmem:[#allocation2 + $0x2a0] ss:$24 sps:$4 sm:$0xff]  }
  0x2e   :  { %891 = vmatpush1.bf16.msra.mxu1 %v4528_v36  ;;  %928 = vmatpush1.bf16.msra.mxu0 %v4530_v37  ;;  %6632 = vst [vmem:[#allocation22_spill] sm:$0xff] %v4659_v25  ;;  %6633 = vst [vmem:[#allocation23_spill] sm:$0xff] %v4663_v49  ;;  %v4665_v50 = vld [vmem:[#allocation2 + $0x248] ss:$24 sps:$4 sm:$0xff]   ;;  %v4669_v56 = vld [vmem:[#allocation2 + $0x2d4] ss:$24 sps:$4 sm:$0xff]  }
  0x2f   :  { %892 = vmatprep.subr.bf16.mxu1 %v4534_v38  ;;  %929 = vmatprep.subr.bf16.mxu0 %v4538_v39  ;;  %6634 = vst [vmem:[#allocation24_spill] sm:$0xff] %v4665_v50  ;;  %6635 = vst [vmem:[#allocation25_spill] sm:$0xff] %v4669_v56  ;;  %v4671_v7 = vld [vmem:[#allocation2 + $0x27c] ss:$24 sps:$4 sm:$0xff]   ;;  %v4675_v48 = vld [vmem:[#allocation2 + $0x2d0] ss:$24 sps:$4 sm:$0xff]  }
  0x30   :  { %6636 = vst [vmem:[#allocation26_spill] sm:$0xff] %v4671_v7  ;;  %6637 = vst [vmem:[#allocation27_spill] sm:$0xff] %v4675_v48  ;;  %v4677_v2 = vld [vmem:[#allocation2 + $0x278] ss:$24 sps:$4 sm:$0xff]   ;;  %v4681_v61 = vld [vmem:[#allocation2 + $0x2ac] ss:$24 sps:$4 sm:$0xff]  }
  0x31   :  { %6638 = vst [vmem:[#allocation28_spill] sm:$0xff] %v4677_v2  ;;  %6639 = vst [vmem:[#allocation29_spill] sm:$0xff] %v4681_v61  ;;  %v4683_v55 = vld [vmem:[#allocation2 + $0x14] ss:$24 sps:$4 sm:$0xff]  }
  0x32   :  { %893 = vmatpush1.bf16.msra.mxu1 %v4540_v40  ;;  %930 = vmatpush1.bf16.msra.mxu0 %v4544_v41  ;;  %6640 = vst [vmem:[#allocation30_spill] sm:$0xff] %v4683_v55 }
  0x33   :  { %894 = vmatprep.subr.bf16.mxu1 %v4548_v42  ;;  %931 = vmatprep.subr.bf16.mxu0 %v4550_v43 }
  0x36   :  { %895 = vmatpush1.bf16.msra.mxu1 %v4552_v44  ;;  %932 = vmatpush1.bf16.msra.mxu0 %v4554_v45 }
  0x37   :  { %896 = vmatprep.subr.bf16.mxu1 %v4558_v46  ;;  %933 = vmatprep.subr.bf16.mxu0 %v4562_v47 }
  0x3a   :  { %897 = vmatpush1.bf16.msra.mxu1 %v4564_v51  ;;  %934 = vmatpush1.bf16.msra.mxu0 %v4568_v52 }
  0x3b   :  { %898 = vmatprep.subr.bf16.mxu1 %v4572_v53  ;;  %935 = vmatprep.subr.bf16.mxu0 %v4574_v54 }
  0x3e   :  { %899 = vmatpush1.bf16.msra.mxu1 %v4579_v57  ;;  %936 = vmatpush1.bf16.msra.mxu0 %v4581_v58 }
  0x3f   :  { %900 = vmatprep.subr.bf16.mxu1 %v4585_v59  ;;  %937 = vmatprep.subr.bf16.mxu0 %v4589_v60 }
  0x42   :  { %901 = vmatpush1.bf16.msra.mxu1 %v4594_v62  ;;  %938 = vmatpush1.bf16.msra.mxu0 %v4598_v63 }
  0x43   :  { %902 = vmatprep.subr.bf16.mxu1 %v4602_v0  ;;  %939 = vmatprep.subr.bf16.mxu0 %v4604_v1 }
  0x46   :  { %903 = vmatpush1.bf16.msra.mxu1 %v4613_v4  ;;  %940 = vmatpush1.bf16.msra.mxu0 %v4617_v5 }
  0x47   :  { %904 = vmatprep.subr.bf16.mxu1 %v4619_v6  ;;  %941 = vmatprep.subr.bf16.mxu0 %v4623_v8 }
  0x4a   :  { %905 = vmatpush1.bf16.msra.mxu1 %v4627_v10  ;;  %942 = vmatpush1.bf16.msra.mxu0 %v4629_v11 }
  0x4b   :  { %906 = vmatprep.subr.bf16.mxu1 %v4633_v12  ;;  %943 = vmatprep.subr.bf16.mxu0 %v4635_v13 }
  0x4e   :  { %907 = vmatpush1.bf16.msra.mxu1 %v4639_v14  ;;  %944 = vmatpush1.bf16.msra.mxu0 %v4641_v15  ;;  %v4712_v15 = vld [vmem:[#allocation2 + $0x70] ss:$24 sps:$4 sm:$0xff]  }
  0x4f   :  { %908 = vmatprep.subr.bf16.mxu1 %v4645_v17  ;;  %945 = vmatprep.subr.bf16.mxu0 %v4647_v18  ;;  %v4695_v18 = vld [vmem:[#allocation2 + $0x2dc] ss:$24 sps:$4 sm:$0xff]  }
  0x50   :  { %6643 = vst [vmem:[#allocation33_spill] sm:$0xff] %v4695_v18 }
  0x52   :  { %909 = vmatpush1.bf16.msra.mxu1 %v4651_v19  ;;  %946 = vmatpush1.bf16.msra.mxu0 %v4653_v21  ;;  %v4689_v21 = vld [vmem:[#allocation2 + $0x2a8] ss:$24 sps:$4 sm:$0xff]  }
  0x53   :  { %910 = vmatprep.subr.bf16.mxu1 %v4657_v23  ;;  %947 = vmatprep.subr.bf16.mxu0 %v4659_v25  ;;  %v4685_v25 = vpack.c.bf16 %v396_v3, %v396_v3  ;;  %6641 = vst [vmem:[#allocation31_spill] sm:$0xff] %v4689_v21  ;;  %v4702_v3 = vld [vmem:[#allocation2 + $0x2d8] ss:$24 sps:$4 sm:$0xff]  }
  0x54   :  { %6645 = vst [vmem:[#allocation35_spill] sm:$0xff] %v4702_v3 }
  0x56   :  { %911 = vmatpush1.bf16.msra.mxu1 %v4663_v49  ;;  %948 = vmatpush1.bf16.msra.mxu0 %v4665_v50  ;;  %v4691_v50 = vld [vmem:[#allocation2 + $0x10] ss:$24 sps:$4 sm:$0xff]  }
  0x57   :  { %912 = vmatprep.subr.bf16.mxu1 %v4669_v56  ;;  %949 = vmatprep.subr.bf16.mxu0 %v4671_v7  ;;  %6642 = vst [vmem:[#allocation32_spill] sm:$0xff] %v4691_v50  ;;  %v4697_v7 = vld [vmem:[#allocation2 + $0x44] ss:$24 sps:$4 sm:$0xff]  }
  0x58   :  { %6644 = vst [vmem:[#allocation34_spill] sm:$0xff] %v4697_v7 }
  0x5a   :  { %913 = vmatpush1.bf16.msra.mxu1 %v4675_v48  ;;  %950 = vmatpush1.bf16.msra.mxu0 %v4677_v2  ;;  %v4704_v2 = vld [vmem:[#allocation2 + $0x40] ss:$24 sps:$4 sm:$0xff]  }
  0x5b   :  { %951 = vmatprep.subr.bf16.mxu0 %v4681_v61  ;;  %964 = vmatprep.subr.bf16.mxu1 %v4683_v55  ;;  %6646 = vst [vmem:[#allocation36_spill] sm:$0xff] %v4704_v2  ;;  %v4708_v61 = vld [vmem:[#allocation2 + $0x74] ss:$24 sps:$4 sm:$0xff]  }
  0x5c   :  { %6647 = vst [vmem:[#allocation37_spill] sm:$0xff] %v4708_v61 }
  0x5d   :  { %915 = vmatmul.mubr.bf16.vlgmr.msra.gmra.mrb[4].mxu1 %v4685_v25 }
  0x5e   :  { %952 = vmatpush1.bf16.msra.mxu0 %v4689_v21  ;;  %965 = vmatpush1.bf16.msra.mxu1 %v4691_v50  ;;  %v4715_v50 = vld [vmem:[#allocation2 + $0xa4] ss:$24 sps:$4 sm:$0xff]  }
  0x5f   :  { %953 = vmatprep.subr.bf16.mxu0 %v4695_v18  ;;  %966 = vmatprep.subr.bf16.mxu1 %v4697_v7  ;;  %v4720_v7 = vld [vmem:[#allocation2 + $0xa0] ss:$24 sps:$4 sm:$0xff]  }
  0x60   :  { %996 = vmatprep.mubr.bf16.mxu1 %v401_v9  ;;  %v4724_v9 = vld [vmem:[#allocation2 + $0xd4] ss:$24 sps:$4 sm:$0xff]  }
  0x62   :  { %954 = vmatpush1.bf16.msra.mxu0 %v4702_v3  ;;  %967 = vmatpush1.bf16.msra.mxu1 %v4704_v2  ;;  %v4732_v2 = vld [vmem:[#allocation2 + $0x104] ss:$24 sps:$4 sm:$0xff]  }
  0x63   :  { %968 = vmatprep.subr.bf16.mxu1 %v4708_v61  ;;  %1222 = vmatprep.subr.bf16.mxu0 %v4479_v16  ;;  %v4728_v61 = vld [vmem:[#allocation2 + $0xd0] ss:$24 sps:$4 sm:$0xff]   ;;  %6648 = vst [vmem:[#allocation38_spill] sm:$0xff] %v4732_v2 }
  0x65   :  { %956 = vmatmul.mubr.bf16.vlgmr.msra.gmra.mrb[8].mxu0 %v4685_v25 }
  0x66   :  { %969 = vmatpush1.bf16.msra.mxu1 %v4712_v15  ;;  %1223 = vmatpush1.bf16.msra.mxu0 %v4487_v20  ;;  %v4736_v20 = vld [vmem:[#allocation2 + $0x100] ss:$24 sps:$4 sm:$0xff]  }
  0x67   :  { %970 = vmatprep.subr.bf16.mxu1 %v4715_v50  ;;  %1224 = vmatprep.subr.bf16.mxu0 %v4490_v22  ;;  %v4740_v22 = vld [vmem:[#allocation2 + $0x134] ss:$24 sps:$4 sm:$0xff]  }
  0x6a   :  { %971 = vmatpush1.bf16.msra.mxu1 %v4720_v7  ;;  %1225 = vmatpush1.bf16.msra.mxu0 %v4495_v24  ;;  %v4744_v24 = vld [vmem:[#allocation2 + $0x130] ss:$24 sps:$4 sm:$0xff]  }
  0x6b   :  { %972 = vmatprep.subr.bf16.mxu1 %v4724_v9  ;;  %1226 = vmatprep.subr.bf16.mxu0 %v4500_v26  ;;  %v4748_v26 = vld [vmem:[#allocation2 + $0x164] ss:$24 sps:$4 sm:$0xff]  }
  0x6e   :  { %973 = vmatpush1.bf16.msra.mxu1 %v4728_v61  ;;  %1227 = vmatpush1.bf16.msra.mxu0 %v4504_v28  ;;  %v4752_v28 = vld [vmem:[#allocation2 + $0x160] ss:$24 sps:$4 sm:$0xff]  }
  0x6f   :  { %974 = vmatprep.subr.bf16.mxu1 %v4732_v2  ;;  %1228 = vmatprep.subr.bf16.mxu0 %v4509_v30  ;;  %v4755_v2 = vld [vmem:[#allocation2 + $0x194] ss:$24 sps:$4 sm:$0xff]   ;;  %v4760_v30 = vld [vmem:[#allocation2 + $0x190] ss:$24 sps:$4 sm:$0xff]  }
  0x70   :  { %6649 = vst [vmem:[#allocation39_spill] sm:$0xff] %v4760_v30 }
  0x72   :  { %975 = vmatpush1.bf16.msra.mxu1 %v4736_v20  ;;  %1229 = vmatpush1.bf16.msra.mxu0 %v4516_v32  ;;  %v4763_v32 = vld [vmem:[#allocation2 + $0x1c4] ss:$24 sps:$4 sm:$0xff]  }
  0x73   :  { %976 = vmatprep.subr.bf16.mxu1 %v4740_v22  ;;  %1230 = vmatprep.subr.bf16.mxu0 %v4524_v34  ;;  %6650 = vst [vmem:[#allocation40_spill] sm:$0xff] %v4763_v32  ;;  %v4768_v34 = vld [vmem:[#allocation2 + $0x1c0] ss:$24 sps:$4 sm:$0xff]  }
  0x74   :  { %6651 = vst [vmem:[#allocation41_spill] sm:$0xff] %v4768_v34 }
  0x76   :  { %977 = vmatpush1.bf16.msra.mxu1 %v4744_v24  ;;  %1231 = vmatpush1.bf16.msra.mxu0 %v4528_v36  ;;  %v4771_v36 = vld [vmem:[#allocation2 + $0x1f4] ss:$24 sps:$4 sm:$0xff]  }
  0x77   :  { %978 = vmatprep.subr.bf16.mxu1 %v4748_v26  ;;  %1232 = vmatprep.subr.bf16.mxu0 %v4534_v38  ;;  %6652 = vst [vmem:[#allocation42_spill] sm:$0xff] %v4771_v36  ;;  %v4776_v38 = vld [vmem:[#allocation2 + $0x1f0] ss:$24 sps:$4 sm:$0xff]  }
  0x78   :  { %6653 = vst [vmem:[#allocation43_spill] sm:$0xff] %v4776_v38 }
  0x7a   :  { %979 = vmatpush1.bf16.msra.mxu1 %v4752_v28  ;;  %1233 = vmatpush1.bf16.msra.mxu0 %v4540_v40  ;;  %v4779_v40 = vld [vmem:[#allocation2 + $0x224] ss:$24 sps:$4 sm:$0xff]  }
  0x7b   :  { %980 = vmatprep.subr.bf16.mxu1 %v4755_v2  ;;  %1234 = vmatprep.subr.bf16.mxu0 %v4548_v42  ;;  %6654 = vst [vmem:[#allocation44_spill] sm:$0xff] %v4779_v40 }
  0x7e   :  { %981 = vmatpush1.bf16.msra.mxu1 %v4760_v30  ;;  %1235 = vmatpush1.bf16.msra.mxu0 %v4552_v44  ;;  %v4787_v30 = vld [vmem:[#allocation2 + $0x254] ss:$24 sps:$4 sm:$0xff]  }
  0x7f   :  { %982 = vmatprep.subr.bf16.mxu1 %v4763_v32  ;;  %1236 = vmatprep.subr.bf16.mxu0 %v4558_v46  ;;  %v4784_v32 = vld [vmem:[#allocation2 + $0x220] ss:$24 sps:$4 sm:$0xff]   ;;  %6656 = vst [vmem:[#allocation46_spill] sm:$0xff] %v4787_v30 }
  0x80   :  { %6655 = vst [vmem:[#allocation45_spill] sm:$0xff] %v4784_v32 }
  0x82   :  { %983 = vmatpush1.bf16.msra.mxu1 %v4768_v34  ;;  %1237 = vmatpush1.bf16.msra.mxu0 %v4564_v51  ;;  %v4795_v34 = vld [vmem:[#allocation2 + $0x284] ss:$24 sps:$4 sm:$0xff]  }
  0x83   :  { %984 = vmatprep.subr.bf16.mxu1 %v4771_v36  ;;  %1238 = vmatprep.subr.bf16.mxu0 %v4572_v53  ;;  %v4792_v36 = vld [vmem:[#allocation2 + $0x250] ss:$24 sps:$4 sm:$0xff]   ;;  %6657 = vst [vmem:[#allocation47_spill] sm:$0xff] %v4795_v34 }
  0x86   :  { %985 = vmatpush1.bf16.msra.mxu1 %v4776_v38  ;;  %1239 = vmatpush1.bf16.msra.mxu0 %v4579_v57  ;;  %v4803_v38 = vld [vmem:[#allocation2 + $0x2b4] ss:$24 sps:$4 sm:$0xff]  }
  0x87   :  { %986 = vmatprep.subr.bf16.mxu1 %v4779_v40  ;;  %1240 = vmatprep.subr.bf16.mxu0 %v4585_v59  ;;  %v4800_v40 = vld [vmem:[#allocation2 + $0x280] ss:$24 sps:$4 sm:$0xff]  }
  0x8a   :  { %987 = vmatpush1.bf16.msra.mxu1 %v4784_v32  ;;  %1241 = vmatpush1.bf16.msra.mxu0 %v4594_v62  ;;  %v4811_v32 = vld [vmem:[#allocation2 + $0x2e4] ss:$24 sps:$4 sm:$0xff]  }
  0x8b   :  { %988 = vmatprep.subr.bf16.mxu1 %v4787_v30  ;;  %1242 = vmatprep.subr.bf16.mxu0 %v4602_v0  ;;  %v4808_v30 = vld [vmem:[#allocation2 + $0x2b0] ss:$24 sps:$4 sm:$0xff]   ;;  %6659 = vst [vmem:[#allocation49_spill] sm:$0xff] %v4811_v32 }
  0x8c   :  { %6658 = vst [vmem:[#allocation48_spill] sm:$0xff] %v4808_v30 }
  0x8e   :  { %989 = vmatpush1.bf16.msra.mxu1 %v4792_v36  ;;  %1243 = vmatpush1.bf16.msra.mxu0 %v4613_v4 }
  0x8f   :  { %990 = vmatprep.subr.bf16.mxu1 %v4795_v34  ;;  %1244 = vmatprep.subr.bf16.mxu0 %v4619_v6  ;;  %v4816_v34 = vld [vmem:[#allocation2 + $0x2e0] ss:$24 sps:$4 sm:$0xff]  }
  0x90   :  { %6660 = vst [vmem:[#allocation50_spill] sm:$0xff] %v4816_v34 }
  0x92   :  { %991 = vmatpush1.bf16.msra.mxu1 %v4800_v40  ;;  %1245 = vmatpush1.bf16.msra.mxu0 %v4627_v10 }
  0x93   :  { %992 = vmatprep.subr.bf16.mxu1 %v4803_v38  ;;  %1246 = vmatprep.subr.bf16.mxu0 %v4633_v12 }
  0x96   :  { %993 = vmatpush1.bf16.msra.mxu1 %v4808_v30  ;;  %1247 = vmatpush1.bf16.msra.mxu0 %v4639_v14 }
  0x97   :  { %994 = vmatprep.subr.bf16.mxu1 %v4811_v32  ;;  %1248 = vmatprep.subr.bf16.mxu0 %v4645_v17 }
  0x9a   :  { %995 = vmatpush1.bf16.msra.mxu1 %v4816_v34  ;;  %1249 = vmatpush1.bf16.msra.mxu0 %v4651_v19 }
  0x9b   :  { %1263 = vmatprep.subr.bf16.mxu1 %v4502_v27  ;;  %1250 = vmatprep.subr.bf16.mxu0 %v4657_v23  ;;  %v6661_v27 = vld [vmem:[#allocation17_spill] sm:$0xff] }
  0x9d   :  { %997 = vmatmul.mubr.bf16.vlgmr.msra.gmra.mrb[8].mxu1 %v4685_v25 }
  0x9e   :  { %1264 = vmatpush1.bf16.msra.mxu1 %v4506_v29  ;;  %1251 = vmatpush1.bf16.msra.mxu0 %v4663_v49  ;;  %v6662_v29 = vld [vmem:[#allocation18_spill] sm:$0xff] }
  0x9f   :  { %1265 = vmatprep.subr.bf16.mxu1 %v4513_v31  ;;  %1252 = vmatprep.subr.bf16.mxu0 %v4669_v56  ;;  %v6663_v31 = vld [vmem:[#allocation20_spill] sm:$0xff] }
  0xa2   :  { %1266 = vmatpush1.bf16.msra.mxu1 %v4520_v33  ;;  %1253 = vmatpush1.bf16.msra.mxu0 %v4675_v48  ;;  %v6664_v33 = vld [vmem:[#allocation22_spill] sm:$0xff] }
  0xa3   :  { %1267 = vmatprep.subr.bf16.mxu1 %v4526_v35  ;;  %1304 = vmatprep.subr.bf16.mxu0 %v4683_v55  ;;  %v6665_v35 = vld [vmem:[#allocation24_spill] sm:$0xff] }
  0xa6   :  { %1268 = vmatpush1.bf16.msra.mxu1 %v4530_v37  ;;  %v6666_v37 = vld [vmem:[#allocation26_spill] sm:$0xff] }
  0xa7   :  { %1269 = vmatprep.subr.bf16.mxu1 %v4538_v39  ;;  %v6667_v39 = vld [vmem:[#allocation28_spill] sm:$0xff] }
  0xaa   :  { %1270 = vmatpush1.bf16.msra.mxu1 %v4544_v41  ;;  %v6668_v41 = vld [vmem:[#allocation29_spill] sm:$0xff] }
  0xab   :  { %1271 = vmatprep.subr.bf16.mxu1 %v4550_v43 }
  0xae   :  { %1272 = vmatpush1.bf16.msra.mxu1 %v4554_v45 }
  0xaf   :  { %1273 = vmatprep.subr.bf16.mxu1 %v4562_v47 }
  0xb2   :  { %1274 = vmatpush1.bf16.msra.mxu1 %v4568_v52 }
  0xb3   :  { %1275 = vmatprep.subr.bf16.mxu1 %v4574_v54 }
  0xb6   :  { %1276 = vmatpush1.bf16.msra.mxu1 %v4581_v58 }
  0xb7   :  { %1277 = vmatprep.subr.bf16.mxu1 %v4589_v60 }
  0xba   :  { %1278 = vmatpush1.bf16.msra.mxu1 %v4598_v63 }
  0xbb   :  { %1279 = vmatprep.subr.bf16.mxu1 %v4604_v1 }
  0xbe   :  { %1280 = vmatpush1.bf16.msra.mxu1 %v4617_v5  ;;  %v51_v5 = vld [vmem:[%s6327_s3] sm:$0x3f] }
  0xbf   :  { %1281 = vmatprep.subr.bf16.mxu1 %v4623_v8 }
  0xc2   :  { %1282 = vmatpush1.bf16.msra.mxu1 %v4629_v11 }
  0xc3   :  { %1283 = vmatprep.subr.bf16.mxu1 %v4635_v13  ;;  %v6669_v13 = vld [vmem:[#allocation8_spill] sm:$0xff] }
  0xc4   :  { %v55_v11 = vsub.s32 0, %v6669_v13  ;;  %v59_v8 = vsub.s32 1, %v6669_v13 }
  0xc6   :  { %1284 = vmatpush1.bf16.msra.mxu1 %v6661_v27  ;;  %v56_v1 = vrot.slane %v51_v5, %v55_v11  ;;  %v60_v63 = vrot.slane %v51_v5, %v59_v8 }
  0xc7   :  { %1285 = vmatprep.subr.bf16.mxu1 %v6662_v29 }
  0xca   :  { %1286 = vmatpush1.bf16.msra.mxu1 %v6663_v31 }
  0xcb   :  { %1287 = vmatprep.subr.bf16.mxu1 %v6664_v33 }
  0xce   :  { %1288 = vmatpush1.bf16.msra.mxu1 %v6665_v35 }
  0xcf   :  { %1289 = vmatprep.subr.bf16.mxu1 %v6666_v37 }
  0xd2   :  { %1290 = vmatpush1.bf16.msra.mxu1 %v6667_v39 }
  0xd3   :  { %1291 = vmatprep.subr.bf16.mxu1 %v6668_v41 }
  0xd6   :  { %1292 = vmatpush1.bf16.msra.mxu1 %v4689_v21 }
  0xd7   :  { %1293 = vmatprep.subr.bf16.mxu1 %v4695_v18 }
  0xda   :  { %1294 = vmatpush1.bf16.msra.mxu1 %v4702_v3 }
  0xdb   :  { %1539 = vmatprep.subr.bf16.mxu1 %v4479_v16 }
  0xf0   :  { %v228_v43 = vpop.f32.mrb[0].mxu1  ;;  %v185_v45 = vpop.f32.mrb[0].mxu0 }
  0xf1   :  { %v230_v47 = vpop.f32.mrb[1].mxu1  ;;  %v187_v52 = vpop.f32.mrb[1].mxu0  ;;  %v4879_v55 = vadd.f32 %v185_v45, %v56_v1 }
  0xf2   :  { %v232_v54 = vpop.f32.mrb[2].mxu1  ;;  %v189_v58 = vpop.f32.mrb[2].mxu0  ;;  %v4881_v48 = vadd.f32 %v187_v52, %v60_v63  ;;  %v63_v52 = vsub.s32 2, %v6669_v13 }
  0xf3   :  { %v4862_v60 = vpop.f32.mrb[3].mxu1  ;;  %v191_v25 = vpop.f32.mrb[3].mxu0  ;;  %6670 = vst [vmem:[#allocation8_spill] sm:$0xff] %v4879_v55 }
  0xf4   :  { %6671 = vst [vmem:[#allocation51_spill] sm:$0xff] %v4881_v48  ;;  %v4885_v34 = vadd.f32 %v191_v25, %v60_v63 }
  0xf6   :  { %6673 = vst [vmem:[#allocation53_spill] sm:$0xff] %v4885_v34 }
  0xf8   :  { %v4864_v39 = vpop.f32.mrb[4].mxu0 }
  0xf9   :  { %v4866_v41 = vpop.f32.mrb[5].mxu0 }
  0xfa   :  { %v4868_v21 = vpop.f32.mrb[6].mxu0 }
  0xfb   :  { %v4870_v18 = vpop.f32.mrb[7].mxu0 }
 0x130   :  { %v916_v3 = vpop.f32.mrb[4].mxu1 }
 0x131   :  { %v918_v37 = vpop.f32.mrb[5].mxu1 }
 0x132   :  { %v920_v16 = vpop.f32.mrb[6].mxu1  ;;  %v1014_v56 = vadd.f32 %v918_v37, %v4881_v48  ;;  %v64_v48 = vrot.slane %v51_v5, %v63_v52 }
 0x133   :  { %v921_v35 = vpop.f32.mrb[7].mxu1  ;;  %v1007_v16 = vrot.slane %v916_v3, 1 }
 0x134   :  { %v4883_v35 = vadd.f32 %v189_v58, %v56_v1  ;;  %v3601_v23 = vmul.f32 -1.442695, %v1014_v56 }
 0x136   :  { %6672 = vst [vmem:[#allocation52_spill] sm:$0xff] %v4883_v35  ;;  %v1015_v49 = vadd.f32 %v1007_v16, %v4883_v35 }
 0x138   :  { %v957_v33 = vpop.f32.mrb[8].mxu0  ;;  %v3602_v45 = vmul.f32 -1.442695, %v1015_v49  ;;  %v4893_v49 = vadd.f32 %v228_v43, %v64_v48 }
 0x139   :  { %v4872_v31 = vpop.f32.mrb[9].mxu0 }
 0x13a   :  { %v961_v29 = vpop.f32.mrb[10].mxu0  ;;  %6674 = vst [vmem:[#allocation54_spill] sm:$0xff] %v4893_v49 }
 0x13b   :  { %v962_v27 = vpop.f32.mrb[11].mxu0  ;;  %v1013_v29 = vadd.f32 %v916_v3, %v4879_v55  ;;  %v67_v3 = vsub.s32 3, %v6669_v13 }
 0x13c   :  { %v1008_v27 = vrot.slane %v918_v37, 1 }
 0x13d   :  { %v3600_v30 = vmul.f32 -1.442695, %v1013_v29  ;;  %v68_v29 = vrot.slane %v51_v5, %v67_v3 }
 0x13e   :  { %v1016_v32 = vadd.f32 %v1008_v27, %v4885_v34 }
 0x13f   :  { %3832 = vpow2.f32 %v3600_v30  ;;  %v4898_v30 = vadd.f32 %v230_v47, %v68_v29 }
 0x140   :  { %v3603_v19 = vmul.f32 -1.442695, %v1016_v32  ;;  %3834 = vpow2.f32 %v3601_v23  ;;  %v1043_v23 = vrot.slane %v957_v33, 1  ;;  %v71_v32 = vsub.s32 4, %v6669_v13 }
 0x141   :  { %3836 = vpow2.f32 %v3602_v45  ;;  %6675 = vst [vmem:[#allocation55_spill] sm:$0xff] %v4898_v30  ;;  %v4901_v45 = vadd.f32 %v232_v54, %v64_v48  ;;  %v1050_v43 = vadd.f32 %v4872_v31, %v4898_v30  ;;  %v4914_v54 = vadd.f32 %v4862_v60, %v68_v29 }
 0x142   :  { %3838 = vpow2.f32 %v3603_v19  ;;  %v376_v19 = vld [vmem:[%s6328_s4] sm:$0x3]  ;;  %v72_v47 = vrot.slane %v51_v5, %v71_v32  ;;  %s4398_s4 = smov [#allocation5]  }
 0x143   :  { %6676 = vst [vmem:[#allocation56_spill] sm:$0xff] %v4901_v45  ;;  %v4905_v52 = vrot.slane %v376_v19, %v55_v11  ;;  %v1051_v3 = vadd.f32 %v1043_v23, %v4901_v45  ;;  %6679 = vst [vmem:[#allocation59_spill] sm:$0xff] %v4914_v54  ;;  %s3474_s10 = sshll.u32 %s4398_s4, 4  ;;  %s3475_s10 = int_to_ptr.vmem [resolvable:$true] %s3474_s10 }
 0x144   :  { %v4919_v23 = vadd.f32 %v4864_v39, %v72_v47  ;;  %s4366_s11 = scalar_lea.vmem %s3475_s10, 512  ;;  %p4371_p9 = scmp.lt.s32.totalorder %s3475_s10, %s3475_s10 }
 0x145   :  { %6677 = vst [vmem:[#allocation57_spill] sm:$0xff] %v4905_v52  ;;  %p4367_p8 = scmp.ne.s32.totalorder %s3475_s10, %s4366_s11  ;;  %p4372_p10 = scmp.lt.s32.totalorder %s4366_s11, %s4366_s11 }
 0x146   :  { %6680 = vst [vmem:[#allocation60_spill] sm:$0xff] %v4919_v23 }
 0x147   :  { %p4373_p11 = por %p4372_p10, %p4371_p9 }
 0x149   :  { %v3833_v1 = vpop.eup %3832  ;;  %p4374_p12 = pnand %p4373_p11, %p4367_p8 }
 0x14a   :  { %v3835_v63 = vpop.eup %3834  ;;  %v1029_v25 = vadd.f32 1.0, %v3833_v1  ;;  %v75_v1 = vsub.s32 5, %v6669_v13 }
 0x14b   :  { %v3837_v58 = vpop.eup %3836  ;;  %v1030_v16 = vadd.f32 1.0, %v3835_v63  ;;  %v1049_v63 = vadd.f32 %v957_v33, %v4893_v49  ;;  %v3606_v49 = vmul.f32 -1.442695, %v1051_v3 }
 0x14c   :  { %v3839_v37 = vpop.eup %3838  ;;  %v1031_v27 = vadd.f32 1.0, %v3837_v58  ;;  %3840 = vrcp.f32 %v1029_v25  ;;  %v4909_v58 = vrot.slane %v376_v19, %v59_v8  ;;  %v76_v25 = vrot.slane %v51_v5, %v75_v1 }
 0x14d   :  { %v1032_v56 = vadd.f32 1.0, %v3839_v37  ;;  %3842 = vrcp.f32 %v1030_v16  ;;  %v1044_v37 = vrot.slane %v4872_v31, 1  ;;  %v3604_v16 = vmul.f32 -1.442695, %v1049_v63 }
 0x14e   :  { %3844 = vrcp.f32 %v1031_v27  ;;  %6678 = vst [vmem:[#allocation58_spill] sm:$0xff] %v4909_v58  ;;  %v3605_v27 = vmul.f32 -1.442695, %v1050_v43  ;;  %v4923_v29 = vadd.f32 %v4866_v41, %v76_v25 }
 0x14f   :  { %3846 = vrcp.f32 %v1032_v56  ;;  %v1052_v5 = vadd.f32 %v1044_v37, %v4914_v54  ;;  %v4930_v37 = vadd.f32 %v4870_v18, %v76_v25 }
 0x150   :  { %6681 = vst [vmem:[#allocation61_spill] sm:$0xff] %v4923_v29  ;;  %3848 = vpow2.f32 %v3604_v16 }
 0x151   :  { %3850 = vpow2.f32 %v3605_v27  ;;  %6683 = vst [vmem:[#allocation63_spill] sm:$0xff] %v4930_v37  ;;  %v3607_v41 = vmul.f32 -1.442695, %v1052_v5 }
 0x152   :  { %3852 = vpow2.f32 %v3606_v49 }
 0x156   :  { %v3841_v56 = vpop.eup %3840 }
 0x157   :  { %v3843_v30 = vpop.eup %3842 }
 0x158   :  { %v3845_v60 = vpop.eup %3844 }
 0x159   :  { %v3847_v3 = vpop.eup %3846 }
 0x170   :  { %v998_v48 = vpop.f32.mrb[8].mxu1 }
 0x171   :  { %v1077_v11 = vadd.f32 %v998_v48, %v4905_v52  ;;  %v1000_v33 = vpop.f32.mrb[9].mxu1  ;;  %v4926_v48 = vadd.f32 %v4868_v21, %v72_v47  ;;  %v3849_v21 = vpop.eup %3848 }
 0x172   :  { %v1078_v8 = vadd.f32 %v1000_v33, %v4909_v58  ;;  %v1002_v19 = vpop.f32.mrb[10].mxu1  ;;  %v3851_v47 = vpop.eup %3850 }
 0x173   :  { %v1081_v31 = vrot.slane %v1077_v11, 1  ;;  %v1087_v32 = vmul.f32 %v3841_v56, %v1077_v11  ;;  %v1003_v1 = vpop.f32.mrb[11].mxu1  ;;  %6682 = vst [vmem:[#allocation62_spill] sm:$0xff] %v4926_v48  ;;  %v3853_v27 = vpop.eup %3852  ;;  %v1066_v5 = vadd.f32 1.0, %v3851_v47  ;;  %v6685_v47 = vld [vmem:[#allocation12_spill] sm:$0xff] }
 0x174   :  { %v1082_v63 = vrot.slane %v1078_v8, 1  ;;  %v1088_v43 = vmul.f32 %v3843_v30, %v1078_v8 }
 0x175   :  { %v1089_v33 = vmul.f32 %v3845_v60, %v1081_v31  ;;  %v1091_v39 = vadd.f32 %v1087_v32, %v4919_v23  ;;  %v1065_v31 = vadd.f32 1.0, %v3849_v21  ;;  %v1067_v60 = vadd.f32 1.0, %v3853_v27 }
 0x176   :  { %v1090_v11 = vmul.f32 %v3847_v3, %v1082_v63  ;;  %v1092_v56 = vadd.f32 %v1088_v43, %v4923_v29  ;;  %v6684_v63 = vld [vmem:[#allocation9_spill] sm:$0xff] }
 0x177   :  { %v1093_v16 = vadd.f32 %v1089_v33, %v4926_v48  ;;  %3854 = vtanh.f32 %v1091_v39 }
 0x178   :  { %v1094_v30 = vadd.f32 %v1090_v11, %v4930_v37  ;;  %3856 = vtanh.f32 %v1092_v56 }
 0x179   :  { %3858 = vtanh.f32 %v1093_v16 }
 0x17a   :  { %3860 = vtanh.f32 %v1094_v30  ;;  %v4397_v30 = vmov 1966171168  }
 0x17b   :  { %3862 = vpow2.f32 %v3607_v41  ;;  %v1163_v21 = vunpack.c.l.s4 %v4397_v30 }
 0x17c   :  { %3864 = vrcp.f32 %v1065_v31 }
 0x17d   :  { %3866 = vrcp.f32 %v1066_v5 }
 0x17e   :  { %3868 = vrcp.f32 %v1067_v60 }
 0x181   :  { %v3855_v8 = vpop.eup %3854 }
 0x182   :  { %v3857_v18 = vpop.eup %3856 }
 0x183   :  { %v3859_v25 = vpop.eup %3858  ;;  %v1103_v49 = vcombine.low %v3855_v8, %v3857_v18 }
 0x184   :  { %v3861_v19 = vpop.eup %3860 }
 0x185   :  { %v3863_v32 = vpop.eup %3862  ;;  %v1111_v1 = vcombine.low %v3859_v25, %v3861_v19  ;;  %v1110_v33 = vrot.slane %v1103_v49, %v6684_v63  ;;  %v1164_v49 = vunpack.c.0.s8 %v1163_v21 }
 0x186   :  { %v1068_v3 = vadd.f32 1.0, %v3863_v32  ;;  %v3865_v32 = vpop.eup %3864 }
 0x187   :  { %v1118_v43 = vrot.slane %v1111_v1, %v6684_v63  ;;  %v3867_v5 = vpop.eup %3866 }
 0x188   :  { %3870 = vrcp.f32 %v1068_v3  ;;  %v3869_v29 = vpop.eup %3868 }
 0x189   :  { %v1123_v39 = vrot.slane %v1118_v43, 7 }
 0x18b   :  { %v1125_v11 = vsel %vm1124_vm2, %v1123_v39, %v1110_v33 }
 0x18c   :  { %v1127_v56 = vsel %vm1126_vm3, %v1123_v39, %v1125_v11 }
 0x18d   :  { %v1129_v41 = vsel %vm1128_vm4, %v1123_v39, %v1127_v56 }
 0x18e   :  { %v1131_v16 = vsel %vm1130_vm5, %v1123_v39, %v1129_v41  ;;  %v4943_v39 = vsub.s32 %v1164_v49, %v6669_v13 }
 0x18f   :  { %v1133_v27 = vsub.f32 %v6685_v47, %v1131_v16 }
 0x191   :  { %v1141_v31 = vrot.slane %v1133_v27, %v6684_v63 }
 0x192   :  { %v3871_v11 = vpop.eup %3870 }
 0x193   :  { %v1142_v1 = vcombine.high %v1141_v31, %v1141_v31  ;;  %v1143_v43 = vrot.slane %v1141_v31, 1  ;;  %v1149_v60 = vmul.f32 %v3865_v32, %v1141_v31 }
 0x195   :  { %v1144_v23 = vrot.slane %v1142_v1, 1  ;;  %v1150_v33 = vmul.f32 %v3867_v5, %v1142_v1  ;;  %v1151_v37 = vmul.f32 %v3869_v29, %v1143_v43  ;;  %v4940_v3 = vadd.f32 %v3855_v8, %v1149_v60 }
 0x197   :  { %v1152_v56 = vmul.f32 %v3871_v11, %v1144_v23  ;;  %v4945_v41 = vadd.f32 %v3857_v18, %v1150_v33  ;;  %v4947_v63 = vadd.f32 %v3859_v25, %v1151_v37  ;;  %v1202_v29 = vpack.c.bf16 %v4940_v3, %v4940_v3 }
 0x198   :  { %v6686_v18 = vlaneseq }
 0x199   :  { %v4949_v16 = vadd.f32 %v3861_v19, %v1152_v56  ;;  %v1161_v30 = vcombine.low %v4940_v3, %v4945_v41  ;;  %v1204_v21 = vpack.c.bf16 %v4947_v63, %v4947_v63  ;;  %v1203_v13 = vpack.c.bf16 %v4945_v41, %v4945_v41 }
 0x19a   :  { %vm4965_vm6 = vcmp.lt.s32.totalorder %v6686_v18, 256  ;;  %v1210_v32 = vunpack.c.l.b16 %v1202_v29  ;;  %v4984_v29 = vld [vmem:[#allocation2] ss:$24 sps:$4 sm:$0xff]   ;;  %v4995_v18 = vld [vmem:[#allocation2 + $0x64] ss:$24 sps:$4 sm:$0xff]  }
 0x19b   :  { %v1205_v23 = vpack.c.bf16 %v4949_v16, %v4949_v16  ;;  %v1168_v37 = vrot.slane %v1161_v30, %v4943_v39  ;;  %v1176_v8 = vcombine.low %v4947_v63, %v4949_v16  ;;  %v1212_v19 = vunpack.c.l.b16 %v1204_v21  ;;  %v6689_v30 = vld [vmem:[#allocation32_spill] sm:$0xff]  ;;  %v6690_v21 = vld [vmem:[#allocation34_spill] sm:$0xff] }
 0x19c   :  { %v1211_v49 = vunpack.c.l.b16 %v1203_v13  ;;  %v4987_v13 = vld [vmem:[#allocation2 + $0x34] ss:$24 sps:$4 sm:$0xff]  }
 0x19d   :  { %v1213_v47 = vunpack.c.l.b16 %v1205_v23  ;;  %v1175_v27 = vrot.slane %v1168_v37, %v4943_v39  ;;  %v1183_v31 = vrot.slane %v1176_v8, %v4943_v39  ;;  %v1214_v5 = vrot.slane %v1212_v19, 7  ;;  %v6691_v23 = vld [vmem:[#allocation36_spill] sm:$0xff]  ;;  %v6692_v37 = vld [vmem:[#allocation37_spill] sm:$0xff] }
 0x19e   :  { %v4992_v8 = vld [vmem:[#allocation2 + $0x30] ss:$24 sps:$4 sm:$0xff]   ;;  %v5000_v19 = vld [vmem:[#allocation2 + $0x60] ss:$24 sps:$4 sm:$0xff]  }
 0x19f   :  { %v1216_v1 = vrot.slane %v1213_v47, 7  ;;  %v1190_v43 = vrot.slane %v1183_v31, %v4943_v39  ;;  %1197 = vst.msk [vmem:[#allocation5] ss:$8 sm:$0x3] %vm4965_vm6, %v1175_v27  ;;  %v1215_v60 = vsel %vm1124_vm2, %v1214_v5, %v1210_v32  ;;  %v5003_v47 = vld [vmem:[#allocation2 + $0x94] ss:$24 sps:$4 sm:$0xff]  }
 0x1a0   :  { %v4978_v56 = vpack.c.b16 %v1215_v60, %v1215_v60  ;;  %v5008_v27 = vld [vmem:[#allocation2 + $0x90] ss:$24 sps:$4 sm:$0xff]   ;;  %v5011_v31 = vld [vmem:[#allocation2 + $0xc4] ss:$24 sps:$4 sm:$0xff]   ;;  %v5019_v32 = vld [vmem:[#allocation2 + $0xf4] ss:$24 sps:$4 sm:$0xff]  }
 0x1a1   :  { %v1217_v33 = vsel %vm1124_vm2, %v1216_v1, %v1211_v49  ;;  %1200 = vst.msk [vmem:[#allocation5 + $0x10] ss:$8 sm:$0x3] %vm4965_vm6, %v1190_v43  ;;  %v5092_v5 = vld [vmem:[#allocation2 + $0xcc] ss:$24 sps:$4 sm:$0xff]  }
 0x1a2   :  { %v1219_v11 = vpack.c.b16 %v1217_v33, %v1217_v33  ;;  %v5095_v49 = vld [vmem:[#allocation2 + $0xc8] ss:$24 sps:$4 sm:$0xff]   ;;  %v5098_v1 = vld [vmem:[#allocation2 + $0xfc] ss:$24 sps:$4 sm:$0xff]   ;;  %v5101_v43 = vld [vmem:[#allocation2 + $0xf8] ss:$24 sps:$4 sm:$0xff]  }
 0x1a3   :  { %v5104_v60 = vld [vmem:[#allocation2 + $0x12c] ss:$24 sps:$4 sm:$0xff]   ;;  %v5107_v33 = vld [vmem:[#allocation2 + $0x128] ss:$24 sps:$4 sm:$0xff]  }
 0x1a4   :  { %1254 = vmatprep.mubr.bf16.mxu0 %v1219_v11  ;;  %1295 = vmatprep.mubr.bf16.mxu1 %v1219_v11 }
 0x1a5   :  { %1255 = vmatmul.mubr.bf16.vlgmr.msra.gmra.mrb[12].mxu0 %v4978_v56  ;;  %1296 = vmatmul.mubr.bf16.vlgmr.msra.gmra.mrb[12].mxu1 %v4978_v56 }
 0x1a6   :  { %1305 = vmatpush1.bf16.msra.mxu0 %v6689_v30  ;;  %1336 = vmatprep.mubr.bf16.mxu0 %v1219_v11  ;;  %v5110_v11 = vld [vmem:[#allocation2 + $0x15c] ss:$24 sps:$4 sm:$0xff]  }
 0x1a7   :  { %1306 = vmatprep.subr.bf16.mxu0 %v6690_v21  ;;  %1540 = vmatpush1.bf16.msra.mxu1 %v4984_v29  ;;  %v6728_v30 = vld [vmem:[#allocation11_spill] sm:$0xff]  ;;  %v6729_v21 = vld [vmem:[#allocation13_spill] sm:$0xff] }
 0x1a8   :  { %1541 = vmatprep.subr.bf16.mxu1 %v4987_v13 }
 0x1aa   :  { %1307 = vmatpush1.bf16.msra.mxu0 %v6691_v23  ;;  %v6730_v23 = vld [vmem:[#allocation14_spill] sm:$0xff] }
 0x1ab   :  { %1308 = vmatprep.subr.bf16.mxu0 %v6692_v37  ;;  %1542 = vmatpush1.bf16.msra.mxu1 %v4992_v8  ;;  %v6731_v37 = vld [vmem:[#allocation15_spill] sm:$0xff] }
 0x1ac   :  { %1543 = vmatprep.subr.bf16.mxu1 %v4995_v18 }
 0x1ae   :  { %1309 = vmatpush1.bf16.msra.mxu0 %v4712_v15  ;;  %v6693_v15 = vld [vmem:[#allocation38_spill] sm:$0xff] }
 0x1af   :  { %1310 = vmatprep.subr.bf16.mxu0 %v4715_v50  ;;  %1544 = vmatpush1.bf16.msra.mxu1 %v5000_v19  ;;  %v5016_v50 = vld [vmem:[#allocation2 + $0xc0] ss:$24 sps:$4 sm:$0xff]  }
 0x1b0   :  { %1545 = vmatprep.subr.bf16.mxu1 %v5003_v47 }
 0x1b2   :  { %1311 = vmatpush1.bf16.msra.mxu0 %v4720_v7  ;;  %v5024_v7 = vld [vmem:[#allocation2 + $0xf0] ss:$24 sps:$4 sm:$0xff]  }
 0x1b3   :  { %1312 = vmatprep.subr.bf16.mxu0 %v4724_v9  ;;  %1546 = vmatpush1.bf16.msra.mxu1 %v5008_v27  ;;  %v6695_v9 = vld [vmem:[#allocation40_spill] sm:$0xff] }
 0x1b4   :  { %1547 = vmatprep.subr.bf16.mxu1 %v5011_v31  ;;  %6720 = vst [vmem:[#allocation40_spill] sm:$0xff] %v5092_v5 }
 0x1b6   :  { %1313 = vmatpush1.bf16.msra.mxu0 %v4728_v61  ;;  %v6694_v61 = vld [vmem:[#allocation39_spill] sm:$0xff] }
 0x1b7   :  { %1314 = vmatprep.subr.bf16.mxu0 %v6693_v15  ;;  %1548 = vmatpush1.bf16.msra.mxu1 %v5016_v50  ;;  %v6732_v15 = vld [vmem:[#allocation16_spill] sm:$0xff] }
 0x1b8   :  { %1549 = vmatprep.subr.bf16.mxu1 %v5019_v32 }
 0x1ba   :  { %1315 = vmatpush1.bf16.msra.mxu0 %v4736_v20  ;;  %v6712_v20 = vld [vmem:[#allocation30_spill] sm:$0xff] }
 0x1bb   :  { %1316 = vmatprep.subr.bf16.mxu0 %v4740_v22  ;;  %1550 = vmatpush1.bf16.msra.mxu1 %v5024_v7  ;;  %v5071_v22 = vld [vmem:[#allocation2 + $0x8] ss:$24 sps:$4 sm:$0xff]  }
 0x1bc   :  { %1551 = vmatprep.subr.bf16.mxu1 %v4548_v42  ;;  %v6696_v42 = vld [vmem:[#allocation41_spill] sm:$0xff]  ;;  %6713 = vst [vmem:[#allocation12_spill] sm:$0xff] %v5071_v22 }
 0x1bd   :  { %6721 = vst [vmem:[#allocation41_spill] sm:$0xff] %v5095_v49 }
 0x1be   :  { %1317 = vmatpush1.bf16.msra.mxu0 %v4744_v24  ;;  %v5074_v24 = vld [vmem:[#allocation2 + $0x3c] ss:$24 sps:$4 sm:$0xff]  }
 0x1bf   :  { %1318 = vmatprep.subr.bf16.mxu0 %v4748_v26  ;;  %1552 = vmatpush1.bf16.msra.mxu1 %v4552_v44  ;;  %v6697_v44 = vld [vmem:[#allocation42_spill] sm:$0xff]  ;;  %6714 = vst [vmem:[#allocation32_spill] sm:$0xff] %v5074_v24 }
 0x1c0   :  { %1553 = vmatprep.subr.bf16.mxu1 %v4558_v46  ;;  %v6698_v46 = vld [vmem:[#allocation43_spill] sm:$0xff]  ;;  %6722 = vst [vmem:[#allocation42_spill] sm:$0xff] %v5098_v1 }
 0x1c1   :  { %v5077_v26 = vld [vmem:[#allocation2 + $0x38] ss:$24 sps:$4 sm:$0xff]   ;;  %6723 = vst [vmem:[#allocation43_spill] sm:$0xff] %v5101_v43 }
 0x1c2   :  { %1319 = vmatpush1.bf16.msra.mxu0 %v4752_v28  ;;  %6715 = vst [vmem:[#allocation34_spill] sm:$0xff] %v5077_v26  ;;  %v5080_v28 = vld [vmem:[#allocation2 + $0x6c] ss:$24 sps:$4 sm:$0xff]  }
 0x1c3   :  { %1320 = vmatprep.subr.bf16.mxu0 %v4755_v2  ;;  %1554 = vmatpush1.bf16.msra.mxu1 %v4564_v51  ;;  %v6699_v51 = vld [vmem:[#allocation44_spill] sm:$0xff]  ;;  %6716 = vst [vmem:[#allocation36_spill] sm:$0xff] %v5080_v28 }
 0x1c4   :  { %1555 = vmatprep.subr.bf16.mxu1 %v4572_v53  ;;  %v6700_v53 = vld [vmem:[#allocation45_spill] sm:$0xff]  ;;  %v6705_v2 = vld [vmem:[#allocation48_spill] sm:$0xff]  ;;  %6724 = vst [vmem:[#allocation44_spill] sm:$0xff] %v5104_v60 }
 0x1c5   :  { %6725 = vst [vmem:[#allocation45_spill] sm:$0xff] %v5107_v33 }
 0x1c6   :  { %1321 = vmatpush1.bf16.msra.mxu0 %v6694_v61  ;;  %v6733_v61 = vld [vmem:[#allocation17_spill] sm:$0xff] }
 0x1c7   :  { %1322 = vmatprep.subr.bf16.mxu0 %v6695_v9  ;;  %1556 = vmatpush1.bf16.msra.mxu1 %v4579_v57  ;;  %v6701_v57 = vld [vmem:[#allocation46_spill] sm:$0xff] }
 0x1c8   :  { %1557 = vmatprep.subr.bf16.mxu1 %v4585_v59  ;;  %v6702_v59 = vld [vmem:[#allocation47_spill] sm:$0xff]  ;;  %6726 = vst [vmem:[#allocation46_spill] sm:$0xff] %v5110_v11  ;;  %v6734_v9 = vld [vmem:[#allocation18_spill] sm:$0xff] }
 0x1ca   :  { %1323 = vmatpush1.bf16.msra.mxu0 %v6696_v42  ;;  %v6735_v42 = vld [vmem:[#allocation20_spill] sm:$0xff] }
 0x1cb   :  { %1324 = vmatprep.subr.bf16.mxu0 %v6697_v44  ;;  %1558 = vmatpush1.bf16.msra.mxu1 %v4594_v62  ;;  %v6703_v62 = vld [vmem:[#allocation19_spill] sm:$0xff]  ;;  %v6736_v44 = vld [vmem:[#allocation22_spill] sm:$0xff] }
 0x1cc   :  { %1559 = vmatprep.subr.bf16.mxu1 %v4602_v0  ;;  %v6704_v0 = vld [vmem:[#allocation21_spill] sm:$0xff] }
 0x1ce   :  { %1325 = vmatpush1.bf16.msra.mxu0 %v6698_v46  ;;  %v6737_v46 = vld [vmem:[#allocation24_spill] sm:$0xff] }
 0x1cf   :  { %1326 = vmatprep.subr.bf16.mxu0 %v6699_v51  ;;  %1560 = vmatpush1.bf16.msra.mxu1 %v4613_v4  ;;  %v6706_v4 = vld [vmem:[#allocation49_spill] sm:$0xff]  ;;  %v6738_v51 = vld [vmem:[#allocation26_spill] sm:$0xff] }
 0x1d0   :  { %1561 = vmatprep.subr.bf16.mxu1 %v4619_v6  ;;  %v6707_v6 = vld [vmem:[#allocation23_spill] sm:$0xff] }
 0x1d2   :  { %1327 = vmatpush1.bf16.msra.mxu0 %v6700_v53  ;;  %v6739_v53 = vld [vmem:[#allocation28_spill] sm:$0xff] }
 0x1d3   :  { %1328 = vmatprep.subr.bf16.mxu0 %v6701_v57  ;;  %1562 = vmatpush1.bf16.msra.mxu1 %v4627_v10  ;;  %v6708_v10 = vld [vmem:[#allocation25_spill] sm:$0xff] }
 0x1d4   :  { %1563 = vmatprep.subr.bf16.mxu1 %v4633_v12  ;;  %v6709_v12 = vld [vmem:[#allocation50_spill] sm:$0xff]  ;;  %v6740_v57 = vld [vmem:[#allocation29_spill] sm:$0xff] }
 0x1d6   :  { %1329 = vmatpush1.bf16.msra.mxu0 %v4792_v36  ;;  %v5083_v36 = vld [vmem:[#allocation2 + $0x68] ss:$24 sps:$4 sm:$0xff]  }
 0x1d7   :  { %1330 = vmatprep.subr.bf16.mxu0 %v6702_v59  ;;  %1564 = vmatpush1.bf16.msra.mxu1 %v4639_v14  ;;  %v5065_v14 = vld [vmem:[#allocation2 + $0xc] ss:$24 sps:$4 sm:$0xff]   ;;  %6717 = vst [vmem:[#allocation37_spill] sm:$0xff] %v5083_v36  ;;  %v6741_v59 = vld [vmem:[#allocation31_spill] sm:$0xff] }
 0x1d8   :  { %1565 = vmatprep.subr.bf16.mxu1 %v4645_v17  ;;  %6710 = vst [vmem:[#allocation9_spill] sm:$0xff] %v5065_v14  ;;  %v6711_v17 = vld [vmem:[#allocation27_spill] sm:$0xff] }
 0x1da   :  { %1331 = vmatpush1.bf16.msra.mxu0 %v4800_v40  ;;  %v5089_v40 = vld [vmem:[#allocation2 + $0x98] ss:$24 sps:$4 sm:$0xff]  }
 0x1db   :  { %1332 = vmatprep.subr.bf16.mxu0 %v4803_v38  ;;  %1566 = vmatpush1.bf16.msra.mxu1 %v6703_v62  ;;  %v5086_v38 = vld [vmem:[#allocation2 + $0x9c] ss:$24 sps:$4 sm:$0xff]   ;;  %6719 = vst [vmem:[#allocation39_spill] sm:$0xff] %v5089_v40  ;;  %v6742_v62 = vld [vmem:[#allocation33_spill] sm:$0xff] }
 0x1dc   :  { %1567 = vmatprep.subr.bf16.mxu1 %v6704_v0  ;;  %6718 = vst [vmem:[#allocation38_spill] sm:$0xff] %v5086_v38  ;;  %v6743_v0 = vld [vmem:[#allocation35_spill] sm:$0xff] }
 0x1de   :  { %1333 = vmatpush1.bf16.msra.mxu0 %v6705_v2  ;;  %v5130_v2 = vld [vmem:[#allocation2 + $0x4] ss:$24 sps:$4 sm:$0xff]  }
 0x1df   :  { %1334 = vmatprep.subr.bf16.mxu0 %v6706_v4  ;;  %1568 = vmatpush1.bf16.msra.mxu1 %v6707_v6  ;;  %6744 = vst [vmem:[#allocation47_spill] sm:$0xff] %v5130_v2 }
 0x1e0   :  { %1569 = vmatprep.subr.bf16.mxu1 %v6708_v10 }
 0x1e2   :  { %1335 = vmatpush1.bf16.msra.mxu0 %v6709_v12 }
 0x1e3   :  { %1580 = vmatprep.subr.bf16.mxu0 %v5065_v14  ;;  %1570 = vmatpush1.bf16.msra.mxu1 %v6711_v17 }
 0x1e4   :  { %1621 = vmatprep.subr.bf16.mxu1 %v6712_v20 }
 0x1e5   :  { %1337 = vmatmul.mubr.bf16.vlgmr.msra.gmra.mrb[16].mxu0 %v4978_v56  ;;  %v6727_v56 = vld [vmem:[#allocation10_spill] sm:$0xff] }
 0x1e6   :  { %1581 = vmatpush1.bf16.msra.mxu0 %v5071_v22 }
 0x1e7   :  { %1582 = vmatprep.subr.bf16.mxu0 %v5074_v24 }
 0x1ea   :  { %1583 = vmatpush1.bf16.msra.mxu0 %v5077_v26 }
 0x1eb   :  { %1584 = vmatprep.subr.bf16.mxu0 %v5080_v28 }
 0x1ee   :  { %1585 = vmatpush1.bf16.msra.mxu0 %v5083_v36 }
 0x1ef   :  { %1586 = vmatprep.subr.bf16.mxu0 %v5086_v38 }
 0x1f2   :  { %1587 = vmatpush1.bf16.msra.mxu0 %v5089_v40 }
 0x1f3   :  { %1588 = vmatprep.subr.bf16.mxu0 %v5092_v5 }
 0x1f6   :  { %1589 = vmatpush1.bf16.msra.mxu0 %v5095_v49 }
 0x1f7   :  { %1590 = vmatprep.subr.bf16.mxu0 %v5098_v1 }
 0x1fa   :  { %1591 = vmatpush1.bf16.msra.mxu0 %v5101_v43 }
 0x1fb   :  { %1592 = vmatprep.subr.bf16.mxu0 %v5104_v60 }
 0x1fe   :  { %1593 = vmatpush1.bf16.msra.mxu0 %v5107_v33 }
 0x1ff   :  { %1594 = vmatprep.subr.bf16.mxu0 %v5110_v11 }
 0x202   :  { %1595 = vmatpush1.bf16.msra.mxu0 %v6727_v56 }
 0x203   :  { %1596 = vmatprep.subr.bf16.mxu0 %v6728_v30 }
 0x206   :  { %1597 = vmatpush1.bf16.msra.mxu0 %v6729_v21 }
 0x207   :  { %1598 = vmatprep.subr.bf16.mxu0 %v6730_v23 }
 0x20a   :  { %1599 = vmatpush1.bf16.msra.mxu0 %v6731_v37 }
 0x20b   :  { %1600 = vmatprep.subr.bf16.mxu0 %v6732_v15 }
 0x20e   :  { %1601 = vmatpush1.bf16.msra.mxu0 %v6733_v61 }
 0x20f   :  { %1602 = vmatprep.subr.bf16.mxu0 %v6734_v9  ;;  %v6745_v9 = vld [vmem:[#allocation51_spill] sm:$0xff] }
 0x212   :  { %1603 = vmatpush1.bf16.msra.mxu0 %v6735_v42 }
 0x213   :  { %1604 = vmatprep.subr.bf16.mxu0 %v6736_v44 }
 0x216   :  { %1605 = vmatpush1.bf16.msra.mxu0 %v6737_v46 }
 0x217   :  { %1606 = vmatprep.subr.bf16.mxu0 %v6738_v51 }
 0x21a   :  { %1607 = vmatpush1.bf16.msra.mxu0 %v6739_v53 }
 0x21b   :  { %1608 = vmatprep.subr.bf16.mxu0 %v6740_v57 }
 0x21e   :  { %1609 = vmatpush1.bf16.msra.mxu0 %v6741_v59 }
 0x21f   :  { %1610 = vmatprep.subr.bf16.mxu0 %v6742_v62 }
 0x222   :  { %1611 = vmatpush1.bf16.msra.mxu0 %v6743_v0 }
 0x223   :  { %1864 = vmatprep.subr.bf16.mxu0 %v5130_v2 }
 0x278   :  { %v1256_v4 = vpop.f32.mrb[12].mxu0  ;;  %v1297_v6 = vpop.f32.mrb[12].mxu1 }
 0x279   :  { %v1258_v10 = vpop.f32.mrb[13].mxu0  ;;  %v1299_v12 = vpop.f32.mrb[13].mxu1  ;;  %v1347_v21 = vrot.slane %v1256_v4, 7  ;;  %v1355_v37 = vadd.f32 %v1256_v4, %v4883_v35  ;;  %v1383_v62 = vrot.slane %v1297_v6, 7 }
 0x27a   :  { %v1260_v17 = vpop.f32.mrb[14].mxu0  ;;  %v1301_v20 = vpop.f32.mrb[14].mxu1  ;;  %v1348_v23 = vrot.slane %v1258_v10, 7  ;;  %v1356_v15 = vadd.f32 %v1258_v10, %v4885_v34  ;;  %v1391_v10 = vadd.f32 %v1297_v6, %v4901_v45 }
 0x27b   :  { %v1261_v56 = vpop.f32.mrb[15].mxu0  ;;  %v1302_v30 = vpop.f32.mrb[15].mxu1  ;;  %v1353_v61 = vadd.f32 %v1347_v21, %v4879_v55  ;;  %v3610_v44 = vmul.f32 -1.442695, %v1355_v37  ;;  %v1384_v17 = vrot.slane %v1299_v12, 7 }
 0x27c   :  { %v1354_v42 = vadd.f32 %v1348_v23, %v6745_v9  ;;  %v3611_v46 = vmul.f32 -1.442695, %v1356_v15  ;;  %v1392_v30 = vadd.f32 %v1299_v12, %v4914_v54  ;;  %v6746_v23 = vld [vmem:[#allocation54_spill] sm:$0xff] }
 0x27d   :  { %v3608_v51 = vmul.f32 -1.442695, %v1353_v61  ;;  %3872 = vpow2.f32 %v3610_v44  ;;  %v1389_v37 = vadd.f32 %v1383_v62, %v6746_v23  ;;  %v6747_v61 = vld [vmem:[#allocation55_spill] sm:$0xff]  ;;  %v3614_v44 = vmul.f32 -1.442695, %v1391_v10 }
 0x27e   :  { %v3609_v53 = vmul.f32 -1.442695, %v1354_v42  ;;  %3874 = vpow2.f32 %v3611_v46  ;;  %v1390_v42 = vadd.f32 %v1384_v17, %v6747_v61  ;;  %v3615_v46 = vmul.f32 -1.442695, %v1392_v30 }
 0x27f   :  { %3876 = vpow2.f32 %v3608_v51  ;;  %v3612_v51 = vmul.f32 -1.442695, %v1389_v37 }
 0x280   :  { %3878 = vpow2.f32 %v3609_v53  ;;  %v3613_v53 = vmul.f32 -1.442695, %v1390_v42 }
 0x287   :  { %v3873_v57 = vpop.eup %3872 }
 0x288   :  { %v3875_v59 = vpop.eup %3874  ;;  %v1371_v20 = vadd.f32 1.0, %v3873_v57 }
 0x289   :  { %v3877_v0 = vpop.eup %3876  ;;  %v1372_v56 = vadd.f32 1.0, %v3875_v59 }
 0x28a   :  { %v3879_v4 = vpop.eup %3878  ;;  %v1369_v21 = vadd.f32 1.0, %v3877_v0  ;;  %3880 = vrcp.f32 %v1371_v20 }
 0x28b   :  { %v1370_v15 = vadd.f32 1.0, %v3879_v4  ;;  %3882 = vrcp.f32 %v1372_v56 }
 0x28c   :  { %3884 = vrcp.f32 %v1369_v21 }
 0x28d   :  { %3886 = vrcp.f32 %v1370_v15 }
 0x28e   :  { %3888 = vpow2.f32 %v3614_v44 }
 0x28f   :  { %3890 = vpow2.f32 %v3615_v46 }
 0x290   :  { %3892 = vpow2.f32 %v3612_v51  ;;  %v6748_v51 = vld [vmem:[#allocation63_spill] sm:$0xff] }
 0x291   :  { %3894 = vpow2.f32 %v3613_v53 }
 0x294   :  { %v3881_v59 = vpop.eup %3880 }
 0x295   :  { %v3883_v17 = vpop.eup %3882 }
 0x296   :  { %v3885_v56 = vpop.eup %3884 }
 0x297   :  { %v3887_v37 = vpop.eup %3886 }
 0x298   :  { %v3889_v44 = vpop.eup %3888 }
 0x2b8   :  { %v1338_v6 = vpop.f32.mrb[16].mxu0 }
 0x2b9   :  { %v1417_v12 = vadd.f32 %v1338_v6, %v4905_v52  ;;  %v1340_v57 = vpop.f32.mrb[17].mxu0  ;;  %v3891_v6 = vpop.eup %3890  ;;  %v6749_v52 = vld [vmem:[#allocation60_spill] sm:$0xff] }
 0x2ba   :  { %v1418_v62 = vadd.f32 %v1340_v57, %v4909_v58  ;;  %v1342_v0 = vpop.f32.mrb[18].mxu0  ;;  %v3893_v57 = vpop.eup %3892 }
 0x2bb   :  { %v1421_v4 = vrot.slane %v1417_v12, 7  ;;  %v1429_v20 = vmul.f32 %v3881_v59, %v1417_v12  ;;  %v1343_v10 = vpop.f32.mrb[19].mxu0  ;;  %v6750_v0 = vld [vmem:[#allocation61_spill] sm:$0xff]  ;;  %v3895_v12 = vpop.eup %3894  ;;  %v1407_v59 = vadd.f32 1.0, %v3889_v44 }
 0x2bc   :  { %v1422_v30 = vrot.slane %v1418_v62, 7  ;;  %v1430_v21 = vmul.f32 %v3883_v17, %v1418_v62  ;;  %v1408_v62 = vadd.f32 1.0, %v3891_v6  ;;  %v1405_v17 = vadd.f32 1.0, %v3893_v57 }
 0x2bd   :  { %v1427_v15 = vmul.f32 %v3885_v56, %v1421_v4  ;;  %v1433_v42 = vadd.f32 %v1429_v20, %v4926_v48  ;;  %v1406_v4 = vadd.f32 1.0, %v3895_v12 }
 0x2be   :  { %v1428_v46 = vmul.f32 %v3887_v37, %v1422_v30  ;;  %v1434_v53 = vadd.f32 %v1430_v21, %v6748_v51 }
 0x2bf   :  { %v1431_v54 = vadd.f32 %v1427_v15, %v6749_v52  ;;  %3896 = vtanh.f32 %v1433_v42 }
 0x2c0   :  { %v1432_v58 = vadd.f32 %v1428_v46, %v6750_v0  ;;  %3898 = vtanh.f32 %v1434_v53 }
 0x2c1   :  { %3900 = vtanh.f32 %v1431_v54 }
 0x2c2   :  { %3902 = vtanh.f32 %v1432_v58 }
 0x2c3   :  { %3904 = vrcp.f32 %v1407_v59 }
 0x2c4   :  { %3906 = vrcp.f32 %v1408_v62 }
 0x2c5   :  { %3908 = vrcp.f32 %v1405_v17 }
 0x2c6   :  { %3910 = vrcp.f32 %v1406_v4 }
 0x2c9   :  { %v3897_v20 = vpop.eup %3896 }
 0x2ca   :  { %v3899_v10 = vpop.eup %3898  ;;  %v1445_v56 = vrot.slane %v3897_v20, 1 }
 0x2cb   :  { %v3901_v30 = vpop.eup %3900  ;;  %v1446_v21 = vrot.slane %v3899_v10, 1 }
 0x2cc   :  { %v3903_v37 = vpop.eup %3902  ;;  %v1443_v15 = vrot.slane %v3901_v30, 1  ;;  %v1453_v42 = vsub.f32 %v4947_v63, %v1445_v56 }
 0x2cd   :  { %v1444_v46 = vrot.slane %v3903_v37, 1  ;;  %v1454_v54 = vsub.f32 %v4949_v16, %v1446_v21  ;;  %v3905_v53 = vpop.eup %3904 }
 0x2ce   :  { %v1451_v58 = vsub.f32 %v4940_v3, %v1443_v15  ;;  %v1461_v44 = vrot.slane %v1453_v42, 7  ;;  %v3907_v12 = vpop.eup %3906 }
 0x2cf   :  { %v1452_v6 = vsub.f32 %v4945_v41, %v1444_v46  ;;  %v1462_v57 = vrot.slane %v1454_v54, 7  ;;  %v3909_v17 = vpop.eup %3908 }
 0x2d0   :  { %v1459_v59 = vrot.slane %v1451_v58, 7  ;;  %v1469_v62 = vmul.f32 %v3905_v53, %v1461_v44  ;;  %v3911_v0 = vpop.eup %3910 }
 0x2d1   :  { %v1460_v4 = vrot.slane %v1452_v6, 7  ;;  %v1470_v51 = vmul.f32 %v3907_v12, %v1462_v57 }
 0x2d2   :  { %v5151_v48 = vadd.f32 %v3897_v20, %v1469_v62  ;;  %v1467_v63 = vmul.f32 %v3909_v17, %v1459_v59 }
 0x2d3   :  { %v1468_v56 = vmul.f32 %v3911_v0, %v1460_v4  ;;  %v5153_v52 = vadd.f32 %v3899_v10, %v1470_v51 }
 0x2d4   :  { %v5155_v16 = vadd.f32 %v3901_v30, %v1467_v63  ;;  %v1521_v15 = vpack.c.bf16 %v5151_v48, %v5151_v48  ;;  %v5185_v63 = vld [vmem:[#allocation2 + $0x10] ss:$24 sps:$4 sm:$0xff]  }
 0x2d5   :  { %v5157_v3 = vadd.f32 %v3903_v37, %v1468_v56  ;;  %v1495_v41 = vcombine.low %v5151_v48, %v5153_v52  ;;  %v1522_v51 = vpack.c.bf16 %v5153_v52, %v5153_v52  ;;  %v5188_v56 = vld [vmem:[#allocation2 + $0x44] ss:$24 sps:$4 sm:$0xff]  }
 0x2d6   :  { %v1519_v21 = vpack.c.bf16 %v5155_v16, %v5155_v16  ;;  %v1529_v54 = vunpack.c.l.b16 %v1521_v15  ;;  %v5201_v15 = vld [vmem:[#allocation2 + $0x70] ss:$24 sps:$4 sm:$0xff]  }
 0x2d7   :  { %v1502_v20 = vrot.slane %v1495_v41, %v4943_v39  ;;  %v1520_v0 = vpack.c.bf16 %v5157_v3, %v5157_v3  ;;  %v1479_v10 = vcombine.low %v5155_v16, %v5157_v3  ;;  %v1530_v53 = vunpack.c.l.b16 %v1522_v51  ;;  %v5193_v41 = vld [vmem:[#allocation2 + $0x40] ss:$24 sps:$4 sm:$0xff]   ;;  %v5212_v51 = vld [vmem:[#allocation2 + $0xd4] ss:$24 sps:$4 sm:$0xff]  }
 0x2d8   :  { %v1527_v30 = vunpack.c.l.b16 %v1519_v21  ;;  %v5196_v21 = vld [vmem:[#allocation2 + $0x74] ss:$24 sps:$4 sm:$0xff]  }
 0x2d9   :  { %v1503_v37 = vcombine.high %v1502_v20, %v1502_v20  ;;  %v1528_v42 = vunpack.c.l.b16 %v1520_v0  ;;  %v1486_v46 = vrot.slane %v1479_v10, %v4943_v39  ;;  %v5204_v20 = vld [vmem:[#allocation2 + $0xa4] ss:$24 sps:$4 sm:$0xff]   ;;  %v5209_v0 = vld [vmem:[#allocation2 + $0xa0] ss:$24 sps:$4 sm:$0xff]   ;;  %v5217_v10 = vld [vmem:[#allocation2 + $0xd0] ss:$24 sps:$4 sm:$0xff]  }
 0x2da   :  { %v1531_v58 = vrot.slane %v1527_v30, 1  ;;  %v5220_v30 = vld [vmem:[#allocation2 + $0x104] ss:$24 sps:$4 sm:$0xff]  }
 0x2db   :  { %v1510_v44 = vrot.slane %v1503_v37, %v4943_v39  ;;  %v1533_v6 = vrot.slane %v1528_v42, 1  ;;  %v1487_v57 = vcombine.high %v1486_v46, %v1486_v46  ;;  %v5225_v37 = vld [vmem:[#allocation2 + $0x100] ss:$24 sps:$4 sm:$0xff]   ;;  %v5228_v42 = vld [vmem:[#allocation2 + $0x134] ss:$24 sps:$4 sm:$0xff]  }
 0x2dc   :  { %v1532_v12 = vsel %vm1124_vm2, %v1529_v54, %v1531_v58  ;;  %v5232_v46 = vld [vmem:[#allocation2 + $0x124] ss:$24 sps:$4 sm:$0xff]   ;;  %v5235_v54 = vld [vmem:[#allocation2 + $0x130] ss:$24 sps:$4 sm:$0xff]  }
 0x2dd   :  { %1517 = vst.msk [vmem:[#allocation5 + $0x11] ss:$8 sm:$0x3] %vm4965_vm6, %v1510_v44  ;;  %v1534_v59 = vsel %vm1124_vm2, %v1530_v53, %v1533_v6  ;;  %v1494_v62 = vrot.slane %v1487_v57, %v4943_v39  ;;  %v5181_v4 = vpack.c.b16 %v1532_v12, %v1532_v12  ;;  %v5238_v58 = vld [vmem:[#allocation2 + $0x164] ss:$24 sps:$4 sm:$0xff]  }
 0x2de   :  { %v1536_v17 = vpack.c.b16 %v1534_v59, %v1534_v59  ;;  %v5241_v44 = vld [vmem:[#allocation2 + $0x120] ss:$24 sps:$4 sm:$0xff]   ;;  %v5244_v53 = vld [vmem:[#allocation2 + $0x154] ss:$24 sps:$4 sm:$0xff]   ;;  %v5253_v12 = vld [vmem:[#allocation2 + $0x150] ss:$24 sps:$4 sm:$0xff]  }
 0x2df   :  { %1514 = vst.msk [vmem:[#allocation5 + $0x1] ss:$8 sm:$0x3] %vm4965_vm6, %v1494_v62  ;;  %v5247_v6 = vld [vmem:[#allocation2 + $0x160] ss:$24 sps:$4 sm:$0xff]   ;;  %6753 = vst [vmem:[#allocation48_spill] sm:$0xff] %v5253_v12 }
 0x2e0   :  { %1571 = vmatprep.mubr.bf16.mxu1 %v1536_v17  ;;  %1612 = vmatprep.mubr.bf16.mxu0 %v1536_v17  ;;  %6751 = vst [vmem:[#allocation19_spill] sm:$0xff] %v5247_v6  ;;  %v5250_v57 = vld [vmem:[#allocation2 + $0x194] ss:$24 sps:$4 sm:$0xff]   ;;  %v5256_v59 = vld [vmem:[#allocation2 + $0x184] ss:$24 sps:$4 sm:$0xff]  }
 0x2e1   :  { %1572 = vmatmul.mubr.bf16.vlgmr.msra.gmra.mrb[16].mxu1 %v5181_v4  ;;  %1613 = vmatmul.mubr.bf16.vlgmr.msra.gmra.mrb[20].mxu0 %v5181_v4  ;;  %6752 = vst [vmem:[#allocation21_spill] sm:$0xff] %v5250_v57  ;;  %6754 = vst [vmem:[#allocation49_spill] sm:$0xff] %v5256_v59  ;;  %v5259_v62 = vld [vmem:[#allocation2 + $0x190] ss:$24 sps:$4 sm:$0xff]  }
 0x2e2   :  { %1622 = vmatpush1.bf16.msra.mxu1 %v5185_v63  ;;  %1653 = vmatprep.mubr.bf16.mxu1 %v1536_v17  ;;  %6755 = vst [vmem:[#allocation23_spill] sm:$0xff] %v5259_v62  ;;  %v5262_v17 = vld [vmem:[#allocation2 + $0x1c4] ss:$24 sps:$4 sm:$0xff]  }
 0x2e3   :  { %1623 = vmatprep.subr.bf16.mxu1 %v5188_v56  ;;  %1865 = vmatpush1.bf16.msra.mxu0 %v4984_v29  ;;  %6756 = vst [vmem:[#allocation25_spill] sm:$0xff] %v5262_v17 }
 0x2e4   :  { %1866 = vmatprep.subr.bf16.mxu0 %v4987_v13 }
 0x2e6   :  { %1624 = vmatpush1.bf16.msra.mxu1 %v5193_v41 }
 0x2e7   :  { %1625 = vmatprep.subr.bf16.mxu1 %v5196_v21  ;;  %1867 = vmatpush1.bf16.msra.mxu0 %v4992_v8 }
 0x2e8   :  { %1868 = vmatprep.subr.bf16.mxu0 %v4995_v18 }
 0x2ea   :  { %1626 = vmatpush1.bf16.msra.mxu1 %v5201_v15 }
 0x2eb   :  { %1627 = vmatprep.subr.bf16.mxu1 %v5204_v20  ;;  %1869 = vmatpush1.bf16.msra.mxu0 %v5000_v19 }
 0x2ec   :  { %1870 = vmatprep.subr.bf16.mxu0 %v5003_v47 }
 0x2ee   :  { %1628 = vmatpush1.bf16.msra.mxu1 %v5209_v0 }
 0x2ef   :  { %1629 = vmatprep.subr.bf16.mxu1 %v5212_v51  ;;  %1871 = vmatpush1.bf16.msra.mxu0 %v5008_v27 }
 0x2f0   :  { %1872 = vmatprep.subr.bf16.mxu0 %v5011_v31 }
 0x2f2   :  { %1630 = vmatpush1.bf16.msra.mxu1 %v5217_v10 }
 0x2f3   :  { %1631 = vmatprep.subr.bf16.mxu1 %v5220_v30  ;;  %1873 = vmatpush1.bf16.msra.mxu0 %v5016_v50 }
 0x2f4   :  { %1874 = vmatprep.subr.bf16.mxu0 %v5019_v32 }
 0x2f6   :  { %1632 = vmatpush1.bf16.msra.mxu1 %v5225_v37 }
 0x2f7   :  { %1633 = vmatprep.subr.bf16.mxu1 %v5228_v42  ;;  %1875 = vmatpush1.bf16.msra.mxu0 %v5024_v7 }
 0x2f8   :  { %1876 = vmatprep.subr.bf16.mxu0 %v5232_v46 }
 0x2fa   :  { %1634 = vmatpush1.bf16.msra.mxu1 %v5235_v54 }
 0x2fb   :  { %1635 = vmatprep.subr.bf16.mxu1 %v5238_v58  ;;  %1877 = vmatpush1.bf16.msra.mxu0 %v5241_v44 }
 0x2fc   :  { %1878 = vmatprep.subr.bf16.mxu0 %v5244_v53 }
 0x2fe   :  { %1636 = vmatpush1.bf16.msra.mxu1 %v5247_v6  ;;  %v5265_v6 = vld [vmem:[#allocation2 + $0x180] ss:$24 sps:$4 sm:$0xff]  }
 0x2ff   :  { %1637 = vmatprep.subr.bf16.mxu1 %v5250_v57  ;;  %1879 = vmatpush1.bf16.msra.mxu0 %v5253_v12  ;;  %6757 = vst [vmem:[#allocation50_spill] sm:$0xff] %v5265_v6  ;;  %v5268_v57 = vld [vmem:[#allocation2 + $0x1b4] ss:$24 sps:$4 sm:$0xff]   ;;  %v5271_v12 = vld [vmem:[#allocation2 + $0x1c0] ss:$24 sps:$4 sm:$0xff]  }
 0x300   :  { %1880 = vmatprep.subr.bf16.mxu0 %v5256_v59  ;;  %6758 = vst [vmem:[#allocation27_spill] sm:$0xff] %v5268_v57  ;;  %6759 = vst [vmem:[#allocation30_spill] sm:$0xff] %v5271_v12  ;;  %v5274_v59 = vld [vmem:[#allocation2 + $0x1f4] ss:$24 sps:$4 sm:$0xff]  }
 0x301   :  { %6760 = vst [vmem:[#allocation10_spill] sm:$0xff] %v5274_v59 }
 0x302   :  { %1638 = vmatpush1.bf16.msra.mxu1 %v5259_v62  ;;  %v5277_v62 = vld [vmem:[#allocation2 + $0x1b0] ss:$24 sps:$4 sm:$0xff]  }
 0x303   :  { %1639 = vmatprep.subr.bf16.mxu1 %v5262_v17  ;;  %1881 = vmatpush1.bf16.msra.mxu0 %v5265_v6  ;;  %6761 = vst [vmem:[#allocation11_spill] sm:$0xff] %v5277_v62  ;;  %v5280_v17 = vld [vmem:[#allocation2 + $0x1e4] ss:$24 sps:$4 sm:$0xff]   ;;  %v5283_v6 = vld [vmem:[#allocation2 + $0x1f0] ss:$24 sps:$4 sm:$0xff]  }
 0x304   :  { %1882 = vmatprep.subr.bf16.mxu0 %v5268_v57  ;;  %6762 = vst [vmem:[#allocation13_spill] sm:$0xff] %v5280_v17  ;;  %6763 = vst [vmem:[#allocation14_spill] sm:$0xff] %v5283_v6  ;;  %v5286_v57 = vld [vmem:[#allocation2 + $0x224] ss:$24 sps:$4 sm:$0xff]  }
 0x305   :  { %6764 = vst [vmem:[#allocation15_spill] sm:$0xff] %v5286_v57 }
 0x306   :  { %1640 = vmatpush1.bf16.msra.mxu1 %v5271_v12  ;;  %v5289_v12 = vld [vmem:[#allocation2 + $0x1e0] ss:$24 sps:$4 sm:$0xff]  }
 0x307   :  { %1641 = vmatprep.subr.bf16.mxu1 %v5274_v59  ;;  %1883 = vmatpush1.bf16.msra.mxu0 %v5277_v62  ;;  %6765 = vst [vmem:[#allocation16_spill] sm:$0xff] %v5289_v12  ;;  %v5292_v59 = vld [vmem:[#allocation2 + $0x214] ss:$24 sps:$4 sm:$0xff]   ;;  %v5295_v62 = vld [vmem:[#allocation2 + $0x220] ss:$24 sps:$4 sm:$0xff]  }
 0x308   :  { %1884 = vmatprep.subr.bf16.mxu0 %v5280_v17  ;;  %6766 = vst [vmem:[#allocation17_spill] sm:$0xff] %v5292_v59  ;;  %6767 = vst [vmem:[#allocation18_spill] sm:$0xff] %v5295_v62  ;;  %v5298_v17 = vld [vmem:[#allocation2 + $0x254] ss:$24 sps:$4 sm:$0xff]  }
 0x309   :  { %6768 = vst [vmem:[#allocation20_spill] sm:$0xff] %v5298_v17 }
 0x30a   :  { %1642 = vmatpush1.bf16.msra.mxu1 %v5283_v6  ;;  %v5301_v6 = vld [vmem:[#allocation2 + $0x210] ss:$24 sps:$4 sm:$0xff]  }
 0x30b   :  { %1643 = vmatprep.subr.bf16.mxu1 %v5286_v57  ;;  %1885 = vmatpush1.bf16.msra.mxu0 %v5289_v12  ;;  %6769 = vst [vmem:[#allocation22_spill] sm:$0xff] %v5301_v6  ;;  %v5304_v57 = vld [vmem:[#allocation2 + $0x244] ss:$24 sps:$4 sm:$0xff]   ;;  %v5307_v12 = vld [vmem:[#allocation2 + $0x250] ss:$24 sps:$4 sm:$0xff]  }
 0x30c   :  { %1886 = vmatprep.subr.bf16.mxu0 %v5292_v59  ;;  %6770 = vst [vmem:[#allocation24_spill] sm:$0xff] %v5304_v57  ;;  %6771 = vst [vmem:[#allocation26_spill] sm:$0xff] %v5307_v12  ;;  %v5310_v59 = vld [vmem:[#allocation2 + $0x284] ss:$24 sps:$4 sm:$0xff]  }
 0x30d   :  { %6772 = vst [vmem:[#allocation28_spill] sm:$0xff] %v5310_v59 }
 0x30e   :  { %1644 = vmatpush1.bf16.msra.mxu1 %v5295_v62  ;;  %v5313_v62 = vld [vmem:[#allocation2 + $0x240] ss:$24 sps:$4 sm:$0xff]  }
 0x30f   :  { %1645 = vmatprep.subr.bf16.mxu1 %v5298_v17  ;;  %1887 = vmatpush1.bf16.msra.mxu0 %v5301_v6  ;;  %6773 = vst [vmem:[#allocation29_spill] sm:$0xff] %v5313_v62  ;;  %v5316_v17 = vld [vmem:[#allocation2 + $0x274] ss:$24 sps:$4 sm:$0xff]   ;;  %v5319_v6 = vld [vmem:[#allocation2 + $0x280] ss:$24 sps:$4 sm:$0xff]  }
 0x310   :  { %1888 = vmatprep.subr.bf16.mxu0 %v5304_v57  ;;  %6774 = vst [vmem:[#allocation31_spill] sm:$0xff] %v5316_v17  ;;  %6775 = vst [vmem:[#allocation33_spill] sm:$0xff] %v5319_v6  ;;  %v5322_v57 = vld [vmem:[#allocation2 + $0x2b4] ss:$24 sps:$4 sm:$0xff]  }
 0x311   :  { %6776 = vst [vmem:[#allocation35_spill] sm:$0xff] %v5322_v57 }
 0x312   :  { %1646 = vmatpush1.bf16.msra.mxu1 %v5307_v12  ;;  %v5325_v12 = vld [vmem:[#allocation2 + $0x270] ss:$24 sps:$4 sm:$0xff]  }
 0x313   :  { %1647 = vmatprep.subr.bf16.mxu1 %v5310_v59  ;;  %1889 = vmatpush1.bf16.msra.mxu0 %v5313_v62  ;;  %6777 = vst [vmem:[#allocation64_spill] sm:$0xff] %v5325_v12  ;;  %v5328_v59 = vld [vmem:[#allocation2 + $0x2a4] ss:$24 sps:$4 sm:$0xff]   ;;  %v5331_v62 = vld [vmem:[#allocation2 + $0x2b0] ss:$24 sps:$4 sm:$0xff]  }
 0x314   :  { %1890 = vmatprep.subr.bf16.mxu0 %v5316_v17  ;;  %6778 = vst [vmem:[#allocation65_spill] sm:$0xff] %v5328_v59  ;;  %6779 = vst [vmem:[#allocation66_spill] sm:$0xff] %v5331_v62  ;;  %v5334_v17 = vld [vmem:[#allocation2 + $0x2e4] ss:$24 sps:$4 sm:$0xff]  }
 0x315   :  { %6780 = vst [vmem:[#allocation67_spill] sm:$0xff] %v5334_v17 }
 0x316   :  { %1648 = vmatpush1.bf16.msra.mxu1 %v5319_v6  ;;  %v5337_v6 = vld [vmem:[#allocation2 + $0x2a0] ss:$24 sps:$4 sm:$0xff]  }
 0x317   :  { %1649 = vmatprep.subr.bf16.mxu1 %v5322_v57  ;;  %1891 = vmatpush1.bf16.msra.mxu0 %v5325_v12  ;;  %6781 = vst [vmem:[#allocation68_spill] sm:$0xff] %v5337_v6  ;;  %v5340_v57 = vld [vmem:[#allocation2 + $0x2d4] ss:$24 sps:$4 sm:$0xff]   ;;  %v5343_v12 = vld [vmem:[#allocation2 + $0x2e0] ss:$24 sps:$4 sm:$0xff]  }
 0x318   :  { %1892 = vmatprep.subr.bf16.mxu0 %v5328_v59  ;;  %6782 = vst [vmem:[#allocation69_spill] sm:$0xff] %v5340_v57  ;;  %6783 = vst [vmem:[#allocation70_spill] sm:$0xff] %v5343_v12  ;;  %v5347_v59 = vld [vmem:[#allocation2 + $0x2d0] ss:$24 sps:$4 sm:$0xff]  }
 0x319   :  { %6784 = vst [vmem:[#allocation71_spill] sm:$0xff] %v5347_v59 }
 0x31a   :  { %1650 = vmatpush1.bf16.msra.mxu1 %v5331_v62  ;;  %v5350_v62 = vld [vmem:[#allocation2 + $0x14] ss:$24 sps:$4 sm:$0xff]  }
 0x31b   :  { %1651 = vmatprep.subr.bf16.mxu1 %v5334_v17  ;;  %1893 = vmatpush1.bf16.msra.mxu0 %v5337_v6  ;;  %6785 = vst [vmem:[#allocation72_spill] sm:$0xff] %v5350_v62 }
 0x31c   :  { %1894 = vmatprep.subr.bf16.mxu0 %v5340_v57 }
 0x31e   :  { %1652 = vmatpush1.bf16.msra.mxu1 %v5343_v12 }
 0x31f   :  { %1905 = vmatprep.subr.bf16.mxu1 %v5065_v14  ;;  %1895 = vmatpush1.bf16.msra.mxu0 %v5347_v59 }
 0x320   :  { %1946 = vmatprep.subr.bf16.mxu0 %v5350_v62 }
 0x321   :  { %1654 = vmatmul.mubr.bf16.vlgmr.msra.gmra.mrb[20].mxu1 %v5181_v4  ;;  %v5368_v4 = vld [vmem:[#allocation2 + $0x158] ss:$24 sps:$4 sm:$0xff]  }
 0x322   :  { %1906 = vmatpush1.bf16.msra.mxu1 %v5071_v22  ;;  %6786 = vst [vmem:[#allocation73_spill] sm:$0xff] %v5368_v4 }
 0x323   :  { %1907 = vmatprep.subr.bf16.mxu1 %v5074_v24 }
 0x326   :  { %1908 = vmatpush1.bf16.msra.mxu1 %v5077_v26 }
 0x327   :  { %1909 = vmatprep.subr.bf16.mxu1 %v5080_v28 }
 0x32a   :  { %1910 = vmatpush1.bf16.msra.mxu1 %v5083_v36 }
 0x32b   :  { %1911 = vmatprep.subr.bf16.mxu1 %v5086_v38  ;;  %v5371_v38 = vld [vmem:[#allocation2 + $0x18c] ss:$24 sps:$4 sm:$0xff]  }
 0x32c   :  { %6787 = vst [vmem:[#allocation74_spill] sm:$0xff] %v5371_v38 }
 0x32e   :  { %1912 = vmatpush1.bf16.msra.mxu1 %v5089_v40 }
 0x32f   :  { %1913 = vmatprep.subr.bf16.mxu1 %v5092_v5  ;;  %v5374_v5 = vld [vmem:[#allocation2 + $0x188] ss:$24 sps:$4 sm:$0xff]  }
 0x330   :  { %6788 = vst [vmem:[#allocation75_spill] sm:$0xff] %v5374_v5 }
 0x332   :  { %1914 = vmatpush1.bf16.msra.mxu1 %v5095_v49 }
 0x333   :  { %1915 = vmatprep.subr.bf16.mxu1 %v5098_v1  ;;  %v5377_v1 = vld [vmem:[#allocation2 + $0x1bc] ss:$24 sps:$4 sm:$0xff]  }
 0x334   :  { %6789 = vst [vmem:[#allocation76_spill] sm:$0xff] %v5377_v1 }
 0x336   :  { %1916 = vmatpush1.bf16.msra.mxu1 %v5101_v43 }
 0x337   :  { %1917 = vmatprep.subr.bf16.mxu1 %v5104_v60  ;;  %v5380_v60 = vld [vmem:[#allocation2 + $0x1b8] ss:$24 sps:$4 sm:$0xff]  }
 0x338   :  { %6790 = vst [vmem:[#allocation77_spill] sm:$0xff] %v5380_v60 }
 0x33a   :  { %1918 = vmatpush1.bf16.msra.mxu1 %v5107_v33 }
 0x33b   :  { %1919 = vmatprep.subr.bf16.mxu1 %v5110_v11  ;;  %v5383_v11 = vld [vmem:[#allocation2 + $0x1ec] ss:$24 sps:$4 sm:$0xff]  }
 0x33c   :  { %6791 = vst [vmem:[#allocation78_spill] sm:$0xff] %v5383_v11 }
 0x33e   :  { %1920 = vmatpush1.bf16.msra.mxu1 %v5368_v4  ;;  %v5386_v4 = vld [vmem:[#allocation2 + $0x1e8] ss:$24 sps:$4 sm:$0xff]  }
 0x33f   :  { %1921 = vmatprep.subr.bf16.mxu1 %v5371_v38  ;;  %6792 = vst [vmem:[#allocation79_spill] sm:$0xff] %v5386_v4  ;;  %v5389_v38 = vld [vmem:[#allocation2 + $0x21c] ss:$24 sps:$4 sm:$0xff]  }
 0x340   :  { %6793 = vst [vmem:[#allocation80_spill] sm:$0xff] %v5389_v38 }
 0x342   :  { %1922 = vmatpush1.bf16.msra.mxu1 %v5374_v5  ;;  %v5392_v5 = vld [vmem:[#allocation2 + $0x218] ss:$24 sps:$4 sm:$0xff]  }
 0x343   :  { %1923 = vmatprep.subr.bf16.mxu1 %v5377_v1  ;;  %6794 = vst [vmem:[#allocation81_spill] sm:$0xff] %v5392_v5  ;;  %v5395_v1 = vld [vmem:[#allocation2 + $0x24c] ss:$24 sps:$4 sm:$0xff]  }
 0x344   :  { %6795 = vst [vmem:[#allocation82_spill] sm:$0xff] %v5395_v1 }
 0x346   :  { %1924 = vmatpush1.bf16.msra.mxu1 %v5380_v60  ;;  %v5398_v60 = vld [vmem:[#allocation2 + $0x248] ss:$24 sps:$4 sm:$0xff]  }
 0x347   :  { %1925 = vmatprep.subr.bf16.mxu1 %v5383_v11  ;;  %6796 = vst [vmem:[#allocation83_spill] sm:$0xff] %v5398_v60  ;;  %v5401_v11 = vld [vmem:[#allocation2 + $0x27c] ss:$24 sps:$4 sm:$0xff]  }
 0x348   :  { %6797 = vst [vmem:[#allocation84_spill] sm:$0xff] %v5401_v11 }
 0x34a   :  { %1926 = vmatpush1.bf16.msra.mxu1 %v5386_v4  ;;  %v5404_v4 = vld [vmem:[#allocation2 + $0x278] ss:$24 sps:$4 sm:$0xff]  }
 0x34b   :  { %1927 = vmatprep.subr.bf16.mxu1 %v5389_v38  ;;  %6798 = vst [vmem:[#allocation85_spill] sm:$0xff] %v5404_v4  ;;  %v5407_v38 = vld [vmem:[#allocation2 + $0x2ac] ss:$24 sps:$4 sm:$0xff]  }
 0x34c   :  { %6799 = vst [vmem:[#allocation86_spill] sm:$0xff] %v5407_v38 }
 0x34e   :  { %1928 = vmatpush1.bf16.msra.mxu1 %v5392_v5  ;;  %v5410_v5 = vld [vmem:[#allocation2 + $0x2a8] ss:$24 sps:$4 sm:$0xff]  }
 0x34f   :  { %1929 = vmatprep.subr.bf16.mxu1 %v5395_v1  ;;  %6800 = vst [vmem:[#allocation87_spill] sm:$0xff] %v5410_v5  ;;  %v5413_v1 = vld [vmem:[#allocation2 + $0x2dc] ss:$24 sps:$4 sm:$0xff]  }
 0x350   :  { %6801 = vst [vmem:[#allocation88_spill] sm:$0xff] %v5413_v1 }
 0x352   :  { %1930 = vmatpush1.bf16.msra.mxu1 %v5398_v60  ;;  %v5416_v60 = vld [vmem:[#allocation2 + $0x2d8] ss:$24 sps:$4 sm:$0xff]  }
 0x353   :  { %1931 = vmatprep.subr.bf16.mxu1 %v5401_v11  ;;  %6802 = vst [vmem:[#allocation89_spill] sm:$0xff] %v5416_v60 }
 0x356   :  { %1932 = vmatpush1.bf16.msra.mxu1 %v5404_v4 }
 0x357   :  { %1933 = vmatprep.subr.bf16.mxu1 %v5407_v38 }
 0x35a   :  { %1934 = vmatpush1.bf16.msra.mxu1 %v5410_v5 }
 0x35b   :  { %1935 = vmatprep.subr.bf16.mxu1 %v5413_v1 }
 0x35e   :  { %1936 = vmatpush1.bf16.msra.mxu1 %v5416_v60 }
 0x35f   :  { %2191 = vmatprep.subr.bf16.mxu1 %v5130_v2 }
 0x3b4   :  { %v1573_v11 = vpop.f32.mrb[16].mxu1  ;;  %v1614_v4 = vpop.f32.mrb[20].mxu0 }
 0x3b5   :  { %v1575_v33 = vpop.f32.mrb[17].mxu1  ;;  %v1616_v43 = vpop.f32.mrb[21].mxu0  ;;  %v1664_v28 = vrot.slane %v1573_v11, 6  ;;  %v1666_v5 = vrot.slane %v1573_v11, 7 }
 0x3b6   :  { %v1577_v49 = vpop.f32.mrb[18].mxu1  ;;  %v1618_v38 = vpop.f32.mrb[22].mxu0  ;;  %v1665_v26 = vrot.slane %v1575_v33, 6  ;;  %v1667_v24 = vrot.slane %v1575_v33, 7  ;;  %v1704_v33 = vrot.slane %v1614_v4, 7 }
 0x3b7   :  { %v1578_v40 = vpop.f32.mrb[19].mxu1  ;;  %v1619_v36 = vpop.f32.mrb[23].mxu0  ;;  %v1672_v1 = vadd.f32 %v1664_v28, %v4879_v55  ;;  %v1674_v22 = vadd.f32 %v1666_v5, %v4883_v35  ;;  %v1703_v5 = vrot.slane %v1616_v43, 6 }
 0x3b8   :  { %v1673_v60 = vadd.f32 %v1665_v26, %v6745_v9  ;;  %v1675_v2 = vadd.f32 %v1667_v24, %v4885_v34  ;;  %v1702_v40 = vrot.slane %v1614_v4, 6  ;;  %v1705_v26 = vrot.slane %v1616_v43, 7 }
 0x3b9   :  { %v3616_v62 = vmul.f32 -1.442695, %v1672_v1  ;;  %v3618_v59 = vmul.f32 -1.442695, %v1674_v22  ;;  %v1712_v22 = vadd.f32 %v1704_v33, %v4901_v45 }
 0x3ba   :  { %v3617_v14 = vmul.f32 -1.442695, %v1673_v60  ;;  %v3619_v12 = vmul.f32 -1.442695, %v1675_v2  ;;  %v1710_v24 = vadd.f32 %v1702_v40, %v6746_v23  ;;  %v6803_v2 = vld [vmem:[#allocation59_spill] sm:$0xff]  ;;  %v6808_v23 = vld [vmem:[#allocation61_spill] sm:$0xff] }
 0x3bb   :  { %3912 = vpow2.f32 %v3616_v62  ;;  %v3622_v62 = vmul.f32 -1.442695, %v1712_v22 }
 0x3bc   :  { %3914 = vpow2.f32 %v3618_v59  ;;  %v3620_v59 = vmul.f32 -1.442695, %v1710_v24 }
 0x3bd   :  { %3916 = vpow2.f32 %v3617_v14  ;;  %v1711_v14 = vadd.f32 %v1703_v5, %v6747_v61 }
 0x3be   :  { %3918 = vpow2.f32 %v3619_v12  ;;  %v1713_v12 = vadd.f32 %v1705_v26, %v6803_v2 }
 0x3bf   :  { %v3621_v4 = vmul.f32 -1.442695, %v1711_v14 }
 0x3c5   :  { %v3913_v36 = vpop.eup %3912 }
 0x3c6   :  { %v3915_v38 = vpop.eup %3914  ;;  %v1688_v11 = vadd.f32 1.0, %v3913_v36  ;;  %v3623_v36 = vmul.f32 -1.442695, %v1713_v12 }
 0x3c7   :  { %v3917_v49 = vpop.eup %3916  ;;  %v1690_v35 = vadd.f32 1.0, %v3915_v38  ;;  %v6804_v38 = vld [vmem:[#allocation57_spill] sm:$0xff] }
 0x3c8   :  { %v3919_v28 = vpop.eup %3918  ;;  %v1689_v1 = vadd.f32 1.0, %v3917_v49  ;;  %3920 = vrcp.f32 %v1688_v11 }
 0x3c9   :  { %v1691_v60 = vadd.f32 1.0, %v3919_v28  ;;  %3922 = vrcp.f32 %v1690_v35  ;;  %v6805_v28 = vld [vmem:[#allocation58_spill] sm:$0xff] }
 0x3ca   :  { %3924 = vrcp.f32 %v1689_v1 }
 0x3cb   :  { %3926 = vrcp.f32 %v1691_v60 }
 0x3cc   :  { %3928 = vpow2.f32 %v3620_v59 }
 0x3cd   :  { %3930 = vpow2.f32 %v3622_v62 }
 0x3ce   :  { %3932 = vpow2.f32 %v3621_v4 }
 0x3cf   :  { %3934 = vpow2.f32 %v3623_v36  ;;  %v6806_v36 = vld [vmem:[#allocation60_spill] sm:$0xff] }
 0x3d2   :  { %v3921_v33 = vpop.eup %3920 }
 0x3d3   :  { %v3923_v5 = vpop.eup %3922 }
 0x3d4   :  { %v3925_v22 = vpop.eup %3924 }
 0x3d5   :  { %v3927_v12 = vpop.eup %3926 }
 0x3d6   :  { %v3929_v45 = vpop.eup %3928 }
 0x3d7   :  { %v3931_v34 = vpop.eup %3930 }
 0x3f4   :  { %v1655_v43 = vpop.f32.mrb[20].mxu1 }
 0x3f5   :  { %v1738_v40 = vadd.f32 %v1655_v43, %v6804_v38  ;;  %v1657_v49 = vpop.f32.mrb[21].mxu1  ;;  %v6807_v43 = vld [vmem:[#allocation62_spill] sm:$0xff] }
 0x3f6   :  { %v1739_v11 = vadd.f32 %v1657_v49, %v6805_v28  ;;  %v1659_v35 = vpop.f32.mrb[22].mxu1 }
 0x3f7   :  { %v1742_v26 = vrot.slane %v1738_v40, 6  ;;  %v1744_v24 = vrot.slane %v1738_v40, 7  ;;  %v1660_v1 = vpop.f32.mrb[23].mxu1  ;;  %v6809_v35 = vld [vmem:[#allocation63_spill] sm:$0xff]  ;;  %v3933_v40 = vpop.eup %3932 }
 0x3f8   :  { %v1743_v60 = vrot.slane %v1739_v11, 6  ;;  %v1745_v14 = vrot.slane %v1739_v11, 7  ;;  %v3935_v1 = vpop.eup %3934  ;;  %v1726_v11 = vadd.f32 1.0, %v3929_v45 }
 0x3f9   :  { %v1750_v59 = vmul.f32 %v3921_v33, %v1742_v26  ;;  %v1752_v62 = vmul.f32 %v3923_v5, %v1744_v24  ;;  %v1728_v33 = vadd.f32 1.0, %v3931_v34  ;;  %v1727_v5 = vadd.f32 1.0, %v3933_v40 }
 0x3fa   :  { %v1751_v4 = vmul.f32 %v3925_v22, %v1743_v60  ;;  %v1753_v2 = vmul.f32 %v3927_v12, %v1745_v14  ;;  %v1729_v26 = vadd.f32 1.0, %v3935_v1 }
 0x3fb   :  { %v1754_v61 = vadd.f32 %v1750_v59, %v6806_v36  ;;  %v1756_v38 = vadd.f32 %v1752_v62, %v6807_v43 }
 0x3fc   :  { %v1755_v49 = vadd.f32 %v1751_v4, %v6808_v23  ;;  %v1757_v28 = vadd.f32 %v1753_v2, %v6809_v35 }
 0x3fd   :  { %3936 = vtanh.f32 %v1754_v61 }
 0x3fe   :  { %3938 = vtanh.f32 %v1756_v38 }
 0x3ff   :  { %3940 = vtanh.f32 %v1755_v49 }
 0x400   :  { %3942 = vtanh.f32 %v1757_v28 }
 0x401   :  { %3944 = vrcp.f32 %v1726_v11 }
 0x402   :  { %3946 = vrcp.f32 %v1728_v33 }
 0x403   :  { %3948 = vrcp.f32 %v1727_v5 }
 0x404   :  { %3950 = vrcp.f32 %v1729_v26 }
 0x407   :  { %v3937_v24 = vpop.eup %3936 }
 0x408   :  { %v3939_v22 = vpop.eup %3938  ;;  %v1766_v60 = vrot.slane %v3937_v24, 1 }
 0x409   :  { %v3941_v14 = vpop.eup %3940  ;;  %v1768_v2 = vrot.slane %v3939_v22, 1 }
 0x40a   :  { %v3943_v12 = vpop.eup %3942  ;;  %v1774_v61 = vsub.f32 %v5155_v16, %v1766_v60  ;;  %v1767_v38 = vrot.slane %v3941_v14, 1 }
 0x40b   :  { %v1776_v45 = vsub.f32 %v5151_v48, %v1768_v2  ;;  %v1769_v59 = vrot.slane %v3943_v12, 1  ;;  %v3945_v62 = vpop.eup %3944 }
 0x40c   :  { %v1782_v34 = vrot.slane %v1774_v61, 7  ;;  %v1775_v28 = vsub.f32 %v5157_v3, %v1767_v38  ;;  %v3947_v40 = vpop.eup %3946 }
 0x40d   :  { %v1784_v4 = vrot.slane %v1776_v45, 7  ;;  %v1777_v49 = vsub.f32 %v5153_v52, %v1769_v59  ;;  %v3949_v33 = vpop.eup %3948 }
 0x40e   :  { %v1783_v1 = vrot.slane %v1775_v28, 7  ;;  %v1790_v11 = vmul.f32 %v3945_v62, %v1782_v34  ;;  %v3951_v35 = vpop.eup %3950 }
 0x40f   :  { %v1785_v5 = vrot.slane %v1777_v49, 7  ;;  %v1792_v26 = vmul.f32 %v3947_v40, %v1784_v4 }
 0x410   :  { %v1791_v23 = vmul.f32 %v3949_v33, %v1783_v1  ;;  %v5438_v16 = vadd.f32 %v3937_v24, %v1790_v11 }
 0x411   :  { %v1793_v60 = vmul.f32 %v3951_v35, %v1785_v5  ;;  %v5440_v48 = vadd.f32 %v3939_v22, %v1792_v26 }
 0x412   :  { %v5442_v2 = vadd.f32 %v3941_v14, %v1791_v23  ;;  %v1842_v3 = vpack.c.bf16 %v5438_v16, %v5438_v16 }
 0x413   :  { %v5446_v61 = vadd.f32 %v3943_v12, %v1793_v60  ;;  %v1844_v52 = vpack.c.bf16 %v5440_v48, %v5440_v48 }
 0x414   :  { %v1843_v38 = vpack.c.bf16 %v5442_v2, %v5442_v2  ;;  %v1802_v24 = vcombine.low %v5438_v16, %v5442_v2  ;;  %v1850_v45 = vunpack.c.l.b16 %v1842_v3 }
 0x415   :  { %v1845_v35 = vpack.c.bf16 %v5446_v61, %v5446_v61  ;;  %v1818_v23 = vcombine.low %v5440_v48, %v5446_v61  ;;  %v1852_v22 = vunpack.c.l.b16 %v1844_v52  ;;  %v6821_v52 = vld [vmem:[#allocation13_spill] sm:$0xff] }
 0x416   :  { %v1851_v14 = vunpack.c.l.b16 %v1843_v38  ;;  %v1809_v12 = vrot.slane %v1802_v24, %v4943_v39  ;;  %v1854_v59 = vrot.slane %v1850_v45, 2  ;;  %v6822_v38 = vld [vmem:[#allocation14_spill] sm:$0xff]  ;;  %v6823_v24 = vld [vmem:[#allocation15_spill] sm:$0xff]  ;;  %v6824_v45 = vld [vmem:[#allocation16_spill] sm:$0xff] }
 0x417   :  { %v1853_v34 = vunpack.c.l.b16 %v1845_v35  ;;  %v1825_v28 = vrot.slane %v1818_v23, %v4943_v39  ;;  %v1855_v62 = vrot.slane %v1852_v22, 1  ;;  %v6825_v35 = vld [vmem:[#allocation17_spill] sm:$0xff]  ;;  %v6826_v23 = vld [vmem:[#allocation18_spill] sm:$0xff]  ;;  %v6827_v22 = vld [vmem:[#allocation20_spill] sm:$0xff] }
 0x418   :  { %v1857_v4 = vrot.slane %v1851_v14, 2  ;;  %v1816_v49 = vrot.slane %v1809_v12, %v4943_v39  ;;  %v6828_v14 = vld [vmem:[#allocation22_spill] sm:$0xff]  ;;  %v6829_v12 = vld [vmem:[#allocation24_spill] sm:$0xff] }
 0x419   :  { %v1858_v40 = vrot.slane %v1853_v34, 1  ;;  %v1832_v1 = vrot.slane %v1825_v28, %v4943_v39  ;;  %v1856_v33 = vsel %vm1124_vm2, %v1855_v62, %v1854_v59  ;;  %v6830_v59 = vld [vmem:[#allocation26_spill] sm:$0xff]  ;;  %v6831_v34 = vld [vmem:[#allocation28_spill] sm:$0xff]  ;;  %v6832_v28 = vld [vmem:[#allocation29_spill] sm:$0xff] }
 0x41a   :  { %v1817_v11 = vcombine.high %v1816_v49, %v1816_v49  ;;  %v5468_v3 = vpack.c.b16 %v1856_v33, %v1856_v33  ;;  %v6833_v62 = vld [vmem:[#allocation31_spill] sm:$0xff]  ;;  %v6839_v33 = vld [vmem:[#allocation70_spill] sm:$0xff] }
 0x41b   :  { %v1859_v5 = vsel %vm1124_vm2, %v1858_v40, %v1857_v4  ;;  %v1833_v26 = vcombine.high %v1832_v1, %v1832_v1  ;;  %v6834_v4 = vld [vmem:[#allocation33_spill] sm:$0xff]  ;;  %v6835_v49 = vld [vmem:[#allocation35_spill] sm:$0xff]  ;;  %v6836_v40 = vld [vmem:[#allocation64_spill] sm:$0xff] }
 0x41c   :  { %v1861_v60 = vpack.c.b16 %v1859_v5, %v1859_v5  ;;  %1837 = vst.msk [vmem:[#allocation5 + $0x2] ss:$8 sm:$0x3] %vm4965_vm6, %v1817_v11  ;;  %v6837_v1 = vld [vmem:[#allocation65_spill] sm:$0xff]  ;;  %v6838_v11 = vld [vmem:[#allocation66_spill] sm:$0xff] }
 0x41d   :  { %1840 = vst.msk [vmem:[#allocation5 + $0x12] ss:$8 sm:$0x3] %vm4965_vm6, %v1833_v26  ;;  %v6840_v5 = vld [vmem:[#allocation9_spill] sm:$0xff]  ;;  %v6841_v26 = vld [vmem:[#allocation71_spill] sm:$0xff] }
 0x41e   :  { %1896 = vmatprep.mubr.bf16.mxu0 %v1861_v60  ;;  %1937 = vmatprep.mubr.bf16.mxu1 %v1861_v60 }
 0x41f   :  { %1897 = vmatmul.mubr.bf16.vlgmr.msra.gmra.mrb[24].mxu0 %v5468_v3  ;;  %1938 = vmatmul.mubr.bf16.vlgmr.msra.gmra.mrb[24].mxu1 %v5468_v3 }
 0x420   :  { %1947 = vmatpush1.bf16.msra.mxu0 %v5185_v63  ;;  %1978 = vmatprep.mubr.bf16.mxu0 %v1861_v60  ;;  %v6842_v60 = vld [vmem:[#allocation72_spill] sm:$0xff] }
 0x421   :  { %1948 = vmatprep.subr.bf16.mxu0 %v5188_v56  ;;  %2192 = vmatpush1.bf16.msra.mxu1 %v4984_v29  ;;  %v6810_v29 = vld [vmem:[#allocation19_spill] sm:$0xff] }
 0x422   :  { %2193 = vmatprep.subr.bf16.mxu1 %v4987_v13  ;;  %v6811_v13 = vld [vmem:[#allocation21_spill] sm:$0xff] }
 0x424   :  { %1949 = vmatpush1.bf16.msra.mxu0 %v5193_v41 }
 0x425   :  { %1950 = vmatprep.subr.bf16.mxu0 %v5196_v21  ;;  %2194 = vmatpush1.bf16.msra.mxu1 %v4992_v8  ;;  %v6812_v8 = vld [vmem:[#allocation48_spill] sm:$0xff] }
 0x426   :  { %2195 = vmatprep.subr.bf16.mxu1 %v4995_v18  ;;  %v6813_v18 = vld [vmem:[#allocation49_spill] sm:$0xff] }
 0x428   :  { %1951 = vmatpush1.bf16.msra.mxu0 %v5201_v15 }
 0x429   :  { %1952 = vmatprep.subr.bf16.mxu0 %v5204_v20  ;;  %2196 = vmatpush1.bf16.msra.mxu1 %v5000_v19  ;;  %v6814_v19 = vld [vmem:[#allocation23_spill] sm:$0xff] }
 0x42a   :  { %2197 = vmatprep.subr.bf16.mxu1 %v5003_v47  ;;  %v6815_v47 = vld [vmem:[#allocation25_spill] sm:$0xff] }
 0x42c   :  { %1953 = vmatpush1.bf16.msra.mxu0 %v5209_v0 }
 0x42d   :  { %1954 = vmatprep.subr.bf16.mxu0 %v5212_v51  ;;  %2198 = vmatpush1.bf16.msra.mxu1 %v5008_v27  ;;  %v6816_v27 = vld [vmem:[#allocation50_spill] sm:$0xff] }
 0x42e   :  { %2199 = vmatprep.subr.bf16.mxu1 %v5011_v31  ;;  %v6817_v31 = vld [vmem:[#allocation27_spill] sm:$0xff] }
 0x430   :  { %1955 = vmatpush1.bf16.msra.mxu0 %v5217_v10 }
 0x431   :  { %1956 = vmatprep.subr.bf16.mxu0 %v5220_v30  ;;  %2200 = vmatpush1.bf16.msra.mxu1 %v5016_v50  ;;  %v6818_v50 = vld [vmem:[#allocation30_spill] sm:$0xff] }
 0x432   :  { %2201 = vmatprep.subr.bf16.mxu1 %v5019_v32  ;;  %v6819_v32 = vld [vmem:[#allocation10_spill] sm:$0xff] }
 0x434   :  { %1957 = vmatpush1.bf16.msra.mxu0 %v5225_v37 }
 0x435   :  { %1958 = vmatprep.subr.bf16.mxu0 %v5228_v42  ;;  %2202 = vmatpush1.bf16.msra.mxu1 %v5024_v7  ;;  %v6820_v7 = vld [vmem:[#allocation11_spill] sm:$0xff] }
 0x436   :  { %2203 = vmatprep.subr.bf16.mxu1 %v5232_v46 }
 0x438   :  { %1959 = vmatpush1.bf16.msra.mxu0 %v5235_v54 }
 0x439   :  { %1960 = vmatprep.subr.bf16.mxu0 %v5238_v58  ;;  %2204 = vmatpush1.bf16.msra.mxu1 %v5241_v44 }
 0x43a   :  { %2205 = vmatprep.subr.bf16.mxu1 %v5244_v53 }
 0x43c   :  { %1961 = vmatpush1.bf16.msra.mxu0 %v6810_v29 }
 0x43d   :  { %1962 = vmatprep.subr.bf16.mxu0 %v6811_v13  ;;  %2206 = vmatpush1.bf16.msra.mxu1 %v6812_v8 }
 0x43e   :  { %2207 = vmatprep.subr.bf16.mxu1 %v6813_v18 }
 0x440   :  { %1963 = vmatpush1.bf16.msra.mxu0 %v6814_v19 }
 0x441   :  { %1964 = vmatprep.subr.bf16.mxu0 %v6815_v47  ;;  %2208 = vmatpush1.bf16.msra.mxu1 %v6816_v27 }
 0x442   :  { %2209 = vmatprep.subr.bf16.mxu1 %v6817_v31 }
 0x444   :  { %1965 = vmatpush1.bf16.msra.mxu0 %v6818_v50 }
 0x445   :  { %1966 = vmatprep.subr.bf16.mxu0 %v6819_v32  ;;  %2210 = vmatpush1.bf16.msra.mxu1 %v6820_v7 }
 0x446   :  { %2211 = vmatprep.subr.bf16.mxu1 %v6821_v52 }
 0x448   :  { %1967 = vmatpush1.bf16.msra.mxu0 %v6822_v38 }
 0x449   :  { %1968 = vmatprep.subr.bf16.mxu0 %v6823_v24  ;;  %2212 = vmatpush1.bf16.msra.mxu1 %v6824_v45 }
 0x44a   :  { %2213 = vmatprep.subr.bf16.mxu1 %v6825_v35 }
 0x44c   :  { %1969 = vmatpush1.bf16.msra.mxu0 %v6826_v23 }
 0x44d   :  { %1970 = vmatprep.subr.bf16.mxu0 %v6827_v22  ;;  %2214 = vmatpush1.bf16.msra.mxu1 %v6828_v14 }
 0x44e   :  { %2215 = vmatprep.subr.bf16.mxu1 %v6829_v12  ;;  %v6876_v12 = vld [vmem:[#allocation53_spill] sm:$0xff] }
 0x450   :  { %1971 = vmatpush1.bf16.msra.mxu0 %v6830_v59  ;;  %v6875_v59 = vld [vmem:[#allocation52_spill] sm:$0xff] }
 0x451   :  { %1972 = vmatprep.subr.bf16.mxu0 %v6831_v34  ;;  %2216 = vmatpush1.bf16.msra.mxu1 %v6832_v28 }
 0x452   :  { %2217 = vmatprep.subr.bf16.mxu1 %v6833_v62 }
 0x454   :  { %1973 = vmatpush1.bf16.msra.mxu0 %v6834_v4 }
 0x455   :  { %1974 = vmatprep.subr.bf16.mxu0 %v6835_v49  ;;  %2218 = vmatpush1.bf16.msra.mxu1 %v6836_v40  ;;  %v6843_v40 = vld [vmem:[#allocation12_spill] sm:$0xff] }
 0x456   :  { %2219 = vmatprep.subr.bf16.mxu1 %v6837_v1  ;;  %v6844_v1 = vld [vmem:[#allocation32_spill] sm:$0xff] }
 0x458   :  { %1975 = vmatpush1.bf16.msra.mxu0 %v6838_v11  ;;  %v6845_v11 = vld [vmem:[#allocation34_spill] sm:$0xff] }
 0x459   :  { %1976 = vmatprep.subr.bf16.mxu0 %v5334_v17  ;;  %2220 = vmatpush1.bf16.msra.mxu1 %v5337_v6  ;;  %v6846_v17 = vld [vmem:[#allocation36_spill] sm:$0xff]  ;;  %v6847_v6 = vld [vmem:[#allocation37_spill] sm:$0xff] }
 0x45a   :  { %2221 = vmatprep.subr.bf16.mxu1 %v5340_v57  ;;  %v6848_v57 = vld [vmem:[#allocation38_spill] sm:$0xff] }
 0x45c   :  { %1977 = vmatpush1.bf16.msra.mxu0 %v6839_v33  ;;  %v6849_v33 = vld [vmem:[#allocation39_spill] sm:$0xff] }
 0x45d   :  { %2232 = vmatprep.subr.bf16.mxu0 %v6840_v5  ;;  %2222 = vmatpush1.bf16.msra.mxu1 %v6841_v26  ;;  %v6850_v5 = vld [vmem:[#allocation40_spill] sm:$0xff]  ;;  %v6851_v26 = vld [vmem:[#allocation41_spill] sm:$0xff] }
 0x45e   :  { %2273 = vmatprep.subr.bf16.mxu1 %v6842_v60  ;;  %v6852_v60 = vld [vmem:[#allocation42_spill] sm:$0xff] }
 0x45f   :  { %1979 = vmatmul.mubr.bf16.vlgmr.msra.gmra.mrb[28].mxu0 %v5468_v3  ;;  %v6853_v3 = vld [vmem:[#allocation43_spill] sm:$0xff] }
 0x460   :  { %2233 = vmatpush1.bf16.msra.mxu0 %v6843_v40  ;;  %v6854_v40 = vld [vmem:[#allocation44_spill] sm:$0xff] }
 0x461   :  { %2234 = vmatprep.subr.bf16.mxu0 %v6844_v1  ;;  %v6855_v1 = vld [vmem:[#allocation45_spill] sm:$0xff] }
 0x464   :  { %2235 = vmatpush1.bf16.msra.mxu0 %v6845_v11  ;;  %v6856_v11 = vld [vmem:[#allocation46_spill] sm:$0xff] }
 0x465   :  { %2236 = vmatprep.subr.bf16.mxu0 %v6846_v17  ;;  %v6857_v17 = vld [vmem:[#allocation73_spill] sm:$0xff] }
 0x468   :  { %2237 = vmatpush1.bf16.msra.mxu0 %v6847_v6  ;;  %v6858_v6 = vld [vmem:[#allocation74_spill] sm:$0xff] }
 0x469   :  { %2238 = vmatprep.subr.bf16.mxu0 %v6848_v57  ;;  %v6859_v57 = vld [vmem:[#allocation75_spill] sm:$0xff] }
 0x46c   :  { %2239 = vmatpush1.bf16.msra.mxu0 %v6849_v33  ;;  %v6860_v33 = vld [vmem:[#allocation76_spill] sm:$0xff] }
 0x46d   :  { %2240 = vmatprep.subr.bf16.mxu0 %v6850_v5  ;;  %v6861_v5 = vld [vmem:[#allocation77_spill] sm:$0xff] }
 0x470   :  { %2241 = vmatpush1.bf16.msra.mxu0 %v6851_v26  ;;  %v6862_v26 = vld [vmem:[#allocation78_spill] sm:$0xff] }
 0x471   :  { %2242 = vmatprep.subr.bf16.mxu0 %v6852_v60  ;;  %v6863_v60 = vld [vmem:[#allocation79_spill] sm:$0xff] }
 0x474   :  { %2243 = vmatpush1.bf16.msra.mxu0 %v6853_v3  ;;  %v6864_v3 = vld [vmem:[#allocation80_spill] sm:$0xff] }
 0x475   :  { %2244 = vmatprep.subr.bf16.mxu0 %v6854_v40  ;;  %v6865_v40 = vld [vmem:[#allocation81_spill] sm:$0xff] }
 0x478   :  { %2245 = vmatpush1.bf16.msra.mxu0 %v6855_v1  ;;  %v6866_v1 = vld [vmem:[#allocation82_spill] sm:$0xff] }
 0x479   :  { %2246 = vmatprep.subr.bf16.mxu0 %v6856_v11  ;;  %v6867_v11 = vld [vmem:[#allocation83_spill] sm:$0xff] }
 0x47c   :  { %2247 = vmatpush1.bf16.msra.mxu0 %v6857_v17  ;;  %v6868_v17 = vld [vmem:[#allocation84_spill] sm:$0xff] }
 0x47d   :  { %2248 = vmatprep.subr.bf16.mxu0 %v6858_v6  ;;  %v6869_v6 = vld [vmem:[#allocation85_spill] sm:$0xff] }
 0x480   :  { %2249 = vmatpush1.bf16.msra.mxu0 %v6859_v57  ;;  %v6870_v57 = vld [vmem:[#allocation86_spill] sm:$0xff] }
 0x481   :  { %2250 = vmatprep.subr.bf16.mxu0 %v6860_v33  ;;  %v6871_v33 = vld [vmem:[#allocation87_spill] sm:$0xff] }
 0x484   :  { %2251 = vmatpush1.bf16.msra.mxu0 %v6861_v5  ;;  %v6872_v5 = vld [vmem:[#allocation88_spill] sm:$0xff] }
 0x485   :  { %2252 = vmatprep.subr.bf16.mxu0 %v6862_v26  ;;  %v6873_v26 = vld [vmem:[#allocation89_spill] sm:$0xff] }
 0x488   :  { %2253 = vmatpush1.bf16.msra.mxu0 %v6863_v60  ;;  %v6874_v60 = vld [vmem:[#allocation47_spill] sm:$0xff] }
 0x489   :  { %2254 = vmatprep.subr.bf16.mxu0 %v6864_v3 }
 0x48c   :  { %2255 = vmatpush1.bf16.msra.mxu0 %v6865_v40 }
 0x48d   :  { %2256 = vmatprep.subr.bf16.mxu0 %v6866_v1 }
 0x490   :  { %2257 = vmatpush1.bf16.msra.mxu0 %v6867_v11 }
 0x491   :  { %2258 = vmatprep.subr.bf16.mxu0 %v6868_v17 }
 0x494   :  { %2259 = vmatpush1.bf16.msra.mxu0 %v6869_v6 }
 0x495   :  { %2260 = vmatprep.subr.bf16.mxu0 %v6870_v57 }
 0x498   :  { %2261 = vmatpush1.bf16.msra.mxu0 %v6871_v33 }
 0x499   :  { %2262 = vmatprep.subr.bf16.mxu0 %v6872_v5 }
 0x49c   :  { %2263 = vmatpush1.bf16.msra.mxu0 %v6873_v26 }
 0x49d   :  { %2514 = vmatprep.subr.bf16.mxu0 %v6874_v60 }
 0x4f2   :  { %v1898_v3 = vpop.f32.mrb[24].mxu0  ;;  %v1939_v40 = vpop.f32.mrb[24].mxu1 }
 0x4f3   :  { %v1900_v49 = vpop.f32.mrb[25].mxu0  ;;  %v1941_v1 = vpop.f32.mrb[25].mxu1  ;;  %v1989_v28 = vrot.slane %v1898_v3, 5  ;;  %v1991_v6 = vrot.slane %v1898_v3, 6  ;;  %v2029_v3 = vrot.slane %v1939_v40, 6 }
 0x4f4   :  { %v1902_v4 = vpop.f32.mrb[26].mxu0  ;;  %v1943_v11 = vpop.f32.mrb[26].mxu1  ;;  %v1990_v34 = vrot.slane %v1900_v49, 5  ;;  %v1992_v57 = vrot.slane %v1900_v49, 6 }
 0x4f5   :  { %v1903_v62 = vpop.f32.mrb[27].mxu0  ;;  %v1944_v17 = vpop.f32.mrb[27].mxu1  ;;  %v1997_v33 = vadd.f32 %v1989_v28, %v4879_v55  ;;  %v1999_v5 = vadd.f32 %v1991_v6, %v6875_v59  ;;  %v2028_v6 = vrot.slane %v1941_v1, 5 }
 0x4f6   :  { %v1998_v26 = vadd.f32 %v1990_v34, %v6745_v9  ;;  %v2000_v60 = vadd.f32 %v1992_v57, %v6876_v12  ;;  %v2027_v17 = vrot.slane %v1939_v40, 5  ;;  %v2030_v34 = vrot.slane %v1941_v1, 6  ;;  %v6877_v9 = vld [vmem:[#allocation54_spill] sm:$0xff] }
 0x4f7   :  { %v3624_v14 = vmul.f32 -1.442695, %v1997_v33  ;;  %v3626_v22 = vmul.f32 -1.442695, %v1999_v5  ;;  %v6878_v5 = vld [vmem:[#allocation56_spill] sm:$0xff] }
 0x4f8   :  { %v3625_v23 = vmul.f32 -1.442695, %v1998_v26  ;;  %v3627_v35 = vmul.f32 -1.442695, %v2000_v60  ;;  %v2035_v57 = vadd.f32 %v2027_v17, %v6877_v9  ;;  %v2037_v26 = vadd.f32 %v2029_v3, %v6878_v5 }
 0x4f9   :  { %3952 = vpow2.f32 %v3624_v14 }
 0x4fa   :  { %3954 = vpow2.f32 %v3626_v22  ;;  %v6879_v22 = vld [vmem:[#allocation55_spill] sm:$0xff]  ;;  %v3628_v12 = vmul.f32 -1.442695, %v2035_v57  ;;  %v3630_v40 = vmul.f32 -1.442695, %v2037_v26 }
 0x4fb   :  { %3956 = vpow2.f32 %v3625_v23  ;;  %v2036_v23 = vadd.f32 %v2028_v6, %v6879_v22  ;;  %v6883_v22 = vld [vmem:[#allocation61_spill] sm:$0xff] }
 0x4fc   :  { %3958 = vpow2.f32 %v3627_v35  ;;  %v6880_v35 = vld [vmem:[#allocation59_spill] sm:$0xff] }
 0x4fd   :  { %v2038_v14 = vadd.f32 %v2030_v34, %v6880_v35 }
 0x4ff   :  { %v3631_v55 = vmul.f32 -1.442695, %v2038_v14 }
 0x503   :  { %v3953_v62 = vpop.eup %3952 }
 0x504   :  { %v3955_v4 = vpop.eup %3954  ;;  %v2013_v11 = vadd.f32 1.0, %v3953_v62  ;;  %v3629_v62 = vmul.f32 -1.442695, %v2036_v23 }
 0x505   :  { %v3957_v49 = vpop.eup %3956  ;;  %v2015_v59 = vadd.f32 1.0, %v3955_v4  ;;  %v6881_v4 = vld [vmem:[#allocation57_spill] sm:$0xff] }
 0x506   :  { %v3959_v28 = vpop.eup %3958  ;;  %v2014_v33 = vadd.f32 1.0, %v3957_v49  ;;  %3960 = vrcp.f32 %v2013_v11 }
 0x507   :  { %v2016_v60 = vadd.f32 1.0, %v3959_v28  ;;  %3962 = vrcp.f32 %v2015_v59  ;;  %v6882_v28 = vld [vmem:[#allocation58_spill] sm:$0xff] }
 0x508   :  { %3964 = vrcp.f32 %v2014_v33 }
 0x509   :  { %3966 = vrcp.f32 %v2016_v60 }
 0x50a   :  { %3968 = vpow2.f32 %v3628_v12 }
 0x50b   :  { %3970 = vpow2.f32 %v3630_v40 }
 0x50c   :  { %3972 = vpow2.f32 %v3629_v62 }
 0x50d   :  { %3974 = vpow2.f32 %v3631_v55 }
 0x510   :  { %v3961_v3 = vpop.eup %3960 }
 0x511   :  { %v3963_v6 = vpop.eup %3962 }
 0x512   :  { %v3965_v26 = vpop.eup %3964 }
 0x513   :  { %v3967_v14 = vpop.eup %3966 }
 0x532   :  { %v1980_v1 = vpop.f32.mrb[28].mxu0 }
 0x533   :  { %v2063_v17 = vadd.f32 %v1980_v1, %v6881_v4  ;;  %v1982_v49 = vpop.f32.mrb[29].mxu0  ;;  %v3969_v4 = vpop.eup %3968 }
 0x534   :  { %v2064_v11 = vadd.f32 %v1982_v49, %v6882_v28  ;;  %v1984_v59 = vpop.f32.mrb[30].mxu0  ;;  %v3971_v5 = vpop.eup %3970 }
 0x535   :  { %v2067_v34 = vrot.slane %v2063_v17, 5  ;;  %v2069_v57 = vrot.slane %v2063_v17, 6  ;;  %v1985_v33 = vpop.f32.mrb[31].mxu0  ;;  %v6884_v59 = vld [vmem:[#allocation63_spill] sm:$0xff]  ;;  %v3973_v17 = vpop.eup %3972 }
 0x536   :  { %v2068_v60 = vrot.slane %v2064_v11, 5  ;;  %v2070_v23 = vrot.slane %v2064_v11, 6  ;;  %v3975_v33 = vpop.eup %3974  ;;  %v2051_v11 = vadd.f32 1.0, %v3969_v4 }
 0x537   :  { %v2075_v12 = vmul.f32 %v3961_v3, %v2067_v34  ;;  %v2077_v40 = vmul.f32 %v3963_v6, %v2069_v57  ;;  %v2053_v3 = vadd.f32 1.0, %v3971_v5  ;;  %v2052_v6 = vadd.f32 1.0, %v3973_v17 }
 0x538   :  { %v2076_v62 = vmul.f32 %v3965_v26, %v2068_v60  ;;  %v2078_v35 = vmul.f32 %v3967_v14, %v2070_v23  ;;  %v2054_v34 = vadd.f32 1.0, %v3975_v33 }
 0x539   :  { %v2079_v55 = vadd.f32 %v2075_v12, %v6806_v36  ;;  %v2081_v1 = vadd.f32 %v2077_v40, %v6807_v43 }
 0x53a   :  { %v2080_v49 = vadd.f32 %v2076_v62, %v6883_v22  ;;  %v2082_v28 = vadd.f32 %v2078_v35, %v6884_v59 }
 0x53b   :  { %3976 = vtanh.f32 %v2079_v55 }
 0x53c   :  { %3978 = vtanh.f32 %v2081_v1 }
 0x53d   :  { %3980 = vtanh.f32 %v2080_v49 }
 0x53e   :  { %3982 = vtanh.f32 %v2082_v28 }
 0x53f   :  { %3984 = vrcp.f32 %v2051_v11 }
 0x540   :  { %3986 = vrcp.f32 %v2053_v3 }
 0x541   :  { %3988 = vrcp.f32 %v2052_v6 }
 0x542   :  { %3990 = vrcp.f32 %v2054_v34 }
 0x545   :  { %v3977_v57 = vpop.eup %3976 }
 0x546   :  { %v3979_v26 = vpop.eup %3978  ;;  %v2091_v60 = vrot.slane %v3977_v57, 1 }
 0x547   :  { %v3981_v23 = vpop.eup %3980  ;;  %v2093_v35 = vrot.slane %v3979_v26, 1 }
 0x548   :  { %v3983_v14 = vpop.eup %3982  ;;  %v2099_v12 = vsub.f32 %v5438_v16, %v2091_v60  ;;  %v2092_v40 = vrot.slane %v3981_v23, 1 }
 0x549   :  { %v2101_v4 = vsub.f32 %v5440_v48, %v2093_v35  ;;  %v2094_v62 = vrot.slane %v3983_v14, 1  ;;  %v3985_v55 = vpop.eup %3984 }
 0x54a   :  { %v2107_v5 = vrot.slane %v2099_v12, 7  ;;  %v2100_v28 = vsub.f32 %v5442_v2, %v2092_v40  ;;  %v3987_v17 = vpop.eup %3986 }
 0x54b   :  { %v2109_v1 = vrot.slane %v2101_v4, 7  ;;  %v2102_v49 = vsub.f32 %v5446_v61, %v2094_v62  ;;  %v3989_v3 = vpop.eup %3988 }
 0x54c   :  { %v2108_v33 = vrot.slane %v2100_v28, 7  ;;  %v2115_v11 = vmul.f32 %v3985_v55, %v2107_v5  ;;  %v3991_v59 = vpop.eup %3990 }
 0x54d   :  { %v2110_v6 = vrot.slane %v2102_v49, 7  ;;  %v2117_v34 = vmul.f32 %v3987_v17, %v2109_v1 }
 0x54e   :  { %v2116_v22 = vmul.f32 %v3989_v3, %v2108_v33  ;;  %v5587_v16 = vadd.f32 %v3977_v57, %v2115_v11 }
 0x54f   :  { %v2118_v60 = vmul.f32 %v3991_v59, %v2110_v6  ;;  %v5589_v48 = vadd.f32 %v3979_v26, %v2117_v34 }
 0x550   :  { %v5591_v35 = vadd.f32 %v3981_v23, %v2116_v22  ;;  %v2169_v2 = vpack.c.bf16 %v5587_v16, %v5587_v16 }
 0x551   :  { %v5595_v12 = vadd.f32 %v3983_v14, %v2118_v60  ;;  %v2171_v61 = vpack.c.bf16 %v5589_v48, %v5589_v48 }
 0x552   :  { %v2170_v40 = vpack.c.bf16 %v5591_v35, %v5591_v35  ;;  %v2127_v57 = vcombine.low %v5587_v16, %v5591_v35  ;;  %v2177_v4 = vunpack.c.l.b16 %v2169_v2 }
 0x553   :  { %v2172_v59 = vpack.c.bf16 %v5595_v12, %v5595_v12  ;;  %v2144_v22 = vcombine.low %v5589_v48, %v5595_v12  ;;  %v2179_v26 = vunpack.c.l.b16 %v2171_v61 }
 0x554   :  { %v2178_v23 = vunpack.c.l.b16 %v2170_v40  ;;  %v2134_v14 = vrot.slane %v2127_v57, %v4943_v39  ;;  %v2181_v62 = vrot.slane %v2177_v4, 3  ;;  %v5623_v57 = vld [vmem:[#allocation2] ss:$24 sps:$4 sm:$0xff]   ;;  %v5626_v4 = vld [vmem:[#allocation2 + $0x34] ss:$24 sps:$4 sm:$0xff]  }
 0x555   :  { %v2180_v5 = vunpack.c.l.b16 %v2172_v59  ;;  %v2151_v28 = vrot.slane %v2144_v22, %v4943_v39  ;;  %v2182_v55 = vrot.slane %v2179_v26, 2  ;;  %v5631_v59 = vld [vmem:[#allocation2 + $0x30] ss:$24 sps:$4 sm:$0xff]   ;;  %v5642_v22 = vld [vmem:[#allocation2 + $0x94] ss:$24 sps:$4 sm:$0xff]  }
 0x556   :  { %v2184_v1 = vrot.slane %v2178_v23, 3  ;;  %v2135_v49 = vcombine.high %v2134_v14, %v2134_v14  ;;  %v5722_v26 = vld [vmem:[#allocation2 + $0x68] ss:$24 sps:$4 sm:$0xff]   ;;  %v5725_v23 = vld [vmem:[#allocation2 + $0x9c] ss:$24 sps:$4 sm:$0xff]  }
 0x557   :  { %v2185_v17 = vrot.slane %v2180_v5, 2  ;;  %v2152_v33 = vcombine.high %v2151_v28, %v2151_v28  ;;  %v2183_v3 = vsel %vm1124_vm2, %v2182_v55, %v2181_v62  ;;  %6910 = vst [vmem:[#allocation49_spill] sm:$0xff] %v5722_v26  ;;  %6911 = vst [vmem:[#allocation23_spill] sm:$0xff] %v5725_v23  ;;  %v5728_v14 = vld [vmem:[#allocation2 + $0x98] ss:$24 sps:$4 sm:$0xff]  }
 0x558   :  { %v2142_v11 = vrot.slane %v2135_v49, %v4943_v39  ;;  %v5613_v40 = vpack.c.b16 %v2183_v3, %v2183_v3  ;;  %6912 = vst [vmem:[#allocation25_spill] sm:$0xff] %v5728_v14  ;;  %v5731_v62 = vld [vmem:[#allocation2 + $0xcc] ss:$24 sps:$4 sm:$0xff]   ;;  %v5734_v5 = vld [vmem:[#allocation2 + $0xc8] ss:$24 sps:$4 sm:$0xff]   ;;  %v6922_v3 = vld [vmem:[#allocation75_spill] sm:$0xff] }
 0x559   :  { %v2186_v6 = vsel %vm1124_vm2, %v2185_v17, %v2184_v1  ;;  %v2159_v34 = vrot.slane %v2152_v33, %v4943_v39  ;;  %6913 = vst [vmem:[#allocation50_spill] sm:$0xff] %v5731_v62  ;;  %6914 = vst [vmem:[#allocation27_spill] sm:$0xff] %v5734_v5  ;;  %v5737_v28 = vld [vmem:[#allocation2 + $0xfc] ss:$24 sps:$4 sm:$0xff]   ;;  %v5740_v55 = vld [vmem:[#allocation2 + $0xf8] ss:$24 sps:$4 sm:$0xff]  }
 0x55a   :  { %v2188_v60 = vpack.c.b16 %v2186_v6, %v2186_v6  ;;  %v2143_v2 = vcombine.high %v2142_v11, %v2142_v11  ;;  %6915 = vst [vmem:[#allocation30_spill] sm:$0xff] %v5737_v28  ;;  %6916 = vst [vmem:[#allocation10_spill] sm:$0xff] %v5740_v55  ;;  %v5743_v1 = vld [vmem:[#allocation2 + $0x12c] ss:$24 sps:$4 sm:$0xff]   ;;  %v5746_v49 = vld [vmem:[#allocation2 + $0x128] ss:$24 sps:$4 sm:$0xff]  }
 0x55b   :  { %v2160_v61 = vcombine.high %v2159_v34, %v2159_v34  ;;  %6917 = vst [vmem:[#allocation11_spill] sm:$0xff] %v5743_v1  ;;  %6918 = vst [vmem:[#allocation13_spill] sm:$0xff] %v5746_v49  ;;  %v5749_v17 = vld [vmem:[#allocation2 + $0x15c] ss:$24 sps:$4 sm:$0xff]   ;;  %v6920_v33 = vld [vmem:[#allocation73_spill] sm:$0xff] }
 0x55c   :  { %2223 = vmatprep.mubr.bf16.mxu1 %v2188_v60  ;;  %2264 = vmatprep.mubr.bf16.mxu0 %v2188_v60  ;;  %2164 = vst.msk [vmem:[#allocation5 + $0x3] ss:$8 sm:$0x3] %vm4965_vm6, %v2143_v2  ;;  %6919 = vst [vmem:[#allocation14_spill] sm:$0xff] %v5749_v17  ;;  %v6921_v11 = vld [vmem:[#allocation74_spill] sm:$0xff]  ;;  %v6923_v6 = vld [vmem:[#allocation76_spill] sm:$0xff] }
 0x55d   :  { %2167 = vst.msk [vmem:[#allocation5 + $0x13] ss:$8 sm:$0x3] %vm4965_vm6, %v2160_v61  ;;  %2224 = vmatmul.mubr.bf16.vlgmr.msra.gmra.mrb[28].mxu1 %v5613_v40  ;;  %2265 = vmatmul.mubr.bf16.vlgmr.msra.gmra.mrb[32].mxu0 %v5613_v40  ;;  %v6924_v34 = vld [vmem:[#allocation77_spill] sm:$0xff]  ;;  %v6926_v2 = vld [vmem:[#allocation79_spill] sm:$0xff]  ;;  %v6927_v61 = vld [vmem:[#allocation80_spill] sm:$0xff] }
 0x55e   :  { %2274 = vmatpush1.bf16.msra.mxu1 %v5185_v63  ;;  %2305 = vmatprep.mubr.bf16.mxu1 %v2188_v60  ;;  %v5634_v63 = vld [vmem:[#allocation2 + $0x64] ss:$24 sps:$4 sm:$0xff]   ;;  %v6925_v60 = vld [vmem:[#allocation78_spill] sm:$0xff] }
 0x55f   :  { %2275 = vmatprep.subr.bf16.mxu1 %v5188_v56  ;;  %2515 = vmatpush1.bf16.msra.mxu0 %v5623_v57  ;;  %v5639_v56 = vld [vmem:[#allocation2 + $0x60] ss:$24 sps:$4 sm:$0xff]  }
 0x560   :  { %2516 = vmatprep.subr.bf16.mxu0 %v5626_v4 }
 0x562   :  { %2276 = vmatpush1.bf16.msra.mxu1 %v5193_v41  ;;  %v5647_v41 = vld [vmem:[#allocation2 + $0x90] ss:$24 sps:$4 sm:$0xff]  }
 0x563   :  { %2277 = vmatprep.subr.bf16.mxu1 %v5196_v21  ;;  %2517 = vmatpush1.bf16.msra.mxu0 %v5631_v59  ;;  %v5650_v21 = vld [vmem:[#allocation2 + $0xc4] ss:$24 sps:$4 sm:$0xff]  }
 0x564   :  { %2518 = vmatprep.subr.bf16.mxu0 %v5634_v63 }
 0x566   :  { %2278 = vmatpush1.bf16.msra.mxu1 %v5201_v15  ;;  %v5655_v15 = vld [vmem:[#allocation2 + $0xc0] ss:$24 sps:$4 sm:$0xff]  }
 0x567   :  { %2279 = vmatprep.subr.bf16.mxu1 %v5204_v20  ;;  %2519 = vmatpush1.bf16.msra.mxu0 %v5639_v56  ;;  %v5658_v20 = vld [vmem:[#allocation2 + $0xf4] ss:$24 sps:$4 sm:$0xff]  }
 0x568   :  { %2520 = vmatprep.subr.bf16.mxu0 %v5642_v22 }
 0x56a   :  { %2280 = vmatpush1.bf16.msra.mxu1 %v5209_v0  ;;  %v5663_v0 = vld [vmem:[#allocation2 + $0xf0] ss:$24 sps:$4 sm:$0xff]  }
 0x56b   :  { %2281 = vmatprep.subr.bf16.mxu1 %v5212_v51  ;;  %2521 = vmatpush1.bf16.msra.mxu0 %v5647_v41  ;;  %v6885_v51 = vld [vmem:[#allocation17_spill] sm:$0xff] }
 0x56c   :  { %2522 = vmatprep.subr.bf16.mxu0 %v5650_v21 }
 0x56e   :  { %2282 = vmatpush1.bf16.msra.mxu1 %v5217_v10  ;;  %v6886_v10 = vld [vmem:[#allocation18_spill] sm:$0xff] }
 0x56f   :  { %2283 = vmatprep.subr.bf16.mxu1 %v5220_v30  ;;  %2523 = vmatpush1.bf16.msra.mxu0 %v5655_v15  ;;  %v6887_v30 = vld [vmem:[#allocation20_spill] sm:$0xff] }
 0x570   :  { %2524 = vmatprep.subr.bf16.mxu0 %v5658_v20 }
 0x572   :  { %2284 = vmatpush1.bf16.msra.mxu1 %v5225_v37  ;;  %v6888_v37 = vld [vmem:[#allocation22_spill] sm:$0xff] }
 0x573   :  { %2285 = vmatprep.subr.bf16.mxu1 %v5228_v42  ;;  %2525 = vmatpush1.bf16.msra.mxu0 %v5663_v0  ;;  %v6889_v42 = vld [vmem:[#allocation24_spill] sm:$0xff] }
 0x574   :  { %2526 = vmatprep.subr.bf16.mxu0 %v5232_v46  ;;  %v6890_v46 = vld [vmem:[#allocation26_spill] sm:$0xff] }
 0x576   :  { %2286 = vmatpush1.bf16.msra.mxu1 %v5235_v54  ;;  %v6891_v54 = vld [vmem:[#allocation28_spill] sm:$0xff] }
 0x577   :  { %2287 = vmatprep.subr.bf16.mxu1 %v5238_v58  ;;  %2527 = vmatpush1.bf16.msra.mxu0 %v5241_v44  ;;  %v6892_v58 = vld [vmem:[#allocation29_spill] sm:$0xff]  ;;  %v6893_v44 = vld [vmem:[#allocation31_spill] sm:$0xff] }
 0x578   :  { %2528 = vmatprep.subr.bf16.mxu0 %v5244_v53  ;;  %v6894_v53 = vld [vmem:[#allocation33_spill] sm:$0xff] }
 0x57a   :  { %2288 = vmatpush1.bf16.msra.mxu1 %v6810_v29  ;;  %v6895_v29 = vld [vmem:[#allocation35_spill] sm:$0xff] }
 0x57b   :  { %2289 = vmatprep.subr.bf16.mxu1 %v6811_v13  ;;  %2529 = vmatpush1.bf16.msra.mxu0 %v6812_v8  ;;  %v6896_v13 = vld [vmem:[#allocation64_spill] sm:$0xff]  ;;  %v6897_v8 = vld [vmem:[#allocation65_spill] sm:$0xff] }
 0x57c   :  { %2530 = vmatprep.subr.bf16.mxu0 %v6813_v18  ;;  %v6898_v18 = vld [vmem:[#allocation66_spill] sm:$0xff] }
 0x57e   :  { %2290 = vmatpush1.bf16.msra.mxu1 %v6814_v19  ;;  %v6899_v19 = vld [vmem:[#allocation67_spill] sm:$0xff] }
 0x57f   :  { %2291 = vmatprep.subr.bf16.mxu1 %v6815_v47  ;;  %2531 = vmatpush1.bf16.msra.mxu0 %v6816_v27  ;;  %v6900_v47 = vld [vmem:[#allocation68_spill] sm:$0xff]  ;;  %v6901_v27 = vld [vmem:[#allocation69_spill] sm:$0xff] }
 0x580   :  { %2532 = vmatprep.subr.bf16.mxu0 %v6817_v31  ;;  %v6902_v31 = vld [vmem:[#allocation70_spill] sm:$0xff] }
 0x582   :  { %2292 = vmatpush1.bf16.msra.mxu1 %v6818_v50  ;;  %v5704_v50 = vld [vmem:[#allocation2 + $0xc] ss:$24 sps:$4 sm:$0xff]  }
 0x583   :  { %2293 = vmatprep.subr.bf16.mxu1 %v6819_v32  ;;  %2533 = vmatpush1.bf16.msra.mxu0 %v6820_v7  ;;  %6903 = vst [vmem:[#allocation60_spill] sm:$0xff] %v5704_v50  ;;  %v6904_v32 = vld [vmem:[#allocation71_spill] sm:$0xff]  ;;  %v6905_v7 = vld [vmem:[#allocation72_spill] sm:$0xff] }
 0x584   :  { %2534 = vmatprep.subr.bf16.mxu0 %v6821_v52  ;;  %v5710_v52 = vld [vmem:[#allocation2 + $0x8] ss:$24 sps:$4 sm:$0xff]  }
 0x585   :  { %6906 = vst [vmem:[#allocation62_spill] sm:$0xff] %v5710_v52 }
 0x586   :  { %2294 = vmatpush1.bf16.msra.mxu1 %v6822_v38  ;;  %v5713_v38 = vld [vmem:[#allocation2 + $0x3c] ss:$24 sps:$4 sm:$0xff]  }
 0x587   :  { %2295 = vmatprep.subr.bf16.mxu1 %v6823_v24  ;;  %2535 = vmatpush1.bf16.msra.mxu0 %v6824_v45  ;;  %6907 = vst [vmem:[#allocation19_spill] sm:$0xff] %v5713_v38  ;;  %v5716_v24 = vld [vmem:[#allocation2 + $0x38] ss:$24 sps:$4 sm:$0xff]   ;;  %v5719_v45 = vld [vmem:[#allocation2 + $0x6c] ss:$24 sps:$4 sm:$0xff]  }
 0x588   :  { %2536 = vmatprep.subr.bf16.mxu0 %v6885_v51  ;;  %6908 = vst [vmem:[#allocation21_spill] sm:$0xff] %v5716_v24  ;;  %6909 = vst [vmem:[#allocation48_spill] sm:$0xff] %v5719_v45  ;;  %v6929_v51 = vld [vmem:[#allocation82_spill] sm:$0xff] }
 0x58a   :  { %2296 = vmatpush1.bf16.msra.mxu1 %v6886_v10  ;;  %v6930_v10 = vld [vmem:[#allocation83_spill] sm:$0xff] }
 0x58b   :  { %2297 = vmatprep.subr.bf16.mxu1 %v6887_v30  ;;  %2537 = vmatpush1.bf16.msra.mxu0 %v6888_v37  ;;  %v6931_v30 = vld [vmem:[#allocation84_spill] sm:$0xff]  ;;  %v6932_v37 = vld [vmem:[#allocation85_spill] sm:$0xff] }
 0x58c   :  { %2538 = vmatprep.subr.bf16.mxu0 %v6889_v42  ;;  %v6933_v42 = vld [vmem:[#allocation86_spill] sm:$0xff] }
 0x58e   :  { %2298 = vmatpush1.bf16.msra.mxu1 %v6890_v46  ;;  %v6934_v46 = vld [vmem:[#allocation87_spill] sm:$0xff] }
 0x58f   :  { %2299 = vmatprep.subr.bf16.mxu1 %v6891_v54  ;;  %2539 = vmatpush1.bf16.msra.mxu0 %v6892_v58  ;;  %v6935_v54 = vld [vmem:[#allocation88_spill] sm:$0xff]  ;;  %v6936_v58 = vld [vmem:[#allocation89_spill] sm:$0xff] }
 0x590   :  { %2540 = vmatprep.subr.bf16.mxu0 %v6893_v44  ;;  %v5769_v44 = vld [vmem:[#allocation2 + $0x4] ss:$24 sps:$4 sm:$0xff]  }
 0x592   :  { %2300 = vmatpush1.bf16.msra.mxu1 %v6894_v53 }
 0x593   :  { %2301 = vmatprep.subr.bf16.mxu1 %v6895_v29  ;;  %2541 = vmatpush1.bf16.msra.mxu0 %v6896_v13 }
 0x594   :  { %2542 = vmatprep.subr.bf16.mxu0 %v6897_v8 }
 0x596   :  { %2302 = vmatpush1.bf16.msra.mxu1 %v6898_v18 }
 0x597   :  { %2303 = vmatprep.subr.bf16.mxu1 %v6899_v19  ;;  %2543 = vmatpush1.bf16.msra.mxu0 %v6900_v47 }
 0x598   :  { %2544 = vmatprep.subr.bf16.mxu0 %v6901_v27 }
 0x59a   :  { %2304 = vmatpush1.bf16.msra.mxu1 %v6902_v31 }
 0x59b   :  { %2555 = vmatprep.subr.bf16.mxu1 %v5704_v50  ;;  %2545 = vmatpush1.bf16.msra.mxu0 %v6904_v32 }
 0x59c   :  { %2596 = vmatprep.subr.bf16.mxu0 %v6905_v7 }
 0x59d   :  { %2306 = vmatmul.mubr.bf16.vlgmr.msra.gmra.mrb[32].mxu1 %v5613_v40  ;;  %v6928_v40 = vld [vmem:[#allocation81_spill] sm:$0xff] }
 0x59e   :  { %2556 = vmatpush1.bf16.msra.mxu1 %v5710_v52 }
 0x59f   :  { %2557 = vmatprep.subr.bf16.mxu1 %v5713_v38 }
 0x5a2   :  { %2558 = vmatpush1.bf16.msra.mxu1 %v5716_v24 }
 0x5a3   :  { %2559 = vmatprep.subr.bf16.mxu1 %v5719_v45 }
 0x5a6   :  { %2560 = vmatpush1.bf16.msra.mxu1 %v5722_v26 }
 0x5a7   :  { %2561 = vmatprep.subr.bf16.mxu1 %v5725_v23 }
 0x5aa   :  { %2562 = vmatpush1.bf16.msra.mxu1 %v5728_v14 }
 0x5ab   :  { %2563 = vmatprep.subr.bf16.mxu1 %v5731_v62 }
 0x5ae   :  { %2564 = vmatpush1.bf16.msra.mxu1 %v5734_v5 }
 0x5af   :  { %2565 = vmatprep.subr.bf16.mxu1 %v5737_v28 }
 0x5b2   :  { %2566 = vmatpush1.bf16.msra.mxu1 %v5740_v55 }
 0x5b3   :  { %2567 = vmatprep.subr.bf16.mxu1 %v5743_v1 }
 0x5b6   :  { %2568 = vmatpush1.bf16.msra.mxu1 %v5746_v49 }
 0x5b7   :  { %2569 = vmatprep.subr.bf16.mxu1 %v5749_v17 }
 0x5ba   :  { %2570 = vmatpush1.bf16.msra.mxu1 %v6920_v33 }
 0x5bb   :  { %2571 = vmatprep.subr.bf16.mxu1 %v6921_v11  ;;  %v6937_v11 = vld [vmem:[#allocation8_spill] sm:$0xff] }
 0x5be   :  { %2572 = vmatpush1.bf16.msra.mxu1 %v6922_v3 }
 0x5bf   :  { %2573 = vmatprep.subr.bf16.mxu1 %v6923_v6  ;;  %v6938_v6 = vld [vmem:[#allocation52_spill] sm:$0xff] }
 0x5c2   :  { %2574 = vmatpush1.bf16.msra.mxu1 %v6924_v34 }
 0x5c3   :  { %2575 = vmatprep.subr.bf16.mxu1 %v6925_v60  ;;  %v6939_v60 = vld [vmem:[#allocation51_spill] sm:$0xff] }
 0x5c6   :  { %2576 = vmatpush1.bf16.msra.mxu1 %v6926_v2 }
 0x5c7   :  { %2577 = vmatprep.subr.bf16.mxu1 %v6927_v61  ;;  %v6940_v61 = vld [vmem:[#allocation53_spill] sm:$0xff] }
 0x5ca   :  { %2578 = vmatpush1.bf16.msra.mxu1 %v6928_v40 }
 0x5cb   :  { %2579 = vmatprep.subr.bf16.mxu1 %v6929_v51 }
 0x5ce   :  { %2580 = vmatpush1.bf16.msra.mxu1 %v6930_v10 }
 0x5cf   :  { %2581 = vmatprep.subr.bf16.mxu1 %v6931_v30 }
 0x5d2   :  { %2582 = vmatpush1.bf16.msra.mxu1 %v6932_v37 }
 0x5d3   :  { %2583 = vmatprep.subr.bf16.mxu1 %v6933_v42 }
 0x5d6   :  { %2584 = vmatpush1.bf16.msra.mxu1 %v6934_v46 }
 0x5d7   :  { %2585 = vmatprep.subr.bf16.mxu1 %v6935_v54 }
 0x5da   :  { %2586 = vmatpush1.bf16.msra.mxu1 %v6936_v58 }
 0x5db   :  { %2839 = vmatprep.subr.bf16.mxu1 %v5769_v44 }
 0x630   :  { %v2225_v53 = vpop.f32.mrb[28].mxu1  ;;  %v2266_v29 = vpop.f32.mrb[32].mxu0 }
 0x631   :  { %v2227_v13 = vpop.f32.mrb[29].mxu1  ;;  %v2268_v8 = vpop.f32.mrb[33].mxu0  ;;  %v2316_v31 = vrot.slane %v2225_v53, 4  ;;  %v2318_v32 = vrot.slane %v2225_v53, 5  ;;  %v2354_v54 = vrot.slane %v2266_v29, 4  ;;  %v2356_v53 = vrot.slane %v2266_v29, 5 }
 0x632   :  { %v2229_v18 = vpop.f32.mrb[30].mxu1  ;;  %v2270_v19 = vpop.f32.mrb[34].mxu0  ;;  %v2317_v7 = vrot.slane %v2227_v13, 4  ;;  %v2319_v33 = vrot.slane %v2227_v13, 5 }
 0x633   :  { %v2230_v47 = vpop.f32.mrb[31].mxu1  ;;  %v2271_v27 = vpop.f32.mrb[35].mxu0  ;;  %v2324_v3 = vadd.f32 %v2316_v31, %v6937_v11  ;;  %v2326_v34 = vadd.f32 %v2318_v32, %v6938_v6  ;;  %v2355_v19 = vrot.slane %v2268_v8, 4  ;;  %v2362_v31 = vadd.f32 %v2354_v54, %v6877_v9 }
 0x634   :  { %v2325_v2 = vadd.f32 %v2317_v7, %v6939_v60  ;;  %v2327_v40 = vadd.f32 %v2319_v33, %v6940_v61  ;;  %v2357_v27 = vrot.slane %v2268_v8, 5  ;;  %v6941_v7 = vld [vmem:[#allocation56_spill] sm:$0xff] }
 0x635   :  { %v3632_v51 = vmul.f32 -1.442695, %v2324_v3  ;;  %v3634_v10 = vmul.f32 -1.442695, %v2326_v34  ;;  %v2364_v33 = vadd.f32 %v2356_v53, %v6941_v7  ;;  %v6942_v34 = vld [vmem:[#allocation55_spill] sm:$0xff]  ;;  %v6945_v53 = vld [vmem:[#allocation58_spill] sm:$0xff] }
 0x636   :  { %v3633_v30 = vmul.f32 -1.442695, %v2325_v2  ;;  %v3635_v37 = vmul.f32 -1.442695, %v2327_v40  ;;  %v2363_v2 = vadd.f32 %v2355_v19, %v6942_v34  ;;  %v6943_v40 = vld [vmem:[#allocation59_spill] sm:$0xff] }
 0x637   :  { %3992 = vpow2.f32 %v3632_v51  ;;  %v2365_v51 = vadd.f32 %v2357_v27, %v6943_v40  ;;  %v3638_v29 = vmul.f32 -1.442695, %v2364_v33  ;;  %v6946_v40 = vld [vmem:[#allocation61_spill] sm:$0xff] }
 0x638   :  { %3994 = vpow2.f32 %v3634_v10  ;;  %v3636_v10 = vmul.f32 -1.442695, %v2362_v31 }
 0x639   :  { %3996 = vpow2.f32 %v3633_v30  ;;  %v3637_v30 = vmul.f32 -1.442695, %v2363_v2 }
 0x63a   :  { %3998 = vpow2.f32 %v3635_v37  ;;  %v3639_v37 = vmul.f32 -1.442695, %v2365_v51 }
 0x641   :  { %v3993_v42 = vpop.eup %3992 }
 0x642   :  { %v3995_v46 = vpop.eup %3994  ;;  %v2340_v18 = vadd.f32 1.0, %v3993_v42  ;;  %v6944_v42 = vld [vmem:[#allocation57_spill] sm:$0xff] }
 0x643   :  { %v3997_v58 = vpop.eup %3996  ;;  %v2342_v47 = vadd.f32 1.0, %v3995_v46 }
 0x644   :  { %v3999_v13 = vpop.eup %3998  ;;  %v2341_v32 = vadd.f32 1.0, %v3997_v58  ;;  %4000 = vrcp.f32 %v2340_v18 }
 0x645   :  { %v2343_v3 = vadd.f32 1.0, %v3999_v13  ;;  %4002 = vrcp.f32 %v2342_v47 }
 0x646   :  { %4004 = vrcp.f32 %v2341_v32 }
 0x647   :  { %4006 = vrcp.f32 %v2343_v3 }
 0x648   :  { %4008 = vpow2.f32 %v3636_v10 }
 0x649   :  { %4010 = vpow2.f32 %v3638_v29 }
 0x64a   :  { %4012 = vpow2.f32 %v3637_v30 }
 0x64b   :  { %4014 = vpow2.f32 %v3639_v37 }
 0x64e   :  { %v4001_v58 = vpop.eup %4000 }
 0x64f   :  { %v4003_v19 = vpop.eup %4002 }
 0x650   :  { %v4005_v32 = vpop.eup %4004 }
 0x651   :  { %v4007_v2 = vpop.eup %4006 }
 0x670   :  { %v2307_v8 = vpop.f32.mrb[32].mxu1 }
 0x671   :  { %v2390_v46 = vadd.f32 %v2307_v8, %v6944_v42  ;;  %v2309_v54 = vpop.f32.mrb[33].mxu1  ;;  %v4009_v42 = vpop.eup %4008 }
 0x672   :  { %v2391_v13 = vadd.f32 %v2309_v54, %v6945_v53  ;;  %v2311_v18 = vpop.f32.mrb[34].mxu1  ;;  %v4011_v34 = vpop.eup %4010 }
 0x673   :  { %v2394_v47 = vrot.slane %v2390_v46, 4  ;;  %v2396_v27 = vrot.slane %v2390_v46, 5  ;;  %v2312_v31 = vpop.f32.mrb[35].mxu1  ;;  %v6947_v18 = vld [vmem:[#allocation63_spill] sm:$0xff]  ;;  %v4013_v46 = vpop.eup %4012 }
 0x674   :  { %v2395_v33 = vrot.slane %v2391_v13, 4  ;;  %v2397_v3 = vrot.slane %v2391_v13, 5  ;;  %v4015_v31 = vpop.eup %4014  ;;  %v2378_v13 = vadd.f32 1.0, %v4009_v42 }
 0x675   :  { %v2402_v51 = vmul.f32 %v4001_v58, %v2394_v47  ;;  %v2404_v10 = vmul.f32 %v4003_v19, %v2396_v27  ;;  %v2380_v58 = vadd.f32 1.0, %v4011_v34  ;;  %v2379_v19 = vadd.f32 1.0, %v4013_v46 }
 0x676   :  { %v2403_v29 = vmul.f32 %v4005_v32, %v2395_v33  ;;  %v2405_v30 = vmul.f32 %v4007_v2, %v2397_v3  ;;  %v2381_v47 = vadd.f32 1.0, %v4015_v31 }
 0x677   :  { %v2406_v37 = vadd.f32 %v2402_v51, %v6806_v36  ;;  %v2408_v8 = vadd.f32 %v2404_v10, %v6807_v43 }
 0x678   :  { %v2407_v54 = vadd.f32 %v2403_v29, %v6946_v40  ;;  %v2409_v53 = vadd.f32 %v2405_v30, %v6947_v18 }
 0x679   :  { %4016 = vtanh.f32 %v2406_v37 }
 0x67a   :  { %4018 = vtanh.f32 %v2408_v8 }
 0x67b   :  { %4020 = vtanh.f32 %v2407_v54 }
 0x67c   :  { %4022 = vtanh.f32 %v2409_v53 }
 0x67d   :  { %4024 = vrcp.f32 %v2378_v13 }
 0x67e   :  { %4026 = vrcp.f32 %v2380_v58 }
 0x67f   :  { %4028 = vrcp.f32 %v2379_v19 }
 0x680   :  { %4030 = vrcp.f32 %v2381_v47 }
 0x683   :  { %v4017_v27 = vpop.eup %4016 }
 0x684   :  { %v4019_v32 = vpop.eup %4018  ;;  %v2418_v33 = vrot.slane %v4017_v27, 1 }
 0x685   :  { %v4021_v3 = vpop.eup %4020  ;;  %v2420_v2 = vrot.slane %v4019_v32, 1 }
 0x686   :  { %v4023_v51 = vpop.eup %4022  ;;  %v2426_v10 = vsub.f32 %v5587_v16, %v2418_v33  ;;  %v2419_v29 = vrot.slane %v4021_v3, 1 }
 0x687   :  { %v2428_v42 = vsub.f32 %v5589_v48, %v2420_v2  ;;  %v2421_v30 = vrot.slane %v4023_v51, 1  ;;  %v4025_v37 = vpop.eup %4024 }
 0x688   :  { %v2434_v34 = vrot.slane %v2426_v10, 7  ;;  %v2427_v53 = vsub.f32 %v5591_v35, %v2419_v29  ;;  %v4027_v46 = vpop.eup %4026 }
 0x689   :  { %v2436_v8 = vrot.slane %v2428_v42, 7  ;;  %v2429_v54 = vsub.f32 %v5595_v12, %v2421_v30  ;;  %v4029_v58 = vpop.eup %4028 }
 0x68a   :  { %v2435_v31 = vrot.slane %v2427_v53, 7  ;;  %v2442_v13 = vmul.f32 %v4025_v37, %v2434_v34  ;;  %v4031_v18 = vpop.eup %4030 }
 0x68b   :  { %v2437_v19 = vrot.slane %v2429_v54, 7  ;;  %v2444_v47 = vmul.f32 %v4027_v46, %v2436_v8 }
 0x68c   :  { %v2443_v40 = vmul.f32 %v4029_v58, %v2435_v31  ;;  %v5790_v16 = vadd.f32 %v4017_v27, %v2442_v13 }
 0x68d   :  { %v2445_v33 = vmul.f32 %v4031_v18, %v2437_v19  ;;  %v5792_v48 = vadd.f32 %v4019_v32, %v2444_v47 }
 0x68e   :  { %v5794_v2 = vadd.f32 %v4021_v3, %v2443_v40  ;;  %v2492_v35 = vpack.c.bf16 %v5790_v16, %v5790_v16 }
 0x68f   :  { %v5798_v10 = vadd.f32 %v4023_v51, %v2445_v33  ;;  %v2494_v12 = vpack.c.bf16 %v5792_v48, %v5792_v48  ;;  %v5824_v33 = vld [vmem:[#allocation2 + $0x10] ss:$24 sps:$4 sm:$0xff]  }
 0x690   :  { %v2493_v29 = vpack.c.bf16 %v5794_v2, %v5794_v2  ;;  %v2454_v27 = vcombine.high %v5790_v16, %v5794_v2  ;;  %v2500_v42 = vunpack.c.l.b16 %v2492_v35  ;;  %v5827_v35 = vld [vmem:[#allocation2 + $0x44] ss:$24 sps:$4 sm:$0xff]  }
 0x691   :  { %v2495_v18 = vpack.c.bf16 %v5798_v10, %v5798_v10  ;;  %v2469_v40 = vcombine.high %v5792_v48, %v5798_v10  ;;  %v2502_v32 = vunpack.c.l.b16 %v2494_v12  ;;  %v5832_v12 = vld [vmem:[#allocation2 + $0x40] ss:$24 sps:$4 sm:$0xff]  }
 0x692   :  { %v2501_v3 = vunpack.c.l.b16 %v2493_v29  ;;  %v2461_v51 = vrot.slane %v2454_v27, %v4943_v39  ;;  %v2504_v30 = vrot.slane %v2500_v42, 4  ;;  %v5835_v29 = vld [vmem:[#allocation2 + $0x74] ss:$24 sps:$4 sm:$0xff]   ;;  %v5840_v27 = vld [vmem:[#allocation2 + $0x70] ss:$24 sps:$4 sm:$0xff]  }
 0x693   :  { %v2503_v34 = vunpack.c.l.b16 %v2495_v18  ;;  %v2476_v53 = vrot.slane %v2469_v40, %v4943_v39  ;;  %v2505_v37 = vrot.slane %v2502_v32, 3  ;;  %v5843_v42 = vld [vmem:[#allocation2 + $0xa4] ss:$24 sps:$4 sm:$0xff]   ;;  %v5848_v18 = vld [vmem:[#allocation2 + $0xa0] ss:$24 sps:$4 sm:$0xff]  }
 0x694   :  { %v2507_v8 = vrot.slane %v2501_v3, 4  ;;  %v2468_v54 = vrot.slane %v2461_v51, %v4943_v39  ;;  %v5851_v40 = vld [vmem:[#allocation2 + $0xd4] ss:$24 sps:$4 sm:$0xff]   ;;  %v5856_v32 = vld [vmem:[#allocation2 + $0xd0] ss:$24 sps:$4 sm:$0xff]  }
 0x695   :  { %v2508_v46 = vrot.slane %v2503_v34, 3  ;;  %v2483_v31 = vrot.slane %v2476_v53, %v4943_v39  ;;  %v2506_v13 = vsel %vm1124_vm2, %v2505_v37, %v2504_v30  ;;  %v5859_v3 = vld [vmem:[#allocation2 + $0x104] ss:$24 sps:$4 sm:$0xff]   ;;  %v5864_v51 = vld [vmem:[#allocation2 + $0x100] ss:$24 sps:$4 sm:$0xff]  }
 0x696   :  { %2487 = vst.msk [vmem:[#allocation5 + $0x4] ss:$8 sm:$0x3] %vm4965_vm6, %v2468_v54  ;;  %v5820_v47 = vpack.c.b16 %v2506_v13, %v2506_v13  ;;  %v5867_v30 = vld [vmem:[#allocation2 + $0x134] ss:$24 sps:$4 sm:$0xff]  }
 0x697   :  { %v2509_v58 = vsel %vm1124_vm2, %v2508_v46, %v2507_v8  ;;  %2490 = vst.msk [vmem:[#allocation5 + $0x14] ss:$8 sm:$0x3] %vm4965_vm6, %v2483_v31  ;;  %v5871_v34 = vld [vmem:[#allocation2 + $0x124] ss:$24 sps:$4 sm:$0xff]  }
 0x698   :  { %v2511_v19 = vpack.c.b16 %v2509_v58, %v2509_v58  ;;  %v5874_v53 = vld [vmem:[#allocation2 + $0x130] ss:$24 sps:$4 sm:$0xff]   ;;  %v5877_v37 = vld [vmem:[#allocation2 + $0x164] ss:$24 sps:$4 sm:$0xff]   ;;  %v5880_v8 = vld [vmem:[#allocation2 + $0x120] ss:$24 sps:$4 sm:$0xff]  }
 0x699   :  { %v5883_v54 = vld [vmem:[#allocation2 + $0x154] ss:$24 sps:$4 sm:$0xff]   ;;  %v5886_v46 = vld [vmem:[#allocation2 + $0x160] ss:$24 sps:$4 sm:$0xff]   ;;  %v5892_v13 = vld [vmem:[#allocation2 + $0x150] ss:$24 sps:$4 sm:$0xff]  }
 0x69a   :  { %2546 = vmatprep.mubr.bf16.mxu0 %v2511_v19  ;;  %2587 = vmatprep.mubr.bf16.mxu1 %v2511_v19  ;;  %6948 = vst [vmem:[#allocation15_spill] sm:$0xff] %v5883_v54  ;;  %6949 = vst [vmem:[#allocation16_spill] sm:$0xff] %v5886_v46  ;;  %v5889_v31 = vld [vmem:[#allocation2 + $0x194] ss:$24 sps:$4 sm:$0xff]   ;;  %v5895_v58 = vld [vmem:[#allocation2 + $0x184] ss:$24 sps:$4 sm:$0xff]  }
 0x69b   :  { %2547 = vmatmul.mubr.bf16.vlgmr.msra.gmra.mrb[36].mxu0 %v5820_v47  ;;  %2588 = vmatmul.mubr.bf16.vlgmr.msra.gmra.mrb[36].mxu1 %v5820_v47  ;;  %6950 = vst [vmem:[#allocation9_spill] sm:$0xff] %v5889_v31  ;;  %6951 = vst [vmem:[#allocation12_spill] sm:$0xff] %v5892_v13 }
 0x69c   :  { %2597 = vmatpush1.bf16.msra.mxu0 %v5824_v33  ;;  %2628 = vmatprep.mubr.bf16.mxu0 %v2511_v19  ;;  %6952 = vst [vmem:[#allocation32_spill] sm:$0xff] %v5895_v58  ;;  %v5898_v19 = vld [vmem:[#allocation2 + $0x190] ss:$24 sps:$4 sm:$0xff]  }
 0x69d   :  { %2598 = vmatprep.subr.bf16.mxu0 %v5827_v35  ;;  %2840 = vmatpush1.bf16.msra.mxu1 %v5623_v57  ;;  %6953 = vst [vmem:[#allocation34_spill] sm:$0xff] %v5898_v19 }
 0x69e   :  { %2841 = vmatprep.subr.bf16.mxu1 %v5626_v4 }
 0x6a0   :  { %2599 = vmatpush1.bf16.msra.mxu0 %v5832_v12 }
 0x6a1   :  { %2600 = vmatprep.subr.bf16.mxu0 %v5835_v29  ;;  %2842 = vmatpush1.bf16.msra.mxu1 %v5631_v59 }
 0x6a2   :  { %2843 = vmatprep.subr.bf16.mxu1 %v5634_v63 }
 0x6a4   :  { %2601 = vmatpush1.bf16.msra.mxu0 %v5840_v27 }
 0x6a5   :  { %2602 = vmatprep.subr.bf16.mxu0 %v5843_v42  ;;  %2844 = vmatpush1.bf16.msra.mxu1 %v5639_v56 }
 0x6a6   :  { %2845 = vmatprep.subr.bf16.mxu1 %v5642_v22 }
 0x6a8   :  { %2603 = vmatpush1.bf16.msra.mxu0 %v5848_v18 }
 0x6a9   :  { %2604 = vmatprep.subr.bf16.mxu0 %v5851_v40  ;;  %2846 = vmatpush1.bf16.msra.mxu1 %v5647_v41 }
 0x6aa   :  { %2847 = vmatprep.subr.bf16.mxu1 %v5650_v21 }
 0x6ac   :  { %2605 = vmatpush1.bf16.msra.mxu0 %v5856_v32 }
 0x6ad   :  { %2606 = vmatprep.subr.bf16.mxu0 %v5859_v3  ;;  %2848 = vmatpush1.bf16.msra.mxu1 %v5655_v15 }
 0x6ae   :  { %2849 = vmatprep.subr.bf16.mxu1 %v5658_v20 }
 0x6b0   :  { %2607 = vmatpush1.bf16.msra.mxu0 %v5864_v51 }
 0x6b1   :  { %2608 = vmatprep.subr.bf16.mxu0 %v5867_v30  ;;  %2850 = vmatpush1.bf16.msra.mxu1 %v5663_v0 }
 0x6b2   :  { %2851 = vmatprep.subr.bf16.mxu1 %v5871_v34 }
 0x6b4   :  { %2609 = vmatpush1.bf16.msra.mxu0 %v5874_v53 }
 0x6b5   :  { %2610 = vmatprep.subr.bf16.mxu0 %v5877_v37  ;;  %2852 = vmatpush1.bf16.msra.mxu1 %v5880_v8 }
 0x6b6   :  { %2853 = vmatprep.subr.bf16.mxu1 %v5883_v54  ;;  %v5901_v54 = vld [vmem:[#allocation2 + $0x1c4] ss:$24 sps:$4 sm:$0xff]  }
 0x6b7   :  { %6954 = vst [vmem:[#allocation36_spill] sm:$0xff] %v5901_v54 }
 0x6b8   :  { %2611 = vmatpush1.bf16.msra.mxu0 %v5886_v46  ;;  %v5904_v46 = vld [vmem:[#allocation2 + $0x180] ss:$24 sps:$4 sm:$0xff]  }
 0x6b9   :  { %2612 = vmatprep.subr.bf16.mxu0 %v5889_v31  ;;  %2854 = vmatpush1.bf16.msra.mxu1 %v5892_v13  ;;  %6955 = vst [vmem:[#allocation37_spill] sm:$0xff] %v5904_v46  ;;  %v5907_v31 = vld [vmem:[#allocation2 + $0x1b4] ss:$24 sps:$4 sm:$0xff]   ;;  %v5910_v13 = vld [vmem:[#allocation2 + $0x1c0] ss:$24 sps:$4 sm:$0xff]  }
 0x6ba   :  { %2855 = vmatprep.subr.bf16.mxu1 %v5895_v58  ;;  %6956 = vst [vmem:[#allocation38_spill] sm:$0xff] %v5907_v31  ;;  %6957 = vst [vmem:[#allocation39_spill] sm:$0xff] %v5910_v13  ;;  %v5913_v58 = vld [vmem:[#allocation2 + $0x1f4] ss:$24 sps:$4 sm:$0xff]  }
 0x6bb   :  { %6958 = vst [vmem:[#allocation40_spill] sm:$0xff] %v5913_v58 }
 0x6bc   :  { %2613 = vmatpush1.bf16.msra.mxu0 %v5898_v19  ;;  %v5916_v19 = vld [vmem:[#allocation2 + $0x1b0] ss:$24 sps:$4 sm:$0xff]  }
 0x6bd   :  { %2614 = vmatprep.subr.bf16.mxu0 %v5901_v54  ;;  %2856 = vmatpush1.bf16.msra.mxu1 %v5904_v46  ;;  %6959 = vst [vmem:[#allocation41_spill] sm:$0xff] %v5916_v19  ;;  %v5919_v54 = vld [vmem:[#allocation2 + $0x1e4] ss:$24 sps:$4 sm:$0xff]   ;;  %v5922_v46 = vld [vmem:[#allocation2 + $0x1f0] ss:$24 sps:$4 sm:$0xff]  }
 0x6be   :  { %2857 = vmatprep.subr.bf16.mxu1 %v5907_v31  ;;  %6960 = vst [vmem:[#allocation42_spill] sm:$0xff] %v5919_v54  ;;  %6961 = vst [vmem:[#allocation43_spill] sm:$0xff] %v5922_v46  ;;  %v5925_v31 = vld [vmem:[#allocation2 + $0x224] ss:$24 sps:$4 sm:$0xff]  }
 0x6bf   :  { %6962 = vst [vmem:[#allocation44_spill] sm:$0xff] %v5925_v31 }
 0x6c0   :  { %2615 = vmatpush1.bf16.msra.mxu0 %v5910_v13  ;;  %v5928_v13 = vld [vmem:[#allocation2 + $0x1e0] ss:$24 sps:$4 sm:$0xff]  }
 0x6c1   :  { %2616 = vmatprep.subr.bf16.mxu0 %v5913_v58  ;;  %2858 = vmatpush1.bf16.msra.mxu1 %v5916_v19  ;;  %6963 = vst [vmem:[#allocation45_spill] sm:$0xff] %v5928_v13  ;;  %v5931_v58 = vld [vmem:[#allocation2 + $0x214] ss:$24 sps:$4 sm:$0xff]   ;;  %v5934_v19 = vld [vmem:[#allocation2 + $0x220] ss:$24 sps:$4 sm:$0xff]  }
 0x6c2   :  { %2859 = vmatprep.subr.bf16.mxu1 %v5919_v54  ;;  %6964 = vst [vmem:[#allocation46_spill] sm:$0xff] %v5931_v58  ;;  %6965 = vst [vmem:[#allocation47_spill] sm:$0xff] %v5934_v19  ;;  %v5937_v54 = vld [vmem:[#allocation2 + $0x254] ss:$24 sps:$4 sm:$0xff]  }
 0x6c3   :  { %6966 = vst [vmem:[#allocation54_spill] sm:$0xff] %v5937_v54 }
 0x6c4   :  { %2617 = vmatpush1.bf16.msra.mxu0 %v5922_v46  ;;  %v5940_v46 = vld [vmem:[#allocation2 + $0x210] ss:$24 sps:$4 sm:$0xff]  }
 0x6c5   :  { %2618 = vmatprep.subr.bf16.mxu0 %v5925_v31  ;;  %2860 = vmatpush1.bf16.msra.mxu1 %v5928_v13  ;;  %6967 = vst [vmem:[#allocation17_spill] sm:$0xff] %v5940_v46  ;;  %v5943_v31 = vld [vmem:[#allocation2 + $0x244] ss:$24 sps:$4 sm:$0xff]   ;;  %v5946_v13 = vld [vmem:[#allocation2 + $0x250] ss:$24 sps:$4 sm:$0xff]  }
 0x6c6   :  { %2861 = vmatprep.subr.bf16.mxu1 %v5931_v58  ;;  %6968 = vst [vmem:[#allocation18_spill] sm:$0xff] %v5943_v31  ;;  %6969 = vst [vmem:[#allocation20_spill] sm:$0xff] %v5946_v13  ;;  %v5949_v58 = vld [vmem:[#allocation2 + $0x284] ss:$24 sps:$4 sm:$0xff]  }
 0x6c7   :  { %6970 = vst [vmem:[#allocation22_spill] sm:$0xff] %v5949_v58 }
 0x6c8   :  { %2619 = vmatpush1.bf16.msra.mxu0 %v5934_v19  ;;  %v5952_v19 = vld [vmem:[#allocation2 + $0x240] ss:$24 sps:$4 sm:$0xff]  }
 0x6c9   :  { %2620 = vmatprep.subr.bf16.mxu0 %v5937_v54  ;;  %2862 = vmatpush1.bf16.msra.mxu1 %v5940_v46  ;;  %6971 = vst [vmem:[#allocation24_spill] sm:$0xff] %v5952_v19  ;;  %v5955_v54 = vld [vmem:[#allocation2 + $0x274] ss:$24 sps:$4 sm:$0xff]   ;;  %v5958_v46 = vld [vmem:[#allocation2 + $0x280] ss:$24 sps:$4 sm:$0xff]  }
 0x6ca   :  { %2863 = vmatprep.subr.bf16.mxu1 %v5943_v31  ;;  %6972 = vst [vmem:[#allocation26_spill] sm:$0xff] %v5955_v54  ;;  %6973 = vst [vmem:[#allocation28_spill] sm:$0xff] %v5958_v46  ;;  %v5961_v31 = vld [vmem:[#allocation2 + $0x2b4] ss:$24 sps:$4 sm:$0xff]  }
 0x6cb   :  { %6974 = vst [vmem:[#allocation29_spill] sm:$0xff] %v5961_v31 }
 0x6cc   :  { %2621 = vmatpush1.bf16.msra.mxu0 %v5946_v13  ;;  %v5964_v13 = vld [vmem:[#allocation2 + $0x270] ss:$24 sps:$4 sm:$0xff]  }
 0x6cd   :  { %2622 = vmatprep.subr.bf16.mxu0 %v5949_v58  ;;  %2864 = vmatpush1.bf16.msra.mxu1 %v5952_v19  ;;  %6975 = vst [vmem:[#allocation31_spill] sm:$0xff] %v5964_v13  ;;  %v5967_v58 = vld [vmem:[#allocation2 + $0x2a4] ss:$24 sps:$4 sm:$0xff]   ;;  %v5970_v19 = vld [vmem:[#allocation2 + $0x2b0] ss:$24 sps:$4 sm:$0xff]  }
 0x6ce   :  { %2865 = vmatprep.subr.bf16.mxu1 %v5955_v54  ;;  %6976 = vst [vmem:[#allocation33_spill] sm:$0xff] %v5967_v58  ;;  %6977 = vst [vmem:[#allocation35_spill] sm:$0xff] %v5970_v19  ;;  %v5973_v54 = vld [vmem:[#allocation2 + $0x2e4] ss:$24 sps:$4 sm:$0xff]  }
 0x6d0   :  { %2623 = vmatpush1.bf16.msra.mxu0 %v5958_v46  ;;  %v5976_v46 = vld [vmem:[#allocation2 + $0x2a0] ss:$24 sps:$4 sm:$0xff]  }
 0x6d1   :  { %2624 = vmatprep.subr.bf16.mxu0 %v5961_v31  ;;  %2866 = vmatpush1.bf16.msra.mxu1 %v5964_v13  ;;  %v5979_v31 = vld [vmem:[#allocation2 + $0x2d4] ss:$24 sps:$4 sm:$0xff]   ;;  %v5982_v13 = vld [vmem:[#allocation2 + $0x2e0] ss:$24 sps:$4 sm:$0xff]  }
 0x6d2   :  { %2867 = vmatprep.subr.bf16.mxu1 %v5967_v58  ;;  %6978 = vst [vmem:[#allocation64_spill] sm:$0xff] %v5982_v13  ;;  %v5986_v58 = vld [vmem:[#allocation2 + $0x2d0] ss:$24 sps:$4 sm:$0xff]  }
 0x6d3   :  { %6979 = vst [vmem:[#allocation65_spill] sm:$0xff] %v5986_v58 }
 0x6d4   :  { %2625 = vmatpush1.bf16.msra.mxu0 %v5970_v19  ;;  %v5989_v19 = vld [vmem:[#allocation2 + $0x14] ss:$24 sps:$4 sm:$0xff]  }
 0x6d5   :  { %2626 = vmatprep.subr.bf16.mxu0 %v5973_v54  ;;  %2868 = vmatpush1.bf16.msra.mxu1 %v5976_v46  ;;  %6980 = vst [vmem:[#allocation66_spill] sm:$0xff] %v5989_v19 }
 0x6d6   :  { %2869 = vmatprep.subr.bf16.mxu1 %v5979_v31 }
 0x6d8   :  { %2627 = vmatpush1.bf16.msra.mxu0 %v5982_v13 }
 0x6d9   :  { %2880 = vmatprep.subr.bf16.mxu0 %v5704_v50  ;;  %2870 = vmatpush1.bf16.msra.mxu1 %v5986_v58 }
 0x6da   :  { %2921 = vmatprep.subr.bf16.mxu1 %v5989_v19 }
 0x6db   :  { %2629 = vmatmul.mubr.bf16.vlgmr.msra.gmra.mrb[40].mxu0 %v5820_v47  ;;  %v6007_v47 = vld [vmem:[#allocation2 + $0x158] ss:$24 sps:$4 sm:$0xff]  }
 0x6dc   :  { %2881 = vmatpush1.bf16.msra.mxu0 %v5710_v52  ;;  %6981 = vst [vmem:[#allocation67_spill] sm:$0xff] %v6007_v47 }
 0x6dd   :  { %2882 = vmatprep.subr.bf16.mxu0 %v5713_v38 }
 0x6e0   :  { %2883 = vmatpush1.bf16.msra.mxu0 %v5716_v24 }
 0x6e1   :  { %2884 = vmatprep.subr.bf16.mxu0 %v5719_v45 }
 0x6e4   :  { %2885 = vmatpush1.bf16.msra.mxu0 %v5722_v26 }
 0x6e5   :  { %2886 = vmatprep.subr.bf16.mxu0 %v5725_v23  ;;  %v6010_v23 = vld [vmem:[#allocation2 + $0x18c] ss:$24 sps:$4 sm:$0xff]  }
 0x6e6   :  { %6982 = vst [vmem:[#allocation68_spill] sm:$0xff] %v6010_v23 }
 0x6e8   :  { %2887 = vmatpush1.bf16.msra.mxu0 %v5728_v14 }
 0x6e9   :  { %2888 = vmatprep.subr.bf16.mxu0 %v5731_v62  ;;  %v6013_v62 = vld [vmem:[#allocation2 + $0x188] ss:$24 sps:$4 sm:$0xff]  }
 0x6ea   :  { %6983 = vst [vmem:[#allocation69_spill] sm:$0xff] %v6013_v62 }
 0x6ec   :  { %2889 = vmatpush1.bf16.msra.mxu0 %v5734_v5 }
 0x6ed   :  { %2890 = vmatprep.subr.bf16.mxu0 %v5737_v28  ;;  %v6016_v28 = vld [vmem:[#allocation2 + $0x1bc] ss:$24 sps:$4 sm:$0xff]  }
 0x6ee   :  { %6984 = vst [vmem:[#allocation70_spill] sm:$0xff] %v6016_v28 }
 0x6f0   :  { %2891 = vmatpush1.bf16.msra.mxu0 %v5740_v55 }
 0x6f1   :  { %2892 = vmatprep.subr.bf16.mxu0 %v5743_v1  ;;  %v6019_v1 = vld [vmem:[#allocation2 + $0x1b8] ss:$24 sps:$4 sm:$0xff]  }
 0x6f2   :  { %6985 = vst [vmem:[#allocation71_spill] sm:$0xff] %v6019_v1 }
 0x6f4   :  { %2893 = vmatpush1.bf16.msra.mxu0 %v5746_v49 }
 0x6f5   :  { %2894 = vmatprep.subr.bf16.mxu0 %v5749_v17  ;;  %v6022_v17 = vld [vmem:[#allocation2 + $0x1ec] ss:$24 sps:$4 sm:$0xff]  }
 0x6f6   :  { %6986 = vst [vmem:[#allocation72_spill] sm:$0xff] %v6022_v17 }
 0x6f8   :  { %2895 = vmatpush1.bf16.msra.mxu0 %v6007_v47  ;;  %v6025_v47 = vld [vmem:[#allocation2 + $0x1e8] ss:$24 sps:$4 sm:$0xff]  }
 0x6f9   :  { %2896 = vmatprep.subr.bf16.mxu0 %v6010_v23  ;;  %6987 = vst [vmem:[#allocation73_spill] sm:$0xff] %v6025_v47  ;;  %v6028_v23 = vld [vmem:[#allocation2 + $0x21c] ss:$24 sps:$4 sm:$0xff]  }
 0x6fa   :  { %6988 = vst [vmem:[#allocation74_spill] sm:$0xff] %v6028_v23 }
 0x6fc   :  { %2897 = vmatpush1.bf16.msra.mxu0 %v6013_v62  ;;  %v6031_v62 = vld [vmem:[#allocation2 + $0x218] ss:$24 sps:$4 sm:$0xff]  }
 0x6fd   :  { %2898 = vmatprep.subr.bf16.mxu0 %v6016_v28  ;;  %6989 = vst [vmem:[#allocation75_spill] sm:$0xff] %v6031_v62  ;;  %v6034_v28 = vld [vmem:[#allocation2 + $0x24c] ss:$24 sps:$4 sm:$0xff]  }
 0x6fe   :  { %6990 = vst [vmem:[#allocation76_spill] sm:$0xff] %v6034_v28 }
 0x700   :  { %2899 = vmatpush1.bf16.msra.mxu0 %v6019_v1  ;;  %v6037_v1 = vld [vmem:[#allocation2 + $0x248] ss:$24 sps:$4 sm:$0xff]  }
 0x701   :  { %2900 = vmatprep.subr.bf16.mxu0 %v6022_v17  ;;  %6991 = vst [vmem:[#allocation77_spill] sm:$0xff] %v6037_v1  ;;  %v6040_v17 = vld [vmem:[#allocation2 + $0x27c] ss:$24 sps:$4 sm:$0xff]  }
 0x702   :  { %6992 = vst [vmem:[#allocation78_spill] sm:$0xff] %v6040_v17 }
 0x704   :  { %2901 = vmatpush1.bf16.msra.mxu0 %v6025_v47  ;;  %v6043_v47 = vld [vmem:[#allocation2 + $0x278] ss:$24 sps:$4 sm:$0xff]  }
 0x705   :  { %2902 = vmatprep.subr.bf16.mxu0 %v6028_v23  ;;  %6993 = vst [vmem:[#allocation79_spill] sm:$0xff] %v6043_v47  ;;  %v6046_v23 = vld [vmem:[#allocation2 + $0x2ac] ss:$24 sps:$4 sm:$0xff]  }
 0x706   :  { %6994 = vst [vmem:[#allocation80_spill] sm:$0xff] %v6046_v23 }
 0x708   :  { %2903 = vmatpush1.bf16.msra.mxu0 %v6031_v62  ;;  %v6049_v62 = vld [vmem:[#allocation2 + $0x2a8] ss:$24 sps:$4 sm:$0xff]  }
 0x709   :  { %2904 = vmatprep.subr.bf16.mxu0 %v6034_v28  ;;  %6995 = vst [vmem:[#allocation81_spill] sm:$0xff] %v6049_v62  ;;  %v6052_v28 = vld [vmem:[#allocation2 + $0x2dc] ss:$24 sps:$4 sm:$0xff]  }
 0x70a   :  { %6996 = vst [vmem:[#allocation82_spill] sm:$0xff] %v6052_v28 }
 0x70c   :  { %2905 = vmatpush1.bf16.msra.mxu0 %v6037_v1  ;;  %v6055_v1 = vld [vmem:[#allocation2 + $0x2d8] ss:$24 sps:$4 sm:$0xff]  }
 0x70d   :  { %2906 = vmatprep.subr.bf16.mxu0 %v6040_v17  ;;  %6997 = vst [vmem:[#allocation83_spill] sm:$0xff] %v6055_v1 }
 0x710   :  { %2907 = vmatpush1.bf16.msra.mxu0 %v6043_v47 }
 0x711   :  { %2908 = vmatprep.subr.bf16.mxu0 %v6046_v23 }
 0x714   :  { %2909 = vmatpush1.bf16.msra.mxu0 %v6049_v62 }
 0x715   :  { %2910 = vmatprep.subr.bf16.mxu0 %v6052_v28 }
 0x718   :  { %2911 = vmatpush1.bf16.msra.mxu0 %v6055_v1 }
 0x719   :  { %3164 = vmatprep.subr.bf16.mxu0 %v5769_v44 }
 0x76e   :  { %v2548_v17 = vpop.f32.mrb[36].mxu0  ;;  %v2589_v47 = vpop.f32.mrb[36].mxu1 }
 0x76f   :  { %v2550_v49 = vpop.f32.mrb[37].mxu0  ;;  %v2591_v55 = vpop.f32.mrb[37].mxu1  ;;  %v2639_v45 = vrot.slane %v2548_v17, 3  ;;  %v2641_v62 = vrot.slane %v2548_v17, 4 }
 0x770   :  { %v2552_v5 = vpop.f32.mrb[38].mxu0  ;;  %v2593_v23 = vpop.f32.mrb[38].mxu1  ;;  %v2640_v24 = vrot.slane %v2550_v49, 3  ;;  %v2642_v38 = vrot.slane %v2550_v49, 4  ;;  %v2679_v49 = vrot.slane %v2589_v47, 4 }
 0x771   :  { %v2553_v14 = vpop.f32.mrb[39].mxu0  ;;  %v2594_v26 = vpop.f32.mrb[39].mxu1  ;;  %v2647_v28 = vadd.f32 %v2639_v45, %v6937_v11  ;;  %v2649_v52 = vadd.f32 %v2641_v62, %v6938_v6  ;;  %v2678_v62 = vrot.slane %v2591_v55, 3 }
 0x772   :  { %v2648_v1 = vadd.f32 %v2640_v24, %v6939_v60  ;;  %v2650_v44 = vadd.f32 %v2642_v38, %v6940_v61  ;;  %v2677_v14 = vrot.slane %v2589_v47, 3  ;;  %v2680_v24 = vrot.slane %v2591_v55, 4 }
 0x773   :  { %v3640_v19 = vmul.f32 -1.442695, %v2647_v28  ;;  %v3642_v58 = vmul.f32 -1.442695, %v2649_v52  ;;  %v2687_v52 = vadd.f32 %v2679_v49, %v6941_v7 }
 0x774   :  { %v3641_v50 = vmul.f32 -1.442695, %v2648_v1  ;;  %v3643_v13 = vmul.f32 -1.442695, %v2650_v44  ;;  %v2685_v38 = vadd.f32 %v2677_v14, %v6877_v9 }
 0x775   :  { %4032 = vpow2.f32 %v3640_v19  ;;  %v3646_v47 = vmul.f32 -1.442695, %v2687_v52 }
 0x776   :  { %4034 = vpow2.f32 %v3642_v58  ;;  %v6998_v58 = vld [vmem:[#allocation55_spill] sm:$0xff]  ;;  %v3644_v44 = vmul.f32 -1.442695, %v2685_v38 }
 0x777   :  { %4036 = vpow2.f32 %v3641_v50  ;;  %v2686_v50 = vadd.f32 %v2678_v62, %v6998_v58  ;;  %v7002_v58 = vld [vmem:[#allocation61_spill] sm:$0xff] }
 0x778   :  { %4038 = vpow2.f32 %v3643_v13  ;;  %v6999_v13 = vld [vmem:[#allocation59_spill] sm:$0xff] }
 0x779   :  { %v2688_v19 = vadd.f32 %v2680_v24, %v6999_v13 }
 0x77b   :  { %v3647_v61 = vmul.f32 -1.442695, %v2688_v19 }
 0x77f   :  { %v4033_v26 = vpop.eup %4032 }
 0x780   :  { %v4035_v23 = vpop.eup %4034  ;;  %v2663_v17 = vadd.f32 1.0, %v4033_v26  ;;  %v3645_v26 = vmul.f32 -1.442695, %v2686_v50 }
 0x781   :  { %v4037_v5 = vpop.eup %4036  ;;  %v2665_v6 = vadd.f32 1.0, %v4035_v23  ;;  %v7000_v23 = vld [vmem:[#allocation57_spill] sm:$0xff] }
 0x782   :  { %v4039_v45 = vpop.eup %4038  ;;  %v2664_v28 = vadd.f32 1.0, %v4037_v5  ;;  %4040 = vrcp.f32 %v2663_v17 }
 0x783   :  { %v2666_v1 = vadd.f32 1.0, %v4039_v45  ;;  %4042 = vrcp.f32 %v2665_v6  ;;  %v7001_v45 = vld [vmem:[#allocation58_spill] sm:$0xff] }
 0x784   :  { %4044 = vrcp.f32 %v2664_v28 }
 0x785   :  { %4046 = vrcp.f32 %v2666_v1 }
 0x786   :  { %4048 = vpow2.f32 %v3644_v44 }
 0x787   :  { %4050 = vpow2.f32 %v3646_v47 }
 0x788   :  { %4052 = vpow2.f32 %v3645_v26 }
 0x789   :  { %4054 = vpow2.f32 %v3647_v61 }
 0x78c   :  { %v4041_v49 = vpop.eup %4040 }
 0x78d   :  { %v4043_v62 = vpop.eup %4042 }
 0x78e   :  { %v4045_v52 = vpop.eup %4044 }
 0x78f   :  { %v4047_v19 = vpop.eup %4046 }
 0x7ae   :  { %v2630_v55 = vpop.f32.mrb[40].mxu0 }
 0x7af   :  { %v2713_v14 = vadd.f32 %v2630_v55, %v7000_v23  ;;  %v2632_v5 = vpop.f32.mrb[41].mxu0  ;;  %v4049_v23 = vpop.eup %4048 }
 0x7b0   :  { %v2714_v17 = vadd.f32 %v2632_v5, %v7001_v45  ;;  %v2634_v6 = vpop.f32.mrb[42].mxu0  ;;  %v4051_v7 = vpop.eup %4050 }
 0x7b1   :  { %v2717_v24 = vrot.slane %v2713_v14, 3  ;;  %v2719_v38 = vrot.slane %v2713_v14, 4  ;;  %v2635_v28 = vpop.f32.mrb[43].mxu0  ;;  %v7003_v6 = vld [vmem:[#allocation63_spill] sm:$0xff]  ;;  %v4053_v14 = vpop.eup %4052 }
 0x7b2   :  { %v2718_v1 = vrot.slane %v2714_v17, 3  ;;  %v2720_v50 = vrot.slane %v2714_v17, 4  ;;  %v4055_v28 = vpop.eup %4054  ;;  %v2701_v17 = vadd.f32 1.0, %v4049_v23 }
 0x7b3   :  { %v2725_v44 = vmul.f32 %v4041_v49, %v2717_v24  ;;  %v2727_v47 = vmul.f32 %v4043_v62, %v2719_v38  ;;  %v2703_v49 = vadd.f32 1.0, %v4051_v7  ;;  %v2702_v62 = vadd.f32 1.0, %v4053_v14 }
 0x7b4   :  { %v2726_v26 = vmul.f32 %v4045_v52, %v2718_v1  ;;  %v2728_v13 = vmul.f32 %v4047_v19, %v2720_v50  ;;  %v2704_v24 = vadd.f32 1.0, %v4055_v28 }
 0x7b5   :  { %v2729_v61 = vadd.f32 %v2725_v44, %v6806_v36  ;;  %v2731_v55 = vadd.f32 %v2727_v47, %v6807_v43 }
 0x7b6   :  { %v2730_v5 = vadd.f32 %v2726_v26, %v7002_v58  ;;  %v2732_v45 = vadd.f32 %v2728_v13, %v7003_v6 }
 0x7b7   :  { %4056 = vtanh.f32 %v2729_v61 }
 0x7b8   :  { %4058 = vtanh.f32 %v2731_v55 }
 0x7b9   :  { %4060 = vtanh.f32 %v2730_v5 }
 0x7ba   :  { %4062 = vtanh.f32 %v2732_v45 }
 0x7bb   :  { %4064 = vrcp.f32 %v2701_v17 }
 0x7bc   :  { %4066 = vrcp.f32 %v2703_v49 }
 0x7bd   :  { %4068 = vrcp.f32 %v2702_v62 }
 0x7be   :  { %4070 = vrcp.f32 %v2704_v24 }
 0x7c1   :  { %v4057_v38 = vpop.eup %4056 }
 0x7c2   :  { %v4059_v52 = vpop.eup %4058  ;;  %v2741_v1 = vrot.slane %v4057_v38, 1 }
 0x7c3   :  { %v4061_v50 = vpop.eup %4060  ;;  %v2743_v13 = vrot.slane %v4059_v52, 1 }
 0x7c4   :  { %v4063_v19 = vpop.eup %4062  ;;  %v2749_v44 = vsub.f32 %v5790_v16, %v2741_v1  ;;  %v2742_v47 = vrot.slane %v4061_v50, 1 }
 0x7c5   :  { %v2751_v23 = vsub.f32 %v5792_v48, %v2743_v13  ;;  %v2744_v26 = vrot.slane %v4063_v19, 1  ;;  %v4065_v61 = vpop.eup %4064 }
 0x7c6   :  { %v2757_v7 = vrot.slane %v2749_v44, 7  ;;  %v2750_v45 = vsub.f32 %v5794_v2, %v2742_v47  ;;  %v4067_v14 = vpop.eup %4066 }
 0x7c7   :  { %v2759_v55 = vrot.slane %v2751_v23, 7  ;;  %v2752_v5 = vsub.f32 %v5798_v10, %v2744_v26  ;;  %v4069_v49 = vpop.eup %4068 }
 0x7c8   :  { %v2758_v28 = vrot.slane %v2750_v45, 7  ;;  %v2765_v17 = vmul.f32 %v4065_v61, %v2757_v7  ;;  %v4071_v6 = vpop.eup %4070 }
 0x7c9   :  { %v2760_v62 = vrot.slane %v2752_v5, 7  ;;  %v2767_v24 = vmul.f32 %v4067_v14, %v2759_v55 }
 0x7ca   :  { %v2766_v58 = vmul.f32 %v4069_v49, %v2758_v28  ;;  %v6077_v16 = vadd.f32 %v4057_v38, %v2765_v17 }
 0x7cb   :  { %v2768_v1 = vmul.f32 %v4071_v6, %v2760_v62  ;;  %v6079_v48 = vadd.f32 %v4059_v52, %v2767_v24 }
 0x7cc   :  { %v6081_v13 = vadd.f32 %v4061_v50, %v2766_v58  ;;  %v2817_v2 = vpack.c.bf16 %v6077_v16, %v6077_v16 }
 0x7cd   :  { %v6085_v44 = vadd.f32 %v4063_v19, %v2768_v1  ;;  %v2819_v10 = vpack.c.bf16 %v6079_v48, %v6079_v48 }
 0x7ce   :  { %v2818_v47 = vpack.c.bf16 %v6081_v13, %v6081_v13  ;;  %v2777_v38 = vcombine.high %v6077_v16, %v6081_v13  ;;  %v2825_v23 = vunpack.c.l.b16 %v2817_v2 }
 0x7cf   :  { %v2820_v6 = vpack.c.bf16 %v6085_v44, %v6085_v44  ;;  %v2793_v58 = vcombine.high %v6079_v48, %v6085_v44  ;;  %v2827_v52 = vunpack.c.l.b16 %v2819_v10  ;;  %v7017_v10 = vld [vmem:[#allocation43_spill] sm:$0xff] }
 0x7d0   :  { %v2826_v50 = vunpack.c.l.b16 %v2818_v47  ;;  %v2784_v19 = vrot.slane %v2777_v38, %v4943_v39  ;;  %v2829_v26 = vrot.slane %v2825_v23, 5  ;;  %v7018_v47 = vld [vmem:[#allocation44_spill] sm:$0xff]  ;;  %v7019_v38 = vld [vmem:[#allocation45_spill] sm:$0xff]  ;;  %v7020_v23 = vld [vmem:[#allocation46_spill] sm:$0xff] }
 0x7d1   :  { %v2828_v7 = vunpack.c.l.b16 %v2820_v6  ;;  %v2800_v45 = vrot.slane %v2793_v58, %v4943_v39  ;;  %v2830_v61 = vrot.slane %v2827_v52, 4  ;;  %v7021_v6 = vld [vmem:[#allocation47_spill] sm:$0xff]  ;;  %v7022_v58 = vld [vmem:[#allocation54_spill] sm:$0xff]  ;;  %v7023_v52 = vld [vmem:[#allocation17_spill] sm:$0xff] }
 0x7d2   :  { %v2832_v55 = vrot.slane %v2826_v50, 5  ;;  %v2785_v5 = vcombine.high %v2784_v19, %v2784_v19  ;;  %v7024_v50 = vld [vmem:[#allocation18_spill] sm:$0xff]  ;;  %v7025_v19 = vld [vmem:[#allocation20_spill] sm:$0xff] }
 0x7d3   :  { %v2833_v14 = vrot.slane %v2828_v7, 4  ;;  %v2801_v28 = vcombine.high %v2800_v45, %v2800_v45  ;;  %v2831_v49 = vsel %vm1124_vm2, %v2830_v61, %v2829_v26  ;;  %v7026_v26 = vld [vmem:[#allocation22_spill] sm:$0xff]  ;;  %v7027_v7 = vld [vmem:[#allocation24_spill] sm:$0xff] }
 0x7d4   :  { %v2792_v17 = vrot.slane %v2785_v5, %v4943_v39  ;;  %v6107_v2 = vpack.c.b16 %v2831_v49, %v2831_v49  ;;  %v7028_v45 = vld [vmem:[#allocation26_spill] sm:$0xff]  ;;  %v7029_v61 = vld [vmem:[#allocation28_spill] sm:$0xff]  ;;  %v7031_v5 = vld [vmem:[#allocation31_spill] sm:$0xff] }
 0x7d5   :  { %v2834_v62 = vsel %vm1124_vm2, %v2833_v14, %v2832_v55  ;;  %v2808_v24 = vrot.slane %v2801_v28, %v4943_v39  ;;  %v7030_v55 = vld [vmem:[#allocation29_spill] sm:$0xff]  ;;  %v7033_v28 = vld [vmem:[#allocation35_spill] sm:$0xff]  ;;  %v7035_v49 = vld [vmem:[#allocation60_spill] sm:$0xff] }
 0x7d6   :  { %v2836_v1 = vpack.c.b16 %v2834_v62, %v2834_v62  ;;  %2812 = vst.msk [vmem:[#allocation5 + $0x5] ss:$8 sm:$0x3] %vm4965_vm6, %v2792_v17  ;;  %v7032_v14 = vld [vmem:[#allocation33_spill] sm:$0xff]  ;;  %v7034_v17 = vld [vmem:[#allocation64_spill] sm:$0xff] }
 0x7d7   :  { %2815 = vst.msk [vmem:[#allocation5 + $0x15] ss:$8 sm:$0x3] %vm4965_vm6, %v2808_v24  ;;  %v7036_v62 = vld [vmem:[#allocation65_spill] sm:$0xff]  ;;  %v7037_v24 = vld [vmem:[#allocation66_spill] sm:$0xff] }
 0x7d8   :  { %2871 = vmatprep.mubr.bf16.mxu1 %v2836_v1  ;;  %2912 = vmatprep.mubr.bf16.mxu0 %v2836_v1 }
 0x7d9   :  { %2872 = vmatmul.mubr.bf16.vlgmr.msra.gmra.mrb[40].mxu1 %v6107_v2  ;;  %2913 = vmatmul.mubr.bf16.vlgmr.msra.gmra.mrb[44].mxu0 %v6107_v2 }
 0x7da   :  { %2922 = vmatpush1.bf16.msra.mxu1 %v5824_v33  ;;  %2953 = vmatprep.mubr.bf16.mxu1 %v2836_v1  ;;  %v7038_v1 = vld [vmem:[#allocation62_spill] sm:$0xff] }
 0x7db   :  { %2923 = vmatprep.subr.bf16.mxu1 %v5827_v35  ;;  %3165 = vmatpush1.bf16.msra.mxu0 %v5623_v57  ;;  %v7004_v57 = vld [vmem:[#allocation15_spill] sm:$0xff] }
 0x7dc   :  { %3166 = vmatprep.subr.bf16.mxu0 %v5626_v4  ;;  %v7005_v4 = vld [vmem:[#allocation16_spill] sm:$0xff] }
 0x7de   :  { %2924 = vmatpush1.bf16.msra.mxu1 %v5832_v12 }
 0x7df   :  { %2925 = vmatprep.subr.bf16.mxu1 %v5835_v29  ;;  %3167 = vmatpush1.bf16.msra.mxu0 %v5631_v59  ;;  %v7006_v59 = vld [vmem:[#allocation9_spill] sm:$0xff] }
 0x7e0   :  { %3168 = vmatprep.subr.bf16.mxu0 %v5634_v63  ;;  %v7007_v63 = vld [vmem:[#allocation12_spill] sm:$0xff] }
 0x7e2   :  { %2926 = vmatpush1.bf16.msra.mxu1 %v5840_v27 }
 0x7e3   :  { %2927 = vmatprep.subr.bf16.mxu1 %v5843_v42  ;;  %3169 = vmatpush1.bf16.msra.mxu0 %v5639_v56  ;;  %v7008_v56 = vld [vmem:[#allocation32_spill] sm:$0xff] }
 0x7e4   :  { %3170 = vmatprep.subr.bf16.mxu0 %v5642_v22  ;;  %v7009_v22 = vld [vmem:[#allocation34_spill] sm:$0xff] }
 0x7e6   :  { %2928 = vmatpush1.bf16.msra.mxu1 %v5848_v18 }
 0x7e7   :  { %2929 = vmatprep.subr.bf16.mxu1 %v5851_v40  ;;  %3171 = vmatpush1.bf16.msra.mxu0 %v5647_v41  ;;  %v7010_v41 = vld [vmem:[#allocation36_spill] sm:$0xff] }
 0x7e8   :  { %3172 = vmatprep.subr.bf16.mxu0 %v5650_v21  ;;  %v7011_v21 = vld [vmem:[#allocation37_spill] sm:$0xff] }
 0x7ea   :  { %2930 = vmatpush1.bf16.msra.mxu1 %v5856_v32 }
 0x7eb   :  { %2931 = vmatprep.subr.bf16.mxu1 %v5859_v3  ;;  %3173 = vmatpush1.bf16.msra.mxu0 %v5655_v15  ;;  %v7012_v15 = vld [vmem:[#allocation38_spill] sm:$0xff] }
 0x7ec   :  { %3174 = vmatprep.subr.bf16.mxu0 %v5658_v20  ;;  %v7013_v20 = vld [vmem:[#allocation39_spill] sm:$0xff] }
 0x7ee   :  { %2932 = vmatpush1.bf16.msra.mxu1 %v5864_v51 }
 0x7ef   :  { %2933 = vmatprep.subr.bf16.mxu1 %v5867_v30  ;;  %3175 = vmatpush1.bf16.msra.mxu0 %v5663_v0  ;;  %v7014_v0 = vld [vmem:[#allocation40_spill] sm:$0xff] }
 0x7f0   :  { %3176 = vmatprep.subr.bf16.mxu0 %v5871_v34  ;;  %v7015_v34 = vld [vmem:[#allocation41_spill] sm:$0xff] }
 0x7f2   :  { %2934 = vmatpush1.bf16.msra.mxu1 %v5874_v53 }
 0x7f3   :  { %2935 = vmatprep.subr.bf16.mxu1 %v5877_v37  ;;  %3177 = vmatpush1.bf16.msra.mxu0 %v5880_v8  ;;  %v7016_v8 = vld [vmem:[#allocation42_spill] sm:$0xff] }
 0x7f4   :  { %3178 = vmatprep.subr.bf16.mxu0 %v7004_v57  ;;  %v7039_v57 = vld [vmem:[#allocation19_spill] sm:$0xff] }
 0x7f6   :  { %2936 = vmatpush1.bf16.msra.mxu1 %v7005_v4 }
 0x7f7   :  { %2937 = vmatprep.subr.bf16.mxu1 %v7006_v59  ;;  %3179 = vmatpush1.bf16.msra.mxu0 %v7007_v63  ;;  %v7040_v63 = vld [vmem:[#allocation21_spill] sm:$0xff] }
 0x7f8   :  { %3180 = vmatprep.subr.bf16.mxu0 %v7008_v56  ;;  %v7041_v56 = vld [vmem:[#allocation48_spill] sm:$0xff] }
 0x7fa   :  { %2938 = vmatpush1.bf16.msra.mxu1 %v7009_v22 }
 0x7fb   :  { %2939 = vmatprep.subr.bf16.mxu1 %v7010_v41  ;;  %3181 = vmatpush1.bf16.msra.mxu0 %v7011_v21  ;;  %v7044_v21 = vld [vmem:[#allocation25_spill] sm:$0xff] }
 0x7fc   :  { %3182 = vmatprep.subr.bf16.mxu0 %v7012_v15  ;;  %v7045_v15 = vld [vmem:[#allocation50_spill] sm:$0xff] }
 0x7fe   :  { %2940 = vmatpush1.bf16.msra.mxu1 %v7013_v20 }
 0x7ff   :  { %2941 = vmatprep.subr.bf16.mxu1 %v7014_v0  ;;  %3183 = vmatpush1.bf16.msra.mxu0 %v7015_v34  ;;  %v7046_v34 = vld [vmem:[#allocation27_spill] sm:$0xff] }
 0x800   :  { %3184 = vmatprep.subr.bf16.mxu0 %v7016_v8  ;;  %v7047_v8 = vld [vmem:[#allocation30_spill] sm:$0xff] }
 0x802   :  { %2942 = vmatpush1.bf16.msra.mxu1 %v7017_v10 }
 0x803   :  { %2943 = vmatprep.subr.bf16.mxu1 %v7018_v47  ;;  %3185 = vmatpush1.bf16.msra.mxu0 %v7019_v38  ;;  %v7049_v38 = vld [vmem:[#allocation11_spill] sm:$0xff] }
 0x804   :  { %3186 = vmatprep.subr.bf16.mxu0 %v7020_v23  ;;  %v7050_v23 = vld [vmem:[#allocation13_spill] sm:$0xff] }
 0x806   :  { %2944 = vmatpush1.bf16.msra.mxu1 %v7021_v6 }
 0x807   :  { %2945 = vmatprep.subr.bf16.mxu1 %v7022_v58  ;;  %3187 = vmatpush1.bf16.msra.mxu0 %v7023_v52  ;;  %v7051_v52 = vld [vmem:[#allocation14_spill] sm:$0xff] }
 0x808   :  { %3188 = vmatprep.subr.bf16.mxu0 %v7024_v50  ;;  %v7052_v50 = vld [vmem:[#allocation67_spill] sm:$0xff] }
 0x80a   :  { %2946 = vmatpush1.bf16.msra.mxu1 %v7025_v19 }
 0x80b   :  { %2947 = vmatprep.subr.bf16.mxu1 %v7026_v26  ;;  %3189 = vmatpush1.bf16.msra.mxu0 %v7027_v7  ;;  %v7053_v7 = vld [vmem:[#allocation68_spill] sm:$0xff] }
 0x80c   :  { %3190 = vmatprep.subr.bf16.mxu0 %v7028_v45  ;;  %v7054_v45 = vld [vmem:[#allocation69_spill] sm:$0xff] }
 0x80e   :  { %2948 = vmatpush1.bf16.msra.mxu1 %v7029_v61 }
 0x80f   :  { %2949 = vmatprep.subr.bf16.mxu1 %v7030_v55  ;;  %3191 = vmatpush1.bf16.msra.mxu0 %v7031_v5  ;;  %v7055_v5 = vld [vmem:[#allocation70_spill] sm:$0xff] }
 0x810   :  { %3192 = vmatprep.subr.bf16.mxu0 %v7032_v14  ;;  %v7056_v14 = vld [vmem:[#allocation71_spill] sm:$0xff] }
 0x812   :  { %2950 = vmatpush1.bf16.msra.mxu1 %v7033_v28 }
 0x813   :  { %2951 = vmatprep.subr.bf16.mxu1 %v5973_v54  ;;  %3193 = vmatpush1.bf16.msra.mxu0 %v5976_v46  ;;  %v7042_v46 = vld [vmem:[#allocation49_spill] sm:$0xff] }
 0x814   :  { %3194 = vmatprep.subr.bf16.mxu0 %v5979_v31  ;;  %v7043_v31 = vld [vmem:[#allocation23_spill] sm:$0xff] }
 0x816   :  { %2952 = vmatpush1.bf16.msra.mxu1 %v7034_v17 }
 0x817   :  { %3205 = vmatprep.subr.bf16.mxu1 %v7035_v49  ;;  %3195 = vmatpush1.bf16.msra.mxu0 %v7036_v62  ;;  %v7057_v49 = vld [vmem:[#allocation72_spill] sm:$0xff]  ;;  %v7058_v62 = vld [vmem:[#allocation73_spill] sm:$0xff] }
 0x818   :  { %3246 = vmatprep.subr.bf16.mxu0 %v7037_v24  ;;  %v7059_v24 = vld [vmem:[#allocation74_spill] sm:$0xff] }
 0x819   :  { %2954 = vmatmul.mubr.bf16.vlgmr.msra.gmra.mrb[44].mxu1 %v6107_v2  ;;  %v7048_v2 = vld [vmem:[#allocation10_spill] sm:$0xff] }
 0x81a   :  { %3206 = vmatpush1.bf16.msra.mxu1 %v7038_v1  ;;  %v7060_v1 = vld [vmem:[#allocation75_spill] sm:$0xff] }
 0x81b   :  { %3207 = vmatprep.subr.bf16.mxu1 %v7039_v57  ;;  %v7061_v57 = vld [vmem:[#allocation76_spill] sm:$0xff] }
 0x81e   :  { %3208 = vmatpush1.bf16.msra.mxu1 %v7040_v63  ;;  %v7062_v63 = vld [vmem:[#allocation77_spill] sm:$0xff] }
 0x81f   :  { %3209 = vmatprep.subr.bf16.mxu1 %v7041_v56  ;;  %v7063_v56 = vld [vmem:[#allocation78_spill] sm:$0xff] }
 0x822   :  { %3210 = vmatpush1.bf16.msra.mxu1 %v7042_v46  ;;  %v7064_v46 = vld [vmem:[#allocation79_spill] sm:$0xff] }
 0x823   :  { %3211 = vmatprep.subr.bf16.mxu1 %v7043_v31  ;;  %v7065_v31 = vld [vmem:[#allocation80_spill] sm:$0xff] }
 0x826   :  { %3212 = vmatpush1.bf16.msra.mxu1 %v7044_v21  ;;  %v7066_v21 = vld [vmem:[#allocation81_spill] sm:$0xff] }
 0x827   :  { %3213 = vmatprep.subr.bf16.mxu1 %v7045_v15  ;;  %v7067_v15 = vld [vmem:[#allocation82_spill] sm:$0xff] }
 0x82a   :  { %3214 = vmatpush1.bf16.msra.mxu1 %v7046_v34  ;;  %v7068_v34 = vld [vmem:[#allocation83_spill] sm:$0xff] }
 0x82b   :  { %3215 = vmatprep.subr.bf16.mxu1 %v7047_v8 }
 0x82e   :  { %3216 = vmatpush1.bf16.msra.mxu1 %v7048_v2 }
 0x82f   :  { %3217 = vmatprep.subr.bf16.mxu1 %v7049_v38 }
 0x832   :  { %3218 = vmatpush1.bf16.msra.mxu1 %v7050_v23 }
 0x833   :  { %3219 = vmatprep.subr.bf16.mxu1 %v7051_v52 }
 0x836   :  { %3220 = vmatpush1.bf16.msra.mxu1 %v7052_v50 }
 0x837   :  { %3221 = vmatprep.subr.bf16.mxu1 %v7053_v7 }
 0x83a   :  { %3222 = vmatpush1.bf16.msra.mxu1 %v7054_v45 }
 0x83b   :  { %3223 = vmatprep.subr.bf16.mxu1 %v7055_v5 }
 0x83e   :  { %3224 = vmatpush1.bf16.msra.mxu1 %v7056_v14 }
 0x83f   :  { %3225 = vmatprep.subr.bf16.mxu1 %v7057_v49 }
 0x842   :  { %3226 = vmatpush1.bf16.msra.mxu1 %v7058_v62 }
 0x843   :  { %3227 = vmatprep.subr.bf16.mxu1 %v7059_v24 }
 0x846   :  { %3228 = vmatpush1.bf16.msra.mxu1 %v7060_v1  ;;  %v7069_v1 = vld [vmem:[#allocation52_spill] sm:$0xff] }
 0x847   :  { %3229 = vmatprep.subr.bf16.mxu1 %v7061_v57 }
 0x84a   :  { %3230 = vmatpush1.bf16.msra.mxu1 %v7062_v63 }
 0x84b   :  { %3231 = vmatprep.subr.bf16.mxu1 %v7063_v56  ;;  %v7070_v56 = vld [vmem:[#allocation53_spill] sm:$0xff] }
 0x84e   :  { %3232 = vmatpush1.bf16.msra.mxu1 %v7064_v46 }
 0x84f   :  { %3233 = vmatprep.subr.bf16.mxu1 %v7065_v31 }
 0x852   :  { %3234 = vmatpush1.bf16.msra.mxu1 %v7066_v21 }
 0x853   :  { %3235 = vmatprep.subr.bf16.mxu1 %v7067_v15 }
 0x856   :  { %3236 = vmatpush1.bf16.msra.mxu1 %v7068_v34 }
 0x8ac   :  { %v2873_v8 = vpop.f32.mrb[40].mxu1  ;;  %v2914_v2 = vpop.f32.mrb[44].mxu0 }
 0x8ad   :  { %v2875_v38 = vpop.f32.mrb[41].mxu1  ;;  %v2916_v23 = vpop.f32.mrb[45].mxu0  ;;  %v2964_v5 = vrot.slane %v2873_v8, 2  ;;  %v2966_v14 = vrot.slane %v2873_v8, 3 }
 0x8ae   :  { %v2877_v52 = vpop.f32.mrb[42].mxu1  ;;  %v2918_v50 = vpop.f32.mrb[46].mxu0  ;;  %v2965_v49 = vrot.slane %v2875_v38, 2  ;;  %v2967_v62 = vrot.slane %v2875_v38, 3 }
 0x8af   :  { %v2878_v7 = vpop.f32.mrb[43].mxu1  ;;  %v2919_v45 = vpop.f32.mrb[47].mxu0  ;;  %v2972_v24 = vadd.f32 %v2964_v5, %v6937_v11  ;;  %v2974_v57 = vadd.f32 %v2966_v14, %v7069_v1  ;;  %v3002_v50 = vrot.slane %v2914_v2, 2  ;;  %v3003_v14 = vrot.slane %v2916_v23, 2 }
 0x8b0   :  { %v2973_v63 = vadd.f32 %v2965_v49, %v6939_v60  ;;  %v2975_v46 = vadd.f32 %v2967_v62, %v7070_v56  ;;  %v3004_v7 = vrot.slane %v2914_v2, 3  ;;  %v3005_v49 = vrot.slane %v2916_v23, 3 }
 0x8b1   :  { %v3648_v31 = vmul.f32 -1.442695, %v2972_v24  ;;  %v3650_v21 = vmul.f32 -1.442695, %v2974_v57  ;;  %v3010_v62 = vadd.f32 %v3002_v50, %v6877_v9  ;;  %v7071_v57 = vld [vmem:[#allocation56_spill] sm:$0xff] }
 0x8b2   :  { %v3649_v15 = vmul.f32 -1.442695, %v2973_v63  ;;  %v3651_v34 = vmul.f32 -1.442695, %v2975_v46  ;;  %v3012_v63 = vadd.f32 %v3004_v7, %v7071_v57 }
 0x8b3   :  { %4072 = vpow2.f32 %v3648_v31  ;;  %v7072_v31 = vld [vmem:[#allocation55_spill] sm:$0xff]  ;;  %v3652_v56 = vmul.f32 -1.442695, %v3010_v62 }
 0x8b4   :  { %4074 = vpow2.f32 %v3650_v21  ;;  %v3011_v21 = vadd.f32 %v3003_v14, %v7072_v31  ;;  %v3654_v2 = vmul.f32 -1.442695, %v3012_v63  ;;  %v7076_v31 = vld [vmem:[#allocation61_spill] sm:$0xff] }
 0x8b5   :  { %4076 = vpow2.f32 %v3649_v15  ;;  %v7073_v15 = vld [vmem:[#allocation59_spill] sm:$0xff] }
 0x8b6   :  { %4078 = vpow2.f32 %v3651_v34  ;;  %v3013_v34 = vadd.f32 %v3005_v49, %v7073_v15 }
 0x8b8   :  { %v3655_v60 = vmul.f32 -1.442695, %v3013_v34 }
 0x8bd   :  { %v4073_v52 = vpop.eup %4072 }
 0x8be   :  { %v4075_v8 = vpop.eup %4074  ;;  %v2988_v5 = vadd.f32 1.0, %v4073_v52  ;;  %v3653_v52 = vmul.f32 -1.442695, %v3011_v21 }
 0x8bf   :  { %v4077_v38 = vpop.eup %4076  ;;  %v2990_v1 = vadd.f32 1.0, %v4075_v8  ;;  %v7074_v8 = vld [vmem:[#allocation57_spill] sm:$0xff] }
 0x8c0   :  { %v4079_v45 = vpop.eup %4078  ;;  %v2989_v24 = vadd.f32 1.0, %v4077_v38  ;;  %4080 = vrcp.f32 %v2988_v5 }
 0x8c1   :  { %v2991_v46 = vadd.f32 1.0, %v4079_v45  ;;  %4082 = vrcp.f32 %v2990_v1  ;;  %v7075_v45 = vld [vmem:[#allocation58_spill] sm:$0xff] }
 0x8c2   :  { %4084 = vrcp.f32 %v2989_v24 }
 0x8c3   :  { %4086 = vrcp.f32 %v2991_v46 }
 0x8c4   :  { %4088 = vpow2.f32 %v3652_v56 }
 0x8c5   :  { %4090 = vpow2.f32 %v3654_v2 }
 0x8c6   :  { %4092 = vpow2.f32 %v3653_v52 }
 0x8c7   :  { %4094 = vpow2.f32 %v3655_v60 }
 0x8ca   :  { %v4081_v7 = vpop.eup %4080 }
 0x8cb   :  { %v4083_v14 = vpop.eup %4082 }
 0x8cc   :  { %v4085_v63 = vpop.eup %4084 }
 0x8cd   :  { %v4087_v34 = vpop.eup %4086 }
 0x8ec   :  { %v2955_v23 = vpop.f32.mrb[44].mxu1 }
 0x8ed   :  { %v3038_v50 = vadd.f32 %v2955_v23, %v7074_v8  ;;  %v2957_v38 = vpop.f32.mrb[45].mxu1  ;;  %v4089_v8 = vpop.eup %4088 }
 0x8ee   :  { %v3039_v5 = vadd.f32 %v2957_v38, %v7075_v45  ;;  %v2959_v1 = vpop.f32.mrb[46].mxu1  ;;  %v4091_v57 = vpop.eup %4090 }
 0x8ef   :  { %v3042_v49 = vrot.slane %v3038_v50, 2  ;;  %v3044_v62 = vrot.slane %v3038_v50, 3  ;;  %v2960_v24 = vpop.f32.mrb[47].mxu1  ;;  %v7077_v1 = vld [vmem:[#allocation63_spill] sm:$0xff]  ;;  %v4093_v50 = vpop.eup %4092 }
 0x8f0   :  { %v3043_v46 = vrot.slane %v3039_v5, 2  ;;  %v3045_v21 = vrot.slane %v3039_v5, 3  ;;  %v4095_v24 = vpop.eup %4094  ;;  %v3026_v5 = vadd.f32 1.0, %v4089_v8 }
 0x8f1   :  { %v3050_v56 = vmul.f32 %v4081_v7, %v3042_v49  ;;  %v3052_v2 = vmul.f32 %v4083_v14, %v3044_v62  ;;  %v3028_v7 = vadd.f32 1.0, %v4091_v57  ;;  %v3027_v14 = vadd.f32 1.0, %v4093_v50 }
 0x8f2   :  { %v3051_v52 = vmul.f32 %v4085_v63, %v3043_v46  ;;  %v3053_v15 = vmul.f32 %v4087_v34, %v3045_v21  ;;  %v3029_v49 = vadd.f32 1.0, %v4095_v24 }
 0x8f3   :  { %v3054_v60 = vadd.f32 %v3050_v56, %v6806_v36  ;;  %v3056_v23 = vadd.f32 %v3052_v2, %v6807_v43 }
 0x8f4   :  { %v3055_v38 = vadd.f32 %v3051_v52, %v7076_v31  ;;  %v3057_v45 = vadd.f32 %v3053_v15, %v7077_v1 }
 0x8f5   :  { %4096 = vtanh.f32 %v3054_v60 }
 0x8f6   :  { %4098 = vtanh.f32 %v3056_v23 }
 0x8f7   :  { %4100 = vtanh.f32 %v3055_v38 }
 0x8f8   :  { %4102 = vtanh.f32 %v3057_v45 }
 0x8f9   :  { %4104 = vrcp.f32 %v3026_v5 }
 0x8fa   :  { %4106 = vrcp.f32 %v3028_v7 }
 0x8fb   :  { %4108 = vrcp.f32 %v3027_v14 }
 0x8fc   :  { %4110 = vrcp.f32 %v3029_v49 }
 0x8ff   :  { %v4097_v62 = vpop.eup %4096 }
 0x900   :  { %v4099_v63 = vpop.eup %4098  ;;  %v3066_v46 = vrot.slane %v4097_v62, 1 }
 0x901   :  { %v4101_v21 = vpop.eup %4100  ;;  %v3068_v15 = vrot.slane %v4099_v63, 1 }
 0x902   :  { %v4103_v34 = vpop.eup %4102  ;;  %v3074_v56 = vsub.f32 %v6077_v16, %v3066_v46  ;;  %v3067_v2 = vrot.slane %v4101_v21, 1 }
 0x903   :  { %v3076_v8 = vsub.f32 %v6079_v48, %v3068_v15  ;;  %v3069_v52 = vrot.slane %v4103_v34, 1  ;;  %v4105_v60 = vpop.eup %4104 }
 0x904   :  { %v3082_v57 = vrot.slane %v3074_v56, 7  ;;  %v3075_v45 = vsub.f32 %v6081_v13, %v3067_v2  ;;  %v4107_v50 = vpop.eup %4106 }
 0x905   :  { %v3084_v23 = vrot.slane %v3076_v8, 7  ;;  %v3077_v38 = vsub.f32 %v6085_v44, %v3069_v52  ;;  %v4109_v7 = vpop.eup %4108 }
 0x906   :  { %v3083_v24 = vrot.slane %v3075_v45, 7  ;;  %v3090_v5 = vmul.f32 %v4105_v60, %v3082_v57  ;;  %v4111_v1 = vpop.eup %4110 }
 0x907   :  { %v3085_v14 = vrot.slane %v3077_v38, 7  ;;  %v3092_v49 = vmul.f32 %v4107_v50, %v3084_v23 }
 0x908   :  { %v3091_v31 = vmul.f32 %v4109_v7, %v3083_v24  ;;  %v6225_v16 = vadd.f32 %v4097_v62, %v3090_v5 }
 0x909   :  { %v3093_v46 = vmul.f32 %v4111_v1, %v3085_v14  ;;  %v6227_v48 = vadd.f32 %v4099_v63, %v3092_v49 }
 0x90a   :  { %v6229_v15 = vadd.f32 %v4101_v21, %v3091_v31  ;;  %v3142_v13 = vpack.c.bf16 %v6225_v16, %v6225_v16 }
 0x90b   :  { %v6233_v56 = vadd.f32 %v4103_v34, %v3093_v46  ;;  %v3144_v44 = vpack.c.bf16 %v6227_v48, %v6227_v48 }
 0x90c   :  { %v3143_v2 = vpack.c.bf16 %v6229_v15, %v6229_v15  ;;  %v3102_v62 = vcombine.high %v6225_v16, %v6229_v15  ;;  %v3150_v8 = vunpack.c.l.b16 %v3142_v13 }
 0x90d   :  { %v3145_v1 = vpack.c.bf16 %v6233_v56, %v6233_v56  ;;  %v3118_v31 = vcombine.high %v6227_v48, %v6233_v56  ;;  %v3152_v63 = vunpack.c.l.b16 %v3144_v44 }
 0x90e   :  { %v3151_v21 = vunpack.c.l.b16 %v3143_v2  ;;  %v3109_v34 = vrot.slane %v3102_v62, %v4943_v39  ;;  %v3154_v52 = vrot.slane %v3150_v8, 6  ;;  %v7081_v8 = vld [vmem:[#allocation56_spill] sm:$0xff] }
 0x90f   :  { %v3153_v57 = vunpack.c.l.b16 %v3145_v1  ;;  %v3125_v45 = vrot.slane %v3118_v31, %v4943_v39  ;;  %v3155_v60 = vrot.slane %v3152_v63, 5  ;;  %v7082_v63 = vld [vmem:[#allocation55_spill] sm:$0xff] }
 0x910   :  { %v3157_v23 = vrot.slane %v3151_v21, 6  ;;  %v3116_v38 = vrot.slane %v3109_v34, %v4943_v39  ;;  %v7083_v34 = vld [vmem:[#allocation59_spill] sm:$0xff] }
 0x911   :  { %v3158_v50 = vrot.slane %v3153_v57, 5  ;;  %v3132_v24 = vrot.slane %v3125_v45, %v4943_v39  ;;  %v3156_v7 = vsel %vm1124_vm2, %v3155_v60, %v3154_v52 }
 0x912   :  { %v3117_v5 = vcombine.high %v3116_v38, %v3116_v38  ;;  %v3160_v13 = vpack.c.b16 %v3156_v7, %v3156_v7  ;;  %v7084_v38 = vld [vmem:[#allocation57_spill] sm:$0xff]  ;;  %v7085_v7 = vld [vmem:[#allocation58_spill] sm:$0xff] }
 0x913   :  { %v3159_v14 = vsel %vm1124_vm2, %v3158_v50, %v3157_v23  ;;  %v3133_v49 = vcombine.high %v3132_v24, %v3132_v24 }
 0x914   :  { %v3161_v46 = vpack.c.b16 %v3159_v14, %v3159_v14  ;;  %3137 = vst.msk [vmem:[#allocation5 + $0x6] ss:$8 sm:$0x3] %vm4965_vm6, %v3117_v5 }
 0x915   :  { %3140 = vst.msk [vmem:[#allocation5 + $0x16] ss:$8 sm:$0x3] %vm4965_vm6, %v3133_v49 }
 0x916   :  { %3196 = vmatprep.mubr.bf16.mxu0 %v3161_v46  ;;  %3237 = vmatprep.mubr.bf16.mxu1 %v3161_v46 }
 0x917   :  { %3197 = vmatmul.mubr.bf16.vlgmr.msra.gmra.mrb[48].mxu0 %v3160_v13  ;;  %3238 = vmatmul.mubr.bf16.vlgmr.msra.gmra.mrb[48].mxu1 %v3160_v13 }
 0x918   :  { %3247 = vmatpush1.bf16.msra.mxu0 %v5824_v33  ;;  %3278 = vmatprep.mubr.bf16.mxu0 %v3161_v46 }
 0x919   :  { %3248 = vmatprep.subr.bf16.mxu0 %v5827_v35 }
 0x91c   :  { %3249 = vmatpush1.bf16.msra.mxu0 %v5832_v12 }
 0x91d   :  { %3250 = vmatprep.subr.bf16.mxu0 %v5835_v29 }
 0x920   :  { %3251 = vmatpush1.bf16.msra.mxu0 %v5840_v27 }
 0x921   :  { %3252 = vmatprep.subr.bf16.mxu0 %v5843_v42 }
 0x924   :  { %3253 = vmatpush1.bf16.msra.mxu0 %v5848_v18 }
 0x925   :  { %3254 = vmatprep.subr.bf16.mxu0 %v5851_v40 }
 0x928   :  { %3255 = vmatpush1.bf16.msra.mxu0 %v5856_v32 }
 0x929   :  { %3256 = vmatprep.subr.bf16.mxu0 %v5859_v3 }
 0x92c   :  { %3257 = vmatpush1.bf16.msra.mxu0 %v5864_v51 }
 0x92d   :  { %3258 = vmatprep.subr.bf16.mxu0 %v5867_v30 }
 0x930   :  { %3259 = vmatpush1.bf16.msra.mxu0 %v5874_v53 }
 0x931   :  { %3260 = vmatprep.subr.bf16.mxu0 %v5877_v37  ;;  %v7078_v37 = vld [vmem:[#allocation52_spill] sm:$0xff] }
 0x934   :  { %3261 = vmatpush1.bf16.msra.mxu0 %v7005_v4 }
 0x935   :  { %3262 = vmatprep.subr.bf16.mxu0 %v7006_v59 }
 0x938   :  { %3263 = vmatpush1.bf16.msra.mxu0 %v7009_v22  ;;  %v7080_v22 = vld [vmem:[#allocation53_spill] sm:$0xff] }
 0x939   :  { %3264 = vmatprep.subr.bf16.mxu0 %v7010_v41 }
 0x93c   :  { %3265 = vmatpush1.bf16.msra.mxu0 %v7013_v20 }
 0x93d   :  { %3266 = vmatprep.subr.bf16.mxu0 %v7014_v0 }
 0x940   :  { %3267 = vmatpush1.bf16.msra.mxu0 %v7017_v10 }
 0x941   :  { %3268 = vmatprep.subr.bf16.mxu0 %v7018_v47 }
 0x944   :  { %3269 = vmatpush1.bf16.msra.mxu0 %v7021_v6 }
 0x945   :  { %3270 = vmatprep.subr.bf16.mxu0 %v7022_v58 }
 0x948   :  { %3271 = vmatpush1.bf16.msra.mxu0 %v7025_v19 }
 0x949   :  { %3272 = vmatprep.subr.bf16.mxu0 %v7026_v26 }
 0x94c   :  { %3273 = vmatpush1.bf16.msra.mxu0 %v7029_v61 }
 0x94d   :  { %3274 = vmatprep.subr.bf16.mxu0 %v7030_v55 }
 0x950   :  { %3275 = vmatpush1.bf16.msra.mxu0 %v7033_v28 }
 0x951   :  { %3276 = vmatprep.subr.bf16.mxu0 %v5973_v54  ;;  %v7079_v54 = vld [vmem:[#allocation51_spill] sm:$0xff] }
 0x954   :  { %3277 = vmatpush1.bf16.msra.mxu0 %v7034_v17 }
 0x957   :  { %3279 = vmatmul.mubr.bf16.vlgmr.msra.gmra.mrb[52].mxu0 %v3160_v13 }
 0x9ea   :  { %v3198_v33 = vpop.f32.mrb[48].mxu0  ;;  %v3239_v35 = vpop.f32.mrb[48].mxu1 }
 0x9eb   :  { %v3200_v12 = vpop.f32.mrb[49].mxu0  ;;  %v3241_v29 = vpop.f32.mrb[49].mxu1  ;;  %v3289_v32 = vrot.slane %v3198_v33, 1  ;;  %v3291_v3 = vrot.slane %v3198_v33, 2  ;;  %v3327_v19 = vrot.slane %v3239_v35, 1  ;;  %v3329_v61 = vrot.slane %v3239_v35, 2 }
 0x9ec   :  { %v3202_v27 = vpop.f32.mrb[50].mxu0  ;;  %v3243_v42 = vpop.f32.mrb[50].mxu1  ;;  %v3290_v51 = vrot.slane %v3200_v12, 1  ;;  %v3292_v30 = vrot.slane %v3200_v12, 2  ;;  %v3328_v28 = vrot.slane %v3241_v29, 1  ;;  %v3330_v44 = vrot.slane %v3241_v29, 2 }
 0x9ed   :  { %v3203_v18 = vpop.f32.mrb[51].mxu0  ;;  %v3244_v40 = vpop.f32.mrb[51].mxu1  ;;  %v3297_v53 = vadd.f32 %v3289_v32, %v6937_v11  ;;  %v3299_v4 = vadd.f32 %v3291_v3, %v7078_v37  ;;  %v3335_v2 = vadd.f32 %v3327_v19, %v6877_v9  ;;  %v3337_v1 = vadd.f32 %v3329_v61, %v7081_v8  ;;  %v7086_v37 = vld [vmem:[#allocation61_spill] sm:$0xff] }
 0x9ee   :  { %v3298_v59 = vadd.f32 %v3290_v51, %v7079_v54  ;;  %v3300_v41 = vadd.f32 %v3292_v30, %v7080_v22  ;;  %v3336_v21 = vadd.f32 %v3328_v28, %v7082_v63  ;;  %v3338_v52 = vadd.f32 %v3330_v44, %v7083_v34  ;;  %v7087_v54 = vld [vmem:[#allocation63_spill] sm:$0xff] }
 0x9ef   :  { %v3656_v20 = vmul.f32 -1.442695, %v3297_v53  ;;  %v3658_v0 = vmul.f32 -1.442695, %v3299_v4  ;;  %v3660_v57 = vmul.f32 -1.442695, %v3335_v2 }
 0x9f0   :  { %v3657_v10 = vmul.f32 -1.442695, %v3298_v59  ;;  %v3659_v47 = vmul.f32 -1.442695, %v3300_v41  ;;  %v3662_v45 = vmul.f32 -1.442695, %v3337_v1 }
 0x9f1   :  { %4112 = vpow2.f32 %v3656_v20  ;;  %v3661_v60 = vmul.f32 -1.442695, %v3336_v21  ;;  %v3663_v23 = vmul.f32 -1.442695, %v3338_v52 }
 0x9f2   :  { %4114 = vpow2.f32 %v3658_v0 }
 0x9f3   :  { %4116 = vpow2.f32 %v3657_v10 }
 0x9f4   :  { %4118 = vpow2.f32 %v3659_v47 }
 0x9fb   :  { %v4113_v6 = vpop.eup %4112 }
 0x9fc   :  { %v4115_v58 = vpop.eup %4114  ;;  %v3313_v55 = vadd.f32 1.0, %v4113_v6 }
 0x9fd   :  { %v4117_v26 = vpop.eup %4116  ;;  %v3315_v17 = vadd.f32 1.0, %v4115_v58 }
 0x9fe   :  { %v4119_v11 = vpop.eup %4118  ;;  %v3314_v62 = vadd.f32 1.0, %v4117_v26  ;;  %4120 = vrcp.f32 %v3313_v55 }
 0x9ff   :  { %v3316_v31 = vadd.f32 1.0, %v4119_v11  ;;  %4122 = vrcp.f32 %v3315_v17 }
 0xa00   :  { %4124 = vrcp.f32 %v3314_v62 }
 0xa01   :  { %4126 = vrcp.f32 %v3316_v31 }
 0xa02   :  { %4128 = vpow2.f32 %v3660_v57 }
 0xa03   :  { %4130 = vpow2.f32 %v3662_v45 }
 0xa04   :  { %4132 = vpow2.f32 %v3661_v60 }
 0xa05   :  { %4134 = vpow2.f32 %v3663_v23 }
 0xa08   :  { %v4121_v5 = vpop.eup %4120 }
 0xa09   :  { %v4123_v46 = vpop.eup %4122 }
 0xa0a   :  { %v4125_v12 = vpop.eup %4124 }
 0xa0b   :  { %v4127_v42 = vpop.eup %4126 }
 0xa0c   :  { %v4129_v53 = vpop.eup %4128 }
 0xa0d   :  { %v4131_v22 = vpop.eup %4130  ;;  %v3351_v0 = vadd.f32 1.0, %v4129_v53 }
 0xa0e   :  { %v4133_v41 = vpop.eup %4132  ;;  %v3353_v10 = vadd.f32 1.0, %v4131_v22 }
 0xa0f   :  { %v4135_v20 = vpop.eup %4134  ;;  %v3352_v47 = vadd.f32 1.0, %v4133_v41 }
 0xa10   :  { %v3354_v6 = vadd.f32 1.0, %v4135_v20 }
 0xa2a   :  { %v3280_v9 = vpop.f32.mrb[52].mxu0 }
 0xa2b   :  { %v3363_v50 = vadd.f32 %v3280_v9, %v7084_v38  ;;  %v3282_v24 = vpop.f32.mrb[53].mxu0 }
 0xa2c   :  { %v3364_v14 = vadd.f32 %v3282_v24, %v7085_v7  ;;  %v3284_v49 = vpop.f32.mrb[54].mxu0 }
 0xa2d   :  { %v3367_v13 = vrot.slane %v3363_v50, 1  ;;  %v3369_v33 = vrot.slane %v3363_v50, 2  ;;  %v3285_v35 = vpop.f32.mrb[55].mxu0 }
 0xa2e   :  { %v3368_v29 = vrot.slane %v3364_v14, 1  ;;  %v3370_v27 = vrot.slane %v3364_v14, 2 }
 0xa2f   :  { %v3375_v18 = vmul.f32 %v4121_v5, %v3367_v13  ;;  %v3377_v40 = vmul.f32 %v4123_v46, %v3369_v33 }
 0xa30   :  { %v3376_v32 = vmul.f32 %v4125_v12, %v3368_v29  ;;  %v3378_v3 = vmul.f32 %v4127_v42, %v3370_v27 }
 0xa31   :  { %v3379_v51 = vadd.f32 %v3375_v18, %v6806_v36  ;;  %v3381_v30 = vadd.f32 %v3377_v40, %v6807_v43 }
 0xa32   :  { %v3380_v4 = vadd.f32 %v3376_v32, %v7086_v37  ;;  %v3382_v59 = vadd.f32 %v3378_v3, %v7087_v54 }
 0xa33   :  { %4136 = vtanh.f32 %v3379_v51 }
 0xa34   :  { %4138 = vtanh.f32 %v3381_v30 }
 0xa35   :  { %4140 = vtanh.f32 %v3380_v4 }
 0xa36   :  { %4142 = vtanh.f32 %v3382_v59 }
 0xa37   :  { %4144 = vrcp.f32 %v3351_v0 }
 0xa38   :  { %4146 = vrcp.f32 %v3353_v10 }
 0xa39   :  { %4148 = vrcp.f32 %v3352_v47 }
 0xa3a   :  { %4150 = vrcp.f32 %v3354_v6 }
 0xa3d   :  { %v4137_v36 = vpop.eup %4136 }
 0xa3e   :  { %v4139_v43 = vpop.eup %4138  ;;  %v3391_v58 = vrot.slane %v4137_v36, 1 }
 0xa3f   :  { %v4141_v19 = vpop.eup %4140  ;;  %v3393_v26 = vrot.slane %v4139_v43, 1 }
 0xa40   :  { %v4143_v61 = vpop.eup %4142  ;;  %v3399_v11 = vsub.f32 %v6225_v16, %v3391_v58  ;;  %v3392_v55 = vrot.slane %v4141_v19, 1 }
 0xa41   :  { %v3401_v28 = vsub.f32 %v6227_v48, %v3393_v26  ;;  %v3394_v17 = vrot.slane %v4143_v61, 1  ;;  %v4145_v62 = vpop.eup %4144 }
 0xa42   :  { %v3407_v44 = vrot.slane %v3399_v11, 7  ;;  %v3400_v2 = vsub.f32 %v6229_v15, %v3392_v55  ;;  %v4147_v31 = vpop.eup %4146 }
 0xa43   :  { %v3409_v8 = vrot.slane %v3401_v28, 7  ;;  %v3402_v1 = vsub.f32 %v6233_v56, %v3394_v17  ;;  %v4149_v34 = vpop.eup %4148 }
 0xa44   :  { %v3415_v63 = vmul.f32 %v4145_v62, %v3407_v44  ;;  %v3408_v21 = vrot.slane %v3400_v2, 7  ;;  %v4151_v45 = vpop.eup %4150 }
 0xa45   :  { %v3417_v52 = vmul.f32 %v4147_v31, %v3409_v8  ;;  %v3410_v57 = vrot.slane %v3402_v1, 7 }
 0xa46   :  { %v3419_v60 = vadd.f32 %v4137_v36, %v3415_v63  ;;  %v3416_v16 = vmul.f32 %v4149_v34, %v3408_v21 }
 0xa47   :  { %v3421_v23 = vadd.f32 %v4139_v43, %v3417_v52  ;;  %v3418_v9 = vmul.f32 %v4151_v45, %v3410_v57 }
 0xa48   :  { %v3420_v48 = vadd.f32 %v4141_v19, %v3416_v16 }
 0xa49   :  { %v3422_v38 = vadd.f32 %v4143_v61, %v3418_v9 }
 0xa4a   :  { %v3427_v50 = vcombine.high %v3419_v60, %v3420_v48 }
 0xa4b   :  { %v3444_v24 = vcombine.high %v3421_v23, %v3422_v38 }
 0xa4c   :  { %v3434_v15 = vrot.slane %v3427_v50, %v4943_v39 }
 0xa4d   :  { %v3451_v5 = vrot.slane %v3444_v24, %v4943_v39 }
 0xa4e   :  { %v3435_v56 = vcombine.high %v3434_v15, %v3434_v15 }
 0xa4f   :  { %v3452_v7 = vcombine.high %v3451_v5, %v3451_v5 }
 0xa50   :  { %v3442_v14 = vrot.slane %v3435_v56, %v4943_v39 }
 0xa51   :  { %v3459_v49 = vrot.slane %v3452_v7, %v4943_v39 }
 0xa52   :  { %v3443_v46 = vcombine.high %v3442_v14, %v3442_v14 }
 0xa53   :  { %v3460_v13 = vcombine.high %v3459_v49, %v3459_v49 }
 0xa54   :  { %3464 = vst.msk [vmem:[#allocation5 + $0x7] ss:$8 sm:$0x3] %vm4965_vm6, %v3443_v46 }
 0xa55   :  { %3467 = vst.msk [vmem:[#allocation5 + $0x17] ss:$8 sm:$0x3] %vm4965_vm6, %v3460_v13 }
 0xa56   :  { %4377 = shalt.err (!%p4374_p12)
}
 0xa57   :  { %s4378_s14 = scalar_lea.hbm %s6330_s6, 512 }
 0xa58   :  { %p4379_p13 = scmp.ne.s32.totalorder %s6330_s6, %s4378_s14  ;;  %p4382_p0 = scmp.lt.u32.totalorder %s4378_s14, %s6330_s6 }
 0xa5a   :  { %p4384_p1 = pnand %p4382_p0, %p4379_p13 }
 0xa5c   :  { %4387 = shalt.err (!%p4384_p1)
}
 0xa5d   :  { %s4399_s18 = smov 256   ;;  %s4400_s19 = smov 16  }
 0xa5e   :  { %3480 = dma.vmem_to_hbm [thread:$0]  %s3475_s10, 512, %s6330_s6, [#allocation4], %s4399_s18, %s4399_s18, %s4400_s19  }
 0xa5f   :  { %4390 = dma.done.wait [#allocation4], 512  }
 0xa60   :  { %4391 = vsyncadd [#allocation4], 4294966784 }
 0xa61   :  { %3484 = vsyncpa [#allocation3], 1 }
 0xa62   :  { %3485 = vsyncpa [#allocation4], 1 }

</bundles_post_ra>
